<compile_context>
chip_gen: v7x
topology: tpu7x:2x2x1
jax: 0.10.0
libtpu: 0.0.40
codegen_flags: <defaults>
</compile_context>

<pallas_src>
import functools

import jax
import jax.numpy as jnp
from jax import lax
from jax.experimental import pallas as pl
from jax.experimental.pallas import tpu as pltpu


def _round_up(n, m):
    return ((n + m - 1) // m) * m


# -----------------------------------------------------------------------------
# Fused kernel: one grid step == TB batch elements.
# -----------------------------------------------------------------------------
def _attn_pool_kernel(x_ref, wkv_ref, wq_ref, wc_ref, sel_ref, selT_ref,
                      poskv_sp_ref, poskv_mn_ref, qc_ref, bc_ref, o_ref, *,
                      tb, hw, ep, approx_recip):
    f32 = jnp.float32
    dn = (((1,), (0,)), ((), ()))           # contract lhs last dim with rhs first dim

    x2d = x_ref[0]                          # (TB*HW, EP)  MXU-operand dtype
    op_dt = x2d.dtype
    sel = sel_ref[...]                      # (EP, HP) 0/1 head selector
    selT = selT_ref[...]                    # (HP, EP)
    sel_dt = sel.dtype
    inv_hw = 1.0 / hw

    # ---- fused K|V projection of every spatial token of every batch in the tile.
    # Positional embedding + k/v biases are added afterwards (linearity), so no
    # token assembly / identity matmul is ever pushed through the MXU.
    kv_x = lax.dot_general(x2d, wkv_ref[...], dn,
                           preferred_element_type=f32)               # (TB*HW, 2EP)

    # ---- per-batch spatial means (the query token), stacked -> (TB, EP), f32.
    means = jnp.concatenate(
        [jnp.sum(x2d[b * hw:(b + 1) * hw, :].astype(f32), axis=0,
                 keepdims=True) * inv_hw
         for b in range(tb)], axis=0)

    # Mean-token K|V and scaled Q: two tiny M=TB matmuls (pos/bias/scale pre-folded).
    kv_mn = lax.dot_general(means.astype(op_dt), wkv_ref[...], dn,
                            preferred_element_type=f32) + poskv_mn_ref[...]   # (TB, 2EP)
    q = lax.dot_general(means.astype(op_dt), wq_ref[...], dn,
                        preferred_element_type=f32) + qc_ref[...]             # (TB, EP)

    poskv_sp = poskv_sp_ref[...]            # (HW, 2EP) f32: pos@Wkv + bias (spatial rows)

    attn_rows = []
    for b in range(tb):                     # static unrolled loop, TB <= 8
        kv_sp = kv_x[b * hw:(b + 1) * hw, :] + poskv_sp               # (HW, 2EP)
        k_sp, v_sp = kv_sp[:, :ep], kv_sp[:, ep:]
        k_mn, v_mn = kv_mn[b:b + 1, :ep], kv_mn[b:b + 1, ep:]
        q_b = q[b:b + 1, :]                                           # (1, EP)

        # Per-head scores via constant 0/1 selector matmuls (no lane relayout).
        s_sp = lax.dot_general((q_b * k_sp).astype(sel_dt), sel, dn,
                               preferred_element_type=f32)            # (HW, HP)
        s_mn = lax.dot_general((q_b * k_mn).astype(sel_dt), sel, dn,
                               preferred_element_type=f32)            # (1, HP)

        # Softmax over the HW+1 keys; normalization deferred to one (1,EP) multiply.
        m = jnp.maximum(jnp.max(s_sp, axis=0, keepdims=True), s_mn)   # (1, HP)
        p_sp = jnp.exp(s_sp - m)
        p_mn = jnp.exp(s_mn - m)
        denom = jnp.sum(p_sp, axis=0, keepdims=True) + p_mn           # (1, HP)
        inv = pl.reciprocal(denom, approx=approx_recip)               # EUP slot

        # Broadcast head probabilities / normalizer back onto feature lanes.
        p_sp_f = lax.dot_general(p_sp.astype(sel_dt), selT, dn,
                                 preferred_element_type=f32)          # (HW, EP)
        p_mn_f = lax.dot_general(p_mn.astype(sel_dt), selT, dn,
                                 preferred_element_type=f32)          # (1, EP)
        inv_f = lax.dot_general(inv.astype(sel_dt), selT, dn,
                                preferred_element_type=f32)           # (1, EP)

        attn_un = jnp.sum(p_sp_f * v_sp, axis=0, keepdims=True) + p_mn_f * v_mn
        attn_rows.append(attn_un * inv_f)                             # (1, EP)

    attn = jnp.concatenate(attn_rows, axis=0)                         # (TB, EP) f32
    out = lax.dot_general(attn.astype(op_dt), wc_ref[...], dn,
                          preferred_element_type=f32) + bc_ref[...]   # (TB, OP)
    o_ref[0] = out


# -----------------------------------------------------------------------------
# Wrapper: one-time layout plumbing (fuse/transpose/pad/cast weights, fold pos &
# biases by linearity) + a single pallas_call.
# -----------------------------------------------------------------------------
@functools.partial(jax.jit,
                   static_argnames=("num_heads", "operand_dtype",
                                    "single_buffer_consts"))
def _attention_pool2d_impl(x, pos, wq, bq, wk, bk, wv, bv, wc, bc, *,
                           num_heads, operand_dtype, single_buffer_consts):
    f32 = jnp.float32
    hp_prec = jax.lax.Precision.HIGHEST
    B, C, H, W = x.shape
    E = C
    HW = H * W
    L = HW + 1
    O = wc.shape[0]
    assert E % num_heads == 0
    hd = E // num_heads
    scale = float(hd) ** -0.5

    EP = _round_up(E, 128)            # lane-dense feature width
    OP = _round_up(O, 128)            # lane-dense output width
    HP = _round_up(num_heads, 128)    # lane-dense head axis for score tiles

    # Batch tile: amortize per-step pipeline overhead, but keep >= 2 grid steps so
    # both v7x TensorCores get work under dimension_semantics=("parallel",).
    TB = max(1, min(8, B // 2))
    B_pad = _round_up(B, TB)
    NB = B_pad // TB

    # ---- activations: flatten spatial, channels-last, pad feature axis only.
    xs = x.reshape(B, C, HW).transpose(0, 2, 1).astype(f32)          # (B, HW, E)
    xs = jnp.pad(xs, ((0, B_pad - B), (0, 0), (0, EP - E)))
    xs = xs.astype(operand_dtype).reshape(NB, TB * HW, EP)

    def padw(w, r, c):                 # zero-pad a 2-D f32 array to (r, c)
        return jnp.pad(w.astype(f32), ((0, r - w.shape[0]), (0, c - w.shape[1])))

    wkT = padw(wk.T, EP, EP)
    wvT = padw(wv.T, EP, EP)
    wqT = padw(wq.T, EP, EP)
    wcT = padw(wc.T, EP, OP)
    bk_p = padw(bk[None, :], 1, EP)
    bv_p = padw(bv[None, :], 1, EP)
    bq_p = padw(bq[None, :], 1, EP)
    bc_p = padw(bc[None, :], 1, OP)
    pos_p = padw(pos, L, EP)

    # Fused K|V weight: a single (EP, 2*EP) operand -> one N=256-wide MXU matmul.
    wkvT = jnp.concatenate([wkT, wvT], axis=1)                       # (EP, 2EP)

    # Positional embedding / bias contributions folded in by linearity:
    #   (x + pos) @ W + b == x @ W + (pos @ W + b)   (precomputed outside the kernel)
    pos_sp, pos_mn = pos_p[1:], pos_p[0:1]
    poskv_sp = jnp.concatenate(
        [jnp.dot(pos_sp, wkT, precision=hp_prec) + bk_p,
         jnp.dot(pos_sp, wvT, precision=hp_prec) + bv_p], axis=1)    # (HW, 2EP)
    poskv_mn = jnp.concatenate(
        [jnp.dot(pos_mn, wkT, precision=hp_prec) + bk_p,
         jnp.dot(pos_mn, wvT, precision=hp_prec) + bv_p], axis=1)    # (1, 2EP)
    wq_s = wqT * scale                                               # scale folded into Wq
    q_const = (jnp.dot(pos_mn, wqT, precision=hp_prec) + bq_p) * scale   # (1, EP)

    # 0/1 head selector: sel[e, h] = 1 iff (real) feature lane e belongs to head h.
    e_idx = jnp.arange(EP)
    h_idx = jnp.arange(HP)
    sel = (((e_idx[:, None] // hd) == h_idx[None, :])
           & (e_idx[:, None] < E) & (h_idx[None, :] < num_heads)).astype(f32)
    selT = sel.T

    # MXU operands in `operand_dtype` (bf16 halves weight DMA / resident VMEM);
    # additive constants and the whole in-kernel epilogue stay f32.
    wkvT_o = wkvT.astype(operand_dtype)
    wq_o = wq_s.astype(operand_dtype)
    wc_o = wcT.astype(operand_dtype)
    sel_o = sel.astype(operand_dtype)
    selT_o = selT.astype(operand_dtype)

    def const(shape):
        idx = lambda b: (0,) * len(shape)
        if single_buffer_consts:
            # Block index never changes -> the default second pipeline buffer is
            # pure VMEM waste; single-buffer every resident constant.
            return pl.BlockSpec(shape, idx, pipeline_mode=pl.Buffered(1))
        return pl.BlockSpec(shape, idx)

    kernel = functools.partial(
        _attn_pool_kernel, tb=TB, hw=HW, ep=EP,
        # EUP approx reciprocal on the (default) bf16 path; exact divide on the
        # f32 path so the tight numerics check holds.
        approx_recip=(operand_dtype == jnp.bfloat16))

    out_p = pl.pallas_call(
        kernel,
        out_shape=jax.ShapeDtypeStruct((NB, TB, OP), f32),
        grid=(NB,),
        in_specs=[
            pl.BlockSpec((1, TB * HW, EP), lambda b: (b, 0, 0)),   # x (per-step batch tile)
            const((EP, 2 * EP)),      # fused K|V weight (pre-transposed)
            const((EP, EP)),          # scaled Q weight (pre-transposed)
            const((EP, OP)),          # c_proj weight (pre-transposed)
            const((EP, HP)),          # head selector
            const((HP, EP)),          # head selector, transposed
            const((HW, 2 * EP)),      # pos@Wkv + bias, spatial rows
            const((1, 2 * EP)),       # pos@Wkv + bias, mean-token row
            const((1, EP)),           # (pos@Wq + bq) * scale
            const((1, OP)),           # c_proj bias
        ],
        out_specs=pl.BlockSpec((1, TB, OP), lambda b: (b, 0, 0)),
        compiler_params=pltpu.CompilerParams(
            dimension_semantics=("parallel",),
            # Plenty for these shapes; raise for production CLIP sizes on v5e/v6e,
            # or add an "arbitrary" contraction grid axis on v7x (64 MiB VMEM).
            vmem_limit_bytes=32 * 1024 * 1024,
        ),
    )(xs, wkvT_o, wq_o, wc_o, sel_o, selT_o, poskv_sp, poskv_mn, q_const, bc_p)

    return out_p.reshape(B_pad, OP)[:B, :O]


def attention_pool2d(x, pos, wq, bq, wk, bk, wv, bv, wc, bc, *, num_heads,
                     operand_dtype=jnp.bfloat16):
    """AttentionPool2d forward. MXU operands default to bf16, f32 accumulation."""
    args = (x, pos, wq, bq, wk, bk, wv, bv, wc, bc)
    try:
        return _attention_pool2d_impl(*args, num_heads=num_heads,
                                      operand_dtype=operand_dtype,
                                      single_buffer_consts=True)
    except Exception:
        # Pallas versions without BlockSpec(pipeline_mode=pl.Buffered(1)) fall back
        # to default double-buffered constant blocks (correctness unchanged).
        return _attention_pool2d_impl(*args, num_heads=num_heads,
                                      operand_dtype=operand_dtype,
                                      single_buffer_consts=False)


# -----------------------------------------------------------------------------
# Pure-JAX reference of the PyTorch module (for numerics check).
# -----------------------------------------------------------------------------
def _attention_pool2d_ref(x, pos, wq, bq, wk, bk, wv, bv, wc, bc, num_heads):
    B, C, H, W = x.shape
    E = C
    hd = E // num_heads
    hp = jax.lax.Precision.HIGHEST
    xf = x.reshape(B, C, H * W).transpose(2, 0, 1)                       # (HW, B, C)
    xf = jnp.concatenate([xf.mean(axis=0, keepdims=True), xf], axis=0)   # (L, B, C)
    xf = xf + pos[:, None, :]
    q = jnp.einsum('lbe,fe->lbf', xf[:1], wq, precision=hp) + bq
    k = jnp.einsum('lbe,fe->lbf', xf, wk, precision=hp) + bk
    v = jnp.einsum('lbe,fe->lbf', xf, wv, precision=hp) + bv
    q = q * (hd ** -0.5)
    L = xf.shape[0]
    qh = q.reshape(1, B, num_heads, hd)
    kh = k.reshape(L, B, num_heads, hd)
    vh = v.reshape(L, B, num_heads, hd)
    s = jnp.einsum('qbhd,lbhd->bhql', qh, kh, precision=hp)              # (B, nH, 1, L)
    p = jax.nn.softmax(s, axis=-1)
    o = jnp.einsum('bhql,lbhd->qbhd', p, vh, precision=hp).reshape(1, B, E)
    out = jnp.einsum('qbe,fe->qbf', o, wc, precision=hp) + bc
    return out[0]                                                        # (B, O)


# -----------------------------------------------------------------------------
if __name__ == "__main__":
    B, EMBED_DIM, SPATIAL = 8, 32, 4          # x: (B, C, H, W) = (8, 32, 4, 4)
    NUM_HEADS, OUTPUT_DIM = 4, 16             # seq = 4*4 + 1 = 17 tokens; TB=4, grid=2

    key = jax.random.PRNGKey(0)
    ks = jax.random.split(key, 10)
    x = jax.random.normal(ks[0], (B, EMBED_DIM, SPATIAL, SPATIAL), jnp.float32)
    pos = jax.random.normal(ks[1], (SPATIAL * SPATIAL + 1, EMBED_DIM),
                            jnp.float32) / (EMBED_DIM ** 0.5)

    def linear_init(kw, kb, out_f, in_f):
        bound = 1.0 / (in_f ** 0.5)
        w = jax.random.uniform(kw, (out_f, in_f), jnp.float32, -bound, bound)
        b = jax.random.uniform(kb, (out_f,), jnp.float32, -bound, bound)
        return w, b

    wq, bq = linear_init(ks[2], ks[3], EMBED_DIM, EMBED_DIM)
    wk, bk = linear_init(ks[4], ks[5], EMBED_DIM, EMBED_DIM)
    wv, bv = linear_init(ks[6], ks[7], EMBED_DIM, EMBED_DIM)
    wc, bc = linear_init(ks[8], ks[9], OUTPUT_DIM, EMBED_DIM)

    ref = _attention_pool2d_ref(x, pos, wq, bq, wk, bk, wv, bv, wc, bc, NUM_HEADS)

    # f32 MXU operands: tight numerics check against the reference semantics.
    out_f32 = attention_pool2d(x, pos, wq, bq, wk, bk, wv, bv, wc, bc,
                               num_heads=NUM_HEADS, operand_dtype=jnp.float32)
    jax.block_until_ready(out_f32)
    assert out_f32.shape == (B, OUTPUT_DIM), out_f32.shape
    assert out_f32.dtype == jnp.float32, out_f32.dtype
    assert jnp.allclose(out_f32, ref, rtol=2e-2, atol=2e-3), \
        float(jnp.max(jnp.abs(out_f32 - ref)))

    # Default (performance) path: bf16 MXU operands, f32 accumulation/epilogue.
    out_bf16 = attention_pool2d(x, pos, wq, bq, wk, bk, wv, bv, wc, bc,
                                num_heads=NUM_HEADS)
    jax.block_until_ready(out_bf16)
    assert out_bf16.shape == (B, OUTPUT_DIM), out_bf16.shape
    assert jnp.allclose(out_bf16, ref, rtol=5e-2, atol=5e-2), \
        float(jnp.max(jnp.abs(out_bf16 - ref)))

    print("KERNEL_OK")
</pallas_src>

<mosaic_0001>
module attributes {stable_mosaic.version = 11 : i64} {
  func.func @_attn_pool_kernel(%arg0: i32, %arg1: memref<1x64x128xf32, #tpu.memory_space<vmem>>, %arg2: memref<128x256xf32, #tpu.memory_space<vmem>>, %arg3: memref<128x128xf32, #tpu.memory_space<vmem>>, %arg4: memref<128x128xf32, #tpu.memory_space<vmem>>, %arg5: memref<128x128xf32, #tpu.memory_space<vmem>>, %arg6: memref<128x128xf32, #tpu.memory_space<vmem>>, %arg7: memref<16x256xf32, #tpu.memory_space<vmem>>, %arg8: memref<1x256xf32, #tpu.memory_space<vmem>>, %arg9: memref<1x128xf32, #tpu.memory_space<vmem>>, %arg10: memref<1x128xf32, #tpu.memory_space<vmem>>, %arg11: memref<1x4x128xf32, #tpu.memory_space<vmem>>) attributes {dimension_semantics = [#tpu.dimension_semantics<parallel>], iteration_bounds = array<i64: 2>, scalar_prefetch = 0 : i64, scratch_operands = 0 : i64, tpu.core_type = #tpu.core_type<tc>, window_params = [{transform_indices = @transform_0, window_bounds = array<i64: 1, 64, 128>}, {pipeline_mode = #tpu.pipeline_mode<synchronous>, transform_indices = @transform_1, window_bounds = array<i64: 128, 256>}, {pipeline_mode = #tpu.pipeline_mode<synchronous>, transform_indices = @transform_2, window_bounds = array<i64: 128, 128>}, {pipeline_mode = #tpu.pipeline_mode<synchronous>, transform_indices = @transform_3, window_bounds = array<i64: 128, 128>}, {pipeline_mode = #tpu.pipeline_mode<synchronous>, transform_indices = @transform_4, window_bounds = array<i64: 128, 128>}, {pipeline_mode = #tpu.pipeline_mode<synchronous>, transform_indices = @transform_5, window_bounds = array<i64: 128, 128>}, {pipeline_mode = #tpu.pipeline_mode<synchronous>, transform_indices = @transform_6, window_bounds = array<i64: 16, 256>}, {pipeline_mode = #tpu.pipeline_mode<synchronous>, transform_indices = @transform_7, window_bounds = array<i64: 1, 256>}, {pipeline_mode = #tpu.pipeline_mode<synchronous>, transform_indices = @transform_8, window_bounds = array<i64: 1, 128>}, {pipeline_mode = #tpu.pipeline_mode<synchronous>, transform_indices = @transform_9, window_bounds = array<i64: 1, 128>}, {transform_indices = @transform_10, window_bounds = array<i64: 1, 4, 128>}]} {
    %c0 = arith.constant 0 : index
    %c0_0 = arith.constant 0 : index
    %c0_1 = arith.constant 0 : index
    %0 = vector.load %arg1[%c0, %c0_0, %c0_1] : memref<1x64x128xf32, #tpu.memory_space<vmem>>, vector<1x64x128xf32>
    %1 = vector.shape_cast %0 : vector<1x64x128xf32> to vector<64x128xf32>
    %c0_2 = arith.constant 0 : index
    %c0_3 = arith.constant 0 : index
    %2 = vector.load %arg5[%c0_2, %c0_3] : memref<128x128xf32, #tpu.memory_space<vmem>>, vector<128x128xf32>
    %c0_4 = arith.constant 0 : index
    %c0_5 = arith.constant 0 : index
    %3 = vector.load %arg6[%c0_4, %c0_5] : memref<128x128xf32, #tpu.memory_space<vmem>>, vector<128x128xf32>
    %c0_6 = arith.constant 0 : index
    %c0_7 = arith.constant 0 : index
    %4 = vector.load %arg2[%c0_6, %c0_7] : memref<128x256xf32, #tpu.memory_space<vmem>>, vector<128x256xf32>
    %cst = arith.constant dense<0.000000e+00> : vector<64x256xf32>
    %5 = tpu.matmul %1, %4, %cst {dimension_numbers = #tpu.dot_dimension_numbers<[1], [0], [0], [1], [0, 0, 1, 1], [], []>} : vector<64x128xf32>, vector<128x256xf32>, vector<64x256xf32> -> vector<64x256xf32>
    %6 = vector.extract_strided_slice %1 {offsets = [0, 0], sizes = [16, 128], strides = [1, 1]} : vector<64x128xf32> to vector<16x128xf32>
    %cst_8 = arith.constant dense<0.000000e+00> : vector<128xf32>
    %7 = vector.multi_reduction <add>, %6, %cst_8 [0] : vector<16x128xf32> to vector<128xf32>
    %8 = vector.shape_cast %7 : vector<128xf32> to vector<1x128xf32>
    %cst_9 = arith.constant 6.250000e-02 : f32
    %9 = vector.broadcast %cst_9 : f32 to vector<1x128xf32>
    %10 = arith.mulf %8, %9 : vector<1x128xf32>
    %11 = vector.extract_strided_slice %1 {offsets = [16, 0], sizes = [16, 128], strides = [1, 1]} : vector<64x128xf32> to vector<16x128xf32>
    %cst_10 = arith.constant dense<0.000000e+00> : vector<128xf32>
    %12 = vector.multi_reduction <add>, %11, %cst_10 [0] : vector<16x128xf32> to vector<128xf32>
    %13 = vector.shape_cast %12 : vector<128xf32> to vector<1x128xf32>
    %cst_11 = arith.constant 6.250000e-02 : f32
    %14 = vector.broadcast %cst_11 : f32 to vector<1x128xf32>
    %15 = arith.mulf %13, %14 : vector<1x128xf32>
    %16 = vector.extract_strided_slice %1 {offsets = [32, 0], sizes = [16, 128], strides = [1, 1]} : vector<64x128xf32> to vector<16x128xf32>
    %cst_12 = arith.constant dense<0.000000e+00> : vector<128xf32>
    %17 = vector.multi_reduction <add>, %16, %cst_12 [0] : vector<16x128xf32> to vector<128xf32>
    %18 = vector.shape_cast %17 : vector<128xf32> to vector<1x128xf32>
    %cst_13 = arith.constant 6.250000e-02 : f32
    %19 = vector.broadcast %cst_13 : f32 to vector<1x128xf32>
    %20 = arith.mulf %18, %19 : vector<1x128xf32>
    %21 = vector.extract_strided_slice %1 {offsets = [48, 0], sizes = [16, 128], strides = [1, 1]} : vector<64x128xf32> to vector<16x128xf32>
    %cst_14 = arith.constant dense<0.000000e+00> : vector<128xf32>
    %22 = vector.multi_reduction <add>, %21, %cst_14 [0] : vector<16x128xf32> to vector<128xf32>
    %23 = vector.shape_cast %22 : vector<128xf32> to vector<1x128xf32>
    %cst_15 = arith.constant 6.250000e-02 : f32
    %24 = vector.broadcast %cst_15 : f32 to vector<1x128xf32>
    %25 = arith.mulf %23, %24 : vector<1x128xf32>
    %26 = tpu.concatenate %10, %15, %20, %25 in 0 : vector<1x128xf32>, vector<1x128xf32>, vector<1x128xf32>, vector<1x128xf32> -> vector<4x128xf32>
    %c0_16 = arith.constant 0 : index
    %c0_17 = arith.constant 0 : index
    %27 = vector.load %arg2[%c0_16, %c0_17] : memref<128x256xf32, #tpu.memory_space<vmem>>, vector<128x256xf32>
    %cst_18 = arith.constant dense<0.000000e+00> : vector<4x256xf32>
    %28 = tpu.matmul %26, %27, %cst_18 {dimension_numbers = #tpu.dot_dimension_numbers<[1], [0], [0], [1], [0, 0, 1, 1], [], []>} : vector<4x128xf32>, vector<128x256xf32>, vector<4x256xf32> -> vector<4x256xf32>
    %c0_19 = arith.constant 0 : index
    %c0_20 = arith.constant 0 : index
    %29 = vector.load %arg8[%c0_19, %c0_20] : memref<1x256xf32, #tpu.memory_space<vmem>>, vector<1x256xf32>
    %30 = vector.broadcast %29 : vector<1x256xf32> to vector<4x256xf32>
    %31 = arith.addf %28, %30 : vector<4x256xf32>
    %c0_21 = arith.constant 0 : index
    %c0_22 = arith.constant 0 : index
    %32 = vector.load %arg3[%c0_21, %c0_22] : memref<128x128xf32, #tpu.memory_space<vmem>>, vector<128x128xf32>
    %cst_23 = arith.constant dense<0.000000e+00> : vector<4x128xf32>
    %33 = tpu.matmul %26, %32, %cst_23 {dimension_numbers = #tpu.dot_dimension_numbers<[1], [0], [0], [1], [0, 0, 1, 1], [], []>} : vector<4x128xf32>, vector<128x128xf32>, vector<4x128xf32> -> vector<4x128xf32>
    %c0_24 = arith.constant 0 : index
    %c0_25 = arith.constant 0 : index
    %34 = vector.load %arg9[%c0_24, %c0_25] : memref<1x128xf32, #tpu.memory_space<vmem>>, vector<1x128xf32>
    %35 = vector.broadcast %34 : vector<1x128xf32> to vector<4x128xf32>
    %36 = arith.addf %33, %35 : vector<4x128xf32>
    %c0_26 = arith.constant 0 : index
    %c0_27 = arith.constant 0 : index
    %37 = vector.load %arg7[%c0_26, %c0_27] : memref<16x256xf32, #tpu.memory_space<vmem>>, vector<16x256xf32>
    %38 = vector.extract_strided_slice %5 {offsets = [0, 0], sizes = [16, 256], strides = [1, 1]} : vector<64x256xf32> to vector<16x256xf32>
    %39 = arith.addf %38, %37 : vector<16x256xf32>
    %40 = vector.extract_strided_slice %39 {offsets = [0, 0], sizes = [16, 128], strides = [1, 1]} : vector<16x256xf32> to vector<16x128xf32>
    %41 = vector.extract_strided_slice %39 {offsets = [0, 128], sizes = [16, 128], strides = [1, 1]} : vector<16x256xf32> to vector<16x128xf32>
    %42 = vector.extract_strided_slice %31 {offsets = [0, 0], sizes = [1, 128], strides = [1, 1]} : vector<4x256xf32> to vector<1x128xf32>
    %43 = vector.extract_strided_slice %31 {offsets = [0, 128], sizes = [1, 128], strides = [1, 1]} : vector<4x256xf32> to vector<1x128xf32>
    %44 = vector.extract_strided_slice %36 {offsets = [0, 0], sizes = [1, 128], strides = [1, 1]} : vector<4x128xf32> to vector<1x128xf32>
    %45 = vector.broadcast %44 : vector<1x128xf32> to vector<16x128xf32>
    %46 = arith.mulf %45, %40 : vector<16x128xf32>
    %cst_28 = arith.constant dense<0.000000e+00> : vector<16x128xf32>
    %47 = tpu.matmul %46, %2, %cst_28 {dimension_numbers = #tpu.dot_dimension_numbers<[1], [0], [0], [1], [0, 0, 1, 1], [], []>} : vector<16x128xf32>, vector<128x128xf32>, vector<16x128xf32> -> vector<16x128xf32>
    %48 = arith.mulf %44, %42 : vector<1x128xf32>
    %cst_29 = arith.constant dense<0.000000e+00> : vector<1x128xf32>
    %49 = tpu.matmul %48, %2, %cst_29 {dimension_numbers = #tpu.dot_dimension_numbers<[1], [0], [0], [1], [0, 0, 1, 1], [], []>} : vector<1x128xf32>, vector<128x128xf32>, vector<1x128xf32> -> vector<1x128xf32>
    %cst_30 = arith.constant dense<0xFF800000> : vector<128xf32>
    %50 = vector.multi_reduction <maximumf>, %47, %cst_30 [0] : vector<16x128xf32> to vector<128xf32>
    %51 = vector.shape_cast %50 : vector<128xf32> to vector<1x128xf32>
    %52 = arith.maximumf %51, %49 : vector<1x128xf32>
    %53 = vector.broadcast %52 : vector<1x128xf32> to vector<16x128xf32>
    %54 = arith.subf %47, %53 : vector<16x128xf32>
    %55 = math.exp %54 : vector<16x128xf32>
    %56 = arith.subf %49, %52 : vector<1x128xf32>
    %57 = math.exp %56 : vector<1x128xf32>
    %cst_31 = arith.constant dense<0.000000e+00> : vector<128xf32>
    %58 = vector.multi_reduction <add>, %55, %cst_31 [0] : vector<16x128xf32> to vector<128xf32>
    %59 = vector.shape_cast %58 : vector<128xf32> to vector<1x128xf32>
    %60 = arith.addf %59, %57 : vector<1x128xf32>
    %61 = tpu.reciprocal %60 : vector<1x128xf32> -> vector<1x128xf32>
    %cst_32 = arith.constant dense<0.000000e+00> : vector<16x128xf32>
    %62 = tpu.matmul %55, %3, %cst_32 {dimension_numbers = #tpu.dot_dimension_numbers<[1], [0], [0], [1], [0, 0, 1, 1], [], []>} : vector<16x128xf32>, vector<128x128xf32>, vector<16x128xf32> -> vector<16x128xf32>
    %cst_33 = arith.constant dense<0.000000e+00> : vector<1x128xf32>
    %63 = tpu.matmul %57, %3, %cst_33 {dimension_numbers = #tpu.dot_dimension_numbers<[1], [0], [0], [1], [0, 0, 1, 1], [], []>} : vector<1x128xf32>, vector<128x128xf32>, vector<1x128xf32> -> vector<1x128xf32>
    %cst_34 = arith.constant dense<0.000000e+00> : vector<1x128xf32>
    %64 = tpu.matmul %61, %3, %cst_34 {dimension_numbers = #tpu.dot_dimension_numbers<[1], [0], [0], [1], [0, 0, 1, 1], [], []>} : vector<1x128xf32>, vector<128x128xf32>, vector<1x128xf32> -> vector<1x128xf32>
    %65 = arith.mulf %62, %41 : vector<16x128xf32>
    %cst_35 = arith.constant dense<0.000000e+00> : vector<128xf32>
    %66 = vector.multi_reduction <add>, %65, %cst_35 [0] : vector<16x128xf32> to vector<128xf32>
    %67 = vector.shape_cast %66 : vector<128xf32> to vector<1x128xf32>
    %68 = arith.mulf %63, %43 : vector<1x128xf32>
    %69 = arith.addf %67, %68 : vector<1x128xf32>
    %70 = arith.mulf %69, %64 : vector<1x128xf32>
    %71 = vector.extract_strided_slice %5 {offsets = [16, 0], sizes = [16, 256], strides = [1, 1]} : vector<64x256xf32> to vector<16x256xf32>
    %72 = arith.addf %71, %37 : vector<16x256xf32>
    %73 = vector.extract_strided_slice %72 {offsets = [0, 0], sizes = [16, 128], strides = [1, 1]} : vector<16x256xf32> to vector<16x128xf32>
    %74 = vector.extract_strided_slice %72 {offsets = [0, 128], sizes = [16, 128], strides = [1, 1]} : vector<16x256xf32> to vector<16x128xf32>
    %75 = vector.extract_strided_slice %31 {offsets = [1, 0], sizes = [1, 128], strides = [1, 1]} : vector<4x256xf32> to vector<1x128xf32>
    %76 = vector.extract_strided_slice %31 {offsets = [1, 128], sizes = [1, 128], strides = [1, 1]} : vector<4x256xf32> to vector<1x128xf32>
    %77 = vector.extract_strided_slice %36 {offsets = [1, 0], sizes = [1, 128], strides = [1, 1]} : vector<4x128xf32> to vector<1x128xf32>
    %78 = vector.broadcast %77 : vector<1x128xf32> to vector<16x128xf32>
    %79 = arith.mulf %78, %73 : vector<16x128xf32>
    %cst_36 = arith.constant dense<0.000000e+00> : vector<16x128xf32>
    %80 = tpu.matmul %79, %2, %cst_36 {dimension_numbers = #tpu.dot_dimension_numbers<[1], [0], [0], [1], [0, 0, 1, 1], [], []>} : vector<16x128xf32>, vector<128x128xf32>, vector<16x128xf32> -> vector<16x128xf32>
    %81 = arith.mulf %77, %75 : vector<1x128xf32>
    %cst_37 = arith.constant dense<0.000000e+00> : vector<1x128xf32>
    %82 = tpu.matmul %81, %2, %cst_37 {dimension_numbers = #tpu.dot_dimension_numbers<[1], [0], [0], [1], [0, 0, 1, 1], [], []>} : vector<1x128xf32>, vector<128x128xf32>, vector<1x128xf32> -> vector<1x128xf32>
    %cst_38 = arith.constant dense<0xFF800000> : vector<128xf32>
    %83 = vector.multi_reduction <maximumf>, %80, %cst_38 [0] : vector<16x128xf32> to vector<128xf32>
    %84 = vector.shape_cast %83 : vector<128xf32> to vector<1x128xf32>
    %85 = arith.maximumf %84, %82 : vector<1x128xf32>
    %86 = vector.broadcast %85 : vector<1x128xf32> to vector<16x128xf32>
    %87 = arith.subf %80, %86 : vector<16x128xf32>
    %88 = math.exp %87 : vector<16x128xf32>
    %89 = arith.subf %82, %85 : vector<1x128xf32>
    %90 = math.exp %89 : vector<1x128xf32>
    %cst_39 = arith.constant dense<0.000000e+00> : vector<128xf32>
    %91 = vector.multi_reduction <add>, %88, %cst_39 [0] : vector<16x128xf32> to vector<128xf32>
    %92 = vector.shape_cast %91 : vector<128xf32> to vector<1x128xf32>
    %93 = arith.addf %92, %90 : vector<1x128xf32>
    %94 = tpu.reciprocal %93 : vector<1x128xf32> -> vector<1x128xf32>
    %cst_40 = arith.constant dense<0.000000e+00> : vector<16x128xf32>
    %95 = tpu.matmul %88, %3, %cst_40 {dimension_numbers = #tpu.dot_dimension_numbers<[1], [0], [0], [1], [0, 0, 1, 1], [], []>} : vector<16x128xf32>, vector<128x128xf32>, vector<16x128xf32> -> vector<16x128xf32>
    %cst_41 = arith.constant dense<0.000000e+00> : vector<1x128xf32>
    %96 = tpu.matmul %90, %3, %cst_41 {dimension_numbers = #tpu.dot_dimension_numbers<[1], [0], [0], [1], [0, 0, 1, 1], [], []>} : vector<1x128xf32>, vector<128x128xf32>, vector<1x128xf32> -> vector<1x128xf32>
    %cst_42 = arith.constant dense<0.000000e+00> : vector<1x128xf32>
    %97 = tpu.matmul %94, %3, %cst_42 {dimension_numbers = #tpu.dot_dimension_numbers<[1], [0], [0], [1], [0, 0, 1, 1], [], []>} : vector<1x128xf32>, vector<128x128xf32>, vector<1x128xf32> -> vector<1x128xf32>
    %98 = arith.mulf %95, %74 : vector<16x128xf32>
    %cst_43 = arith.constant dense<0.000000e+00> : vector<128xf32>
    %99 = vector.multi_reduction <add>, %98, %cst_43 [0] : vector<16x128xf32> to vector<128xf32>
    %100 = vector.shape_cast %99 : vector<128xf32> to vector<1x128xf32>
    %101 = arith.mulf %96, %76 : vector<1x128xf32>
    %102 = arith.addf %100, %101 : vector<1x128xf32>
    %103 = arith.mulf %102, %97 : vector<1x128xf32>
    %104 = vector.extract_strided_slice %5 {offsets = [32, 0], sizes = [16, 256], strides = [1, 1]} : vector<64x256xf32> to vector<16x256xf32>
    %105 = arith.addf %104, %37 : vector<16x256xf32>
    %106 = vector.extract_strided_slice %105 {offsets = [0, 0], sizes = [16, 128], strides = [1, 1]} : vector<16x256xf32> to vector<16x128xf32>
    %107 = vector.extract_strided_slice %105 {offsets = [0, 128], sizes = [16, 128], strides = [1, 1]} : vector<16x256xf32> to vector<16x128xf32>
    %108 = vector.extract_strided_slice %31 {offsets = [2, 0], sizes = [1, 128], strides = [1, 1]} : vector<4x256xf32> to vector<1x128xf32>
    %109 = vector.extract_strided_slice %31 {offsets = [2, 128], sizes = [1, 128], strides = [1, 1]} : vector<4x256xf32> to vector<1x128xf32>
    %110 = vector.extract_strided_slice %36 {offsets = [2, 0], sizes = [1, 128], strides = [1, 1]} : vector<4x128xf32> to vector<1x128xf32>
    %111 = vector.broadcast %110 : vector<1x128xf32> to vector<16x128xf32>
    %112 = arith.mulf %111, %106 : vector<16x128xf32>
    %cst_44 = arith.constant dense<0.000000e+00> : vector<16x128xf32>
    %113 = tpu.matmul %112, %2, %cst_44 {dimension_numbers = #tpu.dot_dimension_numbers<[1], [0], [0], [1], [0, 0, 1, 1], [], []>} : vector<16x128xf32>, vector<128x128xf32>, vector<16x128xf32> -> vector<16x128xf32>
    %114 = arith.mulf %110, %108 : vector<1x128xf32>
    %cst_45 = arith.constant dense<0.000000e+00> : vector<1x128xf32>
    %115 = tpu.matmul %114, %2, %cst_45 {dimension_numbers = #tpu.dot_dimension_numbers<[1], [0], [0], [1], [0, 0, 1, 1], [], []>} : vector<1x128xf32>, vector<128x128xf32>, vector<1x128xf32> -> vector<1x128xf32>
    %cst_46 = arith.constant dense<0xFF800000> : vector<128xf32>
    %116 = vector.multi_reduction <maximumf>, %113, %cst_46 [0] : vector<16x128xf32> to vector<128xf32>
    %117 = vector.shape_cast %116 : vector<128xf32> to vector<1x128xf32>
    %118 = arith.maximumf %117, %115 : vector<1x128xf32>
    %119 = vector.broadcast %118 : vector<1x128xf32> to vector<16x128xf32>
    %120 = arith.subf %113, %119 : vector<16x128xf32>
    %121 = math.exp %120 : vector<16x128xf32>
    %122 = arith.subf %115, %118 : vector<1x128xf32>
    %123 = math.exp %122 : vector<1x128xf32>
    %cst_47 = arith.constant dense<0.000000e+00> : vector<128xf32>
    %124 = vector.multi_reduction <add>, %121, %cst_47 [0] : vector<16x128xf32> to vector<128xf32>
    %125 = vector.shape_cast %124 : vector<128xf32> to vector<1x128xf32>
    %126 = arith.addf %125, %123 : vector<1x128xf32>
    %127 = tpu.reciprocal %126 : vector<1x128xf32> -> vector<1x128xf32>
    %cst_48 = arith.constant dense<0.000000e+00> : vector<16x128xf32>
    %128 = tpu.matmul %121, %3, %cst_48 {dimension_numbers = #tpu.dot_dimension_numbers<[1], [0], [0], [1], [0, 0, 1, 1], [], []>} : vector<16x128xf32>, vector<128x128xf32>, vector<16x128xf32> -> vector<16x128xf32>
    %cst_49 = arith.constant dense<0.000000e+00> : vector<1x128xf32>
    %129 = tpu.matmul %123, %3, %cst_49 {dimension_numbers = #tpu.dot_dimension_numbers<[1], [0], [0], [1], [0, 0, 1, 1], [], []>} : vector<1x128xf32>, vector<128x128xf32>, vector<1x128xf32> -> vector<1x128xf32>
    %cst_50 = arith.constant dense<0.000000e+00> : vector<1x128xf32>
    %130 = tpu.matmul %127, %3, %cst_50 {dimension_numbers = #tpu.dot_dimension_numbers<[1], [0], [0], [1], [0, 0, 1, 1], [], []>} : vector<1x128xf32>, vector<128x128xf32>, vector<1x128xf32> -> vector<1x128xf32>
    %131 = arith.mulf %128, %107 : vector<16x128xf32>
    %cst_51 = arith.constant dense<0.000000e+00> : vector<128xf32>
    %132 = vector.multi_reduction <add>, %131, %cst_51 [0] : vector<16x128xf32> to vector<128xf32>
    %133 = vector.shape_cast %132 : vector<128xf32> to vector<1x128xf32>
    %134 = arith.mulf %129, %109 : vector<1x128xf32>
    %135 = arith.addf %133, %134 : vector<1x128xf32>
    %136 = arith.mulf %135, %130 : vector<1x128xf32>
    %137 = vector.extract_strided_slice %5 {offsets = [48, 0], sizes = [16, 256], strides = [1, 1]} : vector<64x256xf32> to vector<16x256xf32>
    %138 = arith.addf %137, %37 : vector<16x256xf32>
    %139 = vector.extract_strided_slice %138 {offsets = [0, 0], sizes = [16, 128], strides = [1, 1]} : vector<16x256xf32> to vector<16x128xf32>
    %140 = vector.extract_strided_slice %138 {offsets = [0, 128], sizes = [16, 128], strides = [1, 1]} : vector<16x256xf32> to vector<16x128xf32>
    %141 = vector.extract_strided_slice %31 {offsets = [3, 0], sizes = [1, 128], strides = [1, 1]} : vector<4x256xf32> to vector<1x128xf32>
    %142 = vector.extract_strided_slice %31 {offsets = [3, 128], sizes = [1, 128], strides = [1, 1]} : vector<4x256xf32> to vector<1x128xf32>
    %143 = vector.extract_strided_slice %36 {offsets = [3, 0], sizes = [1, 128], strides = [1, 1]} : vector<4x128xf32> to vector<1x128xf32>
    %144 = vector.broadcast %143 : vector<1x128xf32> to vector<16x128xf32>
    %145 = arith.mulf %144, %139 : vector<16x128xf32>
    %cst_52 = arith.constant dense<0.000000e+00> : vector<16x128xf32>
    %146 = tpu.matmul %145, %2, %cst_52 {dimension_numbers = #tpu.dot_dimension_numbers<[1], [0], [0], [1], [0, 0, 1, 1], [], []>} : vector<16x128xf32>, vector<128x128xf32>, vector<16x128xf32> -> vector<16x128xf32>
    %147 = arith.mulf %143, %141 : vector<1x128xf32>
    %cst_53 = arith.constant dense<0.000000e+00> : vector<1x128xf32>
    %148 = tpu.matmul %147, %2, %cst_53 {dimension_numbers = #tpu.dot_dimension_numbers<[1], [0], [0], [1], [0, 0, 1, 1], [], []>} : vector<1x128xf32>, vector<128x128xf32>, vector<1x128xf32> -> vector<1x128xf32>
    %cst_54 = arith.constant dense<0xFF800000> : vector<128xf32>
    %149 = vector.multi_reduction <maximumf>, %146, %cst_54 [0] : vector<16x128xf32> to vector<128xf32>
    %150 = vector.shape_cast %149 : vector<128xf32> to vector<1x128xf32>
    %151 = arith.maximumf %150, %148 : vector<1x128xf32>
    %152 = vector.broadcast %151 : vector<1x128xf32> to vector<16x128xf32>
    %153 = arith.subf %146, %152 : vector<16x128xf32>
    %154 = math.exp %153 : vector<16x128xf32>
    %155 = arith.subf %148, %151 : vector<1x128xf32>
    %156 = math.exp %155 : vector<1x128xf32>
    %cst_55 = arith.constant dense<0.000000e+00> : vector<128xf32>
    %157 = vector.multi_reduction <add>, %154, %cst_55 [0] : vector<16x128xf32> to vector<128xf32>
    %158 = vector.shape_cast %157 : vector<128xf32> to vector<1x128xf32>
    %159 = arith.addf %158, %156 : vector<1x128xf32>
    %160 = tpu.reciprocal %159 : vector<1x128xf32> -> vector<1x128xf32>
    %cst_56 = arith.constant dense<0.000000e+00> : vector<16x128xf32>
    %161 = tpu.matmul %154, %3, %cst_56 {dimension_numbers = #tpu.dot_dimension_numbers<[1], [0], [0], [1], [0, 0, 1, 1], [], []>} : vector<16x128xf32>, vector<128x128xf32>, vector<16x128xf32> -> vector<16x128xf32>
    %cst_57 = arith.constant dense<0.000000e+00> : vector<1x128xf32>
    %162 = tpu.matmul %156, %3, %cst_57 {dimension_numbers = #tpu.dot_dimension_numbers<[1], [0], [0], [1], [0, 0, 1, 1], [], []>} : vector<1x128xf32>, vector<128x128xf32>, vector<1x128xf32> -> vector<1x128xf32>
    %cst_58 = arith.constant dense<0.000000e+00> : vector<1x128xf32>
    %163 = tpu.matmul %160, %3, %cst_58 {dimension_numbers = #tpu.dot_dimension_numbers<[1], [0], [0], [1], [0, 0, 1, 1], [], []>} : vector<1x128xf32>, vector<128x128xf32>, vector<1x128xf32> -> vector<1x128xf32>
    %164 = arith.mulf %161, %140 : vector<16x128xf32>
    %cst_59 = arith.constant dense<0.000000e+00> : vector<128xf32>
    %165 = vector.multi_reduction <add>, %164, %cst_59 [0] : vector<16x128xf32> to vector<128xf32>
    %166 = vector.shape_cast %165 : vector<128xf32> to vector<1x128xf32>
    %167 = arith.mulf %162, %142 : vector<1x128xf32>
    %168 = arith.addf %166, %167 : vector<1x128xf32>
    %169 = arith.mulf %168, %163 : vector<1x128xf32>
    %170 = tpu.concatenate %70, %103, %136, %169 in 0 : vector<1x128xf32>, vector<1x128xf32>, vector<1x128xf32>, vector<1x128xf32> -> vector<4x128xf32>
    %c0_60 = arith.constant 0 : index
    %c0_61 = arith.constant 0 : index
    %171 = vector.load %arg4[%c0_60, %c0_61] : memref<128x128xf32, #tpu.memory_space<vmem>>, vector<128x128xf32>
    %cst_62 = arith.constant dense<0.000000e+00> : vector<4x128xf32>
    %172 = tpu.matmul %170, %171, %cst_62 {dimension_numbers = #tpu.dot_dimension_numbers<[1], [0], [0], [1], [0, 0, 1, 1], [], []>} : vector<4x128xf32>, vector<128x128xf32>, vector<4x128xf32> -> vector<4x128xf32>
    %c0_63 = arith.constant 0 : index
    %c0_64 = arith.constant 0 : index
    %173 = vector.load %arg10[%c0_63, %c0_64] : memref<1x128xf32, #tpu.memory_space<vmem>>, vector<1x128xf32>
    %174 = vector.broadcast %173 : vector<1x128xf32> to vector<4x128xf32>
    %175 = arith.addf %172, %174 : vector<4x128xf32>
    %c0_65 = arith.constant 0 : index
    %c0_66 = arith.constant 0 : index
    %c0_67 = arith.constant 0 : index
    %176 = vector.load %arg11[%c0_65, %c0_66, %c0_67] : memref<1x4x128xf32, #tpu.memory_space<vmem>>, vector<1x4x128xf32>
    %177 = vector.shape_cast %176 : vector<1x4x128xf32> to vector<4x128xf32>
    %178 = vector.shape_cast %175 : vector<4x128xf32> to vector<1x4x128xf32>
    tpu.vector_store %arg11[%c0_65, %c0_66, %c0_67], %178 {strides = array<i32>} : memref<1x4x128xf32, #tpu.memory_space<vmem>>, vector<1x4x128xf32>,
    return
  }
  func.func @transform_0(%arg0: i32) -> (i32, i32, i32) {
    %c0_i32 = arith.constant 0 : i32
    %c0_i32_0 = arith.constant 0 : i32
    %c0_i32_1 = arith.constant 0 : i32
    return %arg0, %c0_i32, %c0_i32_0 : i32, i32, i32
  }
  func.func @transform_1(%arg0: i32) -> (i32, i32) {
    %c0_i32 = arith.constant 0 : i32
    %c0_i32_0 = arith.constant 0 : i32
    %c0_i32_1 = arith.constant 0 : i32
    return %c0_i32, %c0_i32_0 : i32, i32
  }
  func.func @transform_2(%arg0: i32) -> (i32, i32) {
    %c0_i32 = arith.constant 0 : i32
    %c0_i32_0 = arith.constant 0 : i32
    %c0_i32_1 = arith.constant 0 : i32
    return %c0_i32, %c0_i32_0 : i32, i32
  }
  func.func @transform_3(%arg0: i32) -> (i32, i32) {
    %c0_i32 = arith.constant 0 : i32
    %c0_i32_0 = arith.constant 0 : i32
    %c0_i32_1 = arith.constant 0 : i32
    return %c0_i32, %c0_i32_0 : i32, i32
  }
  func.func @transform_4(%arg0: i32) -> (i32, i32) {
    %c0_i32 = arith.constant 0 : i32
    %c0_i32_0 = arith.constant 0 : i32
    %c0_i32_1 = arith.constant 0 : i32
    return %c0_i32, %c0_i32_0 : i32, i32
  }
  func.func @transform_5(%arg0: i32) -> (i32, i32) {
    %c0_i32 = arith.constant 0 : i32
    %c0_i32_0 = arith.constant 0 : i32
    %c0_i32_1 = arith.constant 0 : i32
    return %c0_i32, %c0_i32_0 : i32, i32
  }
  func.func @transform_6(%arg0: i32) -> (i32, i32) {
    %c0_i32 = arith.constant 0 : i32
    %c0_i32_0 = arith.constant 0 : i32
    %c0_i32_1 = arith.constant 0 : i32
    return %c0_i32, %c0_i32_0 : i32, i32
  }
  func.func @transform_7(%arg0: i32) -> (i32, i32) {
    %c0_i32 = arith.constant 0 : i32
    %c0_i32_0 = arith.constant 0 : i32
    %c0_i32_1 = arith.constant 0 : i32
    return %c0_i32, %c0_i32_0 : i32, i32
  }
  func.func @transform_8(%arg0: i32) -> (i32, i32) {
    %c0_i32 = arith.constant 0 : i32
    %c0_i32_0 = arith.constant 0 : i32
    %c0_i32_1 = arith.constant 0 : i32
    return %c0_i32, %c0_i32_0 : i32, i32
  }
  func.func @transform_9(%arg0: i32) -> (i32, i32) {
    %c0_i32 = arith.constant 0 : i32
    %c0_i32_0 = arith.constant 0 : i32
    %c0_i32_1 = arith.constant 0 : i32
    return %c0_i32, %c0_i32_0 : i32, i32
  }
  func.func @transform_10(%arg0: i32) -> (i32, i32, i32) {
    %c0_i32 = arith.constant 0 : i32
    %c0_i32_0 = arith.constant 0 : i32
    %c0_i32_1 = arith.constant 0 : i32
    return %arg0, %c0_i32, %c0_i32_0 : i32, i32, i32
  }
}

module attributes {stable_mosaic.version = 11 : i64} {
  func.func @_attn_pool_kernel(%arg0: i32, %arg1: memref<1x64x128xf32, #tpu.memory_space<vmem>>, %arg2: memref<128x256xf32, #tpu.memory_space<vmem>>, %arg3: memref<128x128xf32, #tpu.memory_space<vmem>>, %arg4: memref<128x128xf32, #tpu.memory_space<vmem>>, %arg5: memref<128x128xf32, #tpu.memory_space<vmem>>, %arg6: memref<128x128xf32, #tpu.memory_space<vmem>>, %arg7: memref<16x256xf32, #tpu.memory_space<vmem>>, %arg8: memref<1x256xf32, #tpu.memory_space<vmem>>, %arg9: memref<1x128xf32, #tpu.memory_space<vmem>>, %arg10: memref<1x128xf32, #tpu.memory_space<vmem>>, %arg11: memref<1x4x128xf32, #tpu.memory_space<vmem>>) attributes {dimension_semantics = [#tpu.dimension_semantics<parallel>], iteration_bounds = array<i64: 2>, scalar_prefetch = 0 : i64, scratch_operands = 0 : i64, tpu.core_type = #tpu.core_type<tc>, window_params = [{transform_indices = @transform_0, window_bounds = array<i64: 1, 64, 128>}, {pipeline_mode = #tpu.pipeline_mode<synchronous>, transform_indices = @transform_1, window_bounds = array<i64: 128, 256>}, {pipeline_mode = #tpu.pipeline_mode<synchronous>, transform_indices = @transform_2, window_bounds = array<i64: 128, 128>}, {pipeline_mode = #tpu.pipeline_mode<synchronous>, transform_indices = @transform_3, window_bounds = array<i64: 128, 128>}, {pipeline_mode = #tpu.pipeline_mode<synchronous>, transform_indices = @transform_4, window_bounds = array<i64: 128, 128>}, {pipeline_mode = #tpu.pipeline_mode<synchronous>, transform_indices = @transform_5, window_bounds = array<i64: 128, 128>}, {pipeline_mode = #tpu.pipeline_mode<synchronous>, transform_indices = @transform_6, window_bounds = array<i64: 16, 256>}, {pipeline_mode = #tpu.pipeline_mode<synchronous>, transform_indices = @transform_7, window_bounds = array<i64: 1, 256>}, {pipeline_mode = #tpu.pipeline_mode<synchronous>, transform_indices = @transform_8, window_bounds = array<i64: 1, 128>}, {pipeline_mode = #tpu.pipeline_mode<synchronous>, transform_indices = @transform_9, window_bounds = array<i64: 1, 128>}, {transform_indices = @transform_10, window_bounds = array<i64: 1, 4, 128>}]} {
    %c0 = arith.constant 0 : index
    %c0_0 = arith.constant 0 : index
    %c0_1 = arith.constant 0 : index
    %0 = vector.load %arg1[%c0, %c0_0, %c0_1] : memref<1x64x128xf32, #tpu.memory_space<vmem>>, vector<1x64x128xf32>
    %1 = vector.shape_cast %0 : vector<1x64x128xf32> to vector<64x128xf32>
    %c0_2 = arith.constant 0 : index
    %c0_3 = arith.constant 0 : index
    %2 = vector.load %arg5[%c0_2, %c0_3] : memref<128x128xf32, #tpu.memory_space<vmem>>, vector<128x128xf32>
    %c0_4 = arith.constant 0 : index
    %c0_5 = arith.constant 0 : index
    %3 = vector.load %arg6[%c0_4, %c0_5] : memref<128x128xf32, #tpu.memory_space<vmem>>, vector<128x128xf32>
    %c0_6 = arith.constant 0 : index
    %c0_7 = arith.constant 0 : index
    %4 = vector.load %arg2[%c0_6, %c0_7] : memref<128x256xf32, #tpu.memory_space<vmem>>, vector<128x256xf32>
    %cst = arith.constant dense<0.000000e+00> : vector<64x256xf32>
    %5 = tpu.matmul %1, %4, %cst {dimension_numbers = #tpu.dot_dimension_numbers<[1], [0], [0], [1], [0, 0, 1, 1], [], []>} : vector<64x128xf32>, vector<128x256xf32>, vector<64x256xf32> -> vector<64x256xf32>
    %6 = vector.extract_strided_slice %1 {offsets = [0, 0], sizes = [16, 128], strides = [1, 1]} : vector<64x128xf32> to vector<16x128xf32>
    %cst_8 = arith.constant dense<0.000000e+00> : vector<128xf32>
    %7 = vector.multi_reduction <add>, %6, %cst_8 [0] : vector<16x128xf32> to vector<128xf32>
    %8 = vector.shape_cast %7 : vector<128xf32> to vector<1x128xf32>
    %cst_9 = arith.constant 6.250000e-02 : f32
    %9 = vector.broadcast %cst_9 : f32 to vector<1x128xf32>
    %10 = arith.mulf %8, %9 : vector<1x128xf32>
    %11 = vector.extract_strided_slice %1 {offsets = [16, 0], sizes = [16, 128], strides = [1, 1]} : vector<64x128xf32> to vector<16x128xf32>
    %cst_10 = arith.constant dense<0.000000e+00> : vector<128xf32>
    %12 = vector.multi_reduction <add>, %11, %cst_10 [0] : vector<16x128xf32> to vector<128xf32>
    %13 = vector.shape_cast %12 : vector<128xf32> to vector<1x128xf32>
    %cst_11 = arith.constant 6.250000e-02 : f32
    %14 = vector.broadcast %cst_11 : f32 to vector<1x128xf32>
    %15 = arith.mulf %13, %14 : vector<1x128xf32>
    %16 = vector.extract_strided_slice %1 {offsets = [32, 0], sizes = [16, 128], strides = [1, 1]} : vector<64x128xf32> to vector<16x128xf32>
    %cst_12 = arith.constant dense<0.000000e+00> : vector<128xf32>
    %17 = vector.multi_reduction <add>, %16, %cst_12 [0] : vector<16x128xf32> to vector<128xf32>
    %18 = vector.shape_cast %17 : vector<128xf32> to vector<1x128xf32>
    %cst_13 = arith.constant 6.250000e-02 : f32
    %19 = vector.broadcast %cst_13 : f32 to vector<1x128xf32>
    %20 = arith.mulf %18, %19 : vector<1x128xf32>
    %21 = vector.extract_strided_slice %1 {offsets = [48, 0], sizes = [16, 128], strides = [1, 1]} : vector<64x128xf32> to vector<16x128xf32>
    %cst_14 = arith.constant dense<0.000000e+00> : vector<128xf32>
    %22 = vector.multi_reduction <add>, %21, %cst_14 [0] : vector<16x128xf32> to vector<128xf32>
    %23 = vector.shape_cast %22 : vector<128xf32> to vector<1x128xf32>
    %cst_15 = arith.constant 6.250000e-02 : f32
    %24 = vector.broadcast %cst_15 : f32 to vector<1x128xf32>
    %25 = arith.mulf %23, %24 : vector<1x128xf32>
    %26 = tpu.concatenate %10, %15, %20, %25 in 0 : vector<1x128xf32>, vector<1x128xf32>, vector<1x128xf32>, vector<1x128xf32> -> vector<4x128xf32>
    %c0_16 = arith.constant 0 : index
    %c0_17 = arith.constant 0 : index
    %27 = vector.load %arg2[%c0_16, %c0_17] : memref<128x256xf32, #tpu.memory_space<vmem>>, vector<128x256xf32>
    %cst_18 = arith.constant dense<0.000000e+00> : vector<4x256xf32>
    %28 = tpu.matmul %26, %27, %cst_18 {dimension_numbers = #tpu.dot_dimension_numbers<[1], [0], [0], [1], [0, 0, 1, 1], [], []>} : vector<4x128xf32>, vector<128x256xf32>, vector<4x256xf32> -> vector<4x256xf32>
    %c0_19 = arith.constant 0 : index
    %c0_20 = arith.constant 0 : index
    %29 = vector.load %arg8[%c0_19, %c0_20] : memref<1x256xf32, #tpu.memory_space<vmem>>, vector<1x256xf32>
    %30 = vector.broadcast %29 : vector<1x256xf32> to vector<4x256xf32>
    %31 = arith.addf %28, %30 : vector<4x256xf32>
    %c0_21 = arith.constant 0 : index
    %c0_22 = arith.constant 0 : index
    %32 = vector.load %arg3[%c0_21, %c0_22] : memref<128x128xf32, #tpu.memory_space<vmem>>, vector<128x128xf32>
    %cst_23 = arith.constant dense<0.000000e+00> : vector<4x128xf32>
    %33 = tpu.matmul %26, %32, %cst_23 {dimension_numbers = #tpu.dot_dimension_numbers<[1], [0], [0], [1], [0, 0, 1, 1], [], []>} : vector<4x128xf32>, vector<128x128xf32>, vector<4x128xf32> -> vector<4x128xf32>
    %c0_24 = arith.constant 0 : index
    %c0_25 = arith.constant 0 : index
    %34 = vector.load %arg9[%c0_24, %c0_25] : memref<1x128xf32, #tpu.memory_space<vmem>>, vector<1x128xf32>
    %35 = vector.broadcast %34 : vector<1x128xf32> to vector<4x128xf32>
    %36 = arith.addf %33, %35 : vector<4x128xf32>
    %c0_26 = arith.constant 0 : index
    %c0_27 = arith.constant 0 : index
    %37 = vector.load %arg7[%c0_26, %c0_27] : memref<16x256xf32, #tpu.memory_space<vmem>>, vector<16x256xf32>
    %38 = vector.extract_strided_slice %5 {offsets = [0, 0], sizes = [16, 256], strides = [1, 1]} : vector<64x256xf32> to vector<16x256xf32>
    %39 = arith.addf %38, %37 : vector<16x256xf32>
    %40 = vector.extract_strided_slice %39 {offsets = [0, 0], sizes = [16, 128], strides = [1, 1]} : vector<16x256xf32> to vector<16x128xf32>
    %41 = vector.extract_strided_slice %39 {offsets = [0, 128], sizes = [16, 128], strides = [1, 1]} : vector<16x256xf32> to vector<16x128xf32>
    %42 = vector.extract_strided_slice %31 {offsets = [0, 0], sizes = [1, 128], strides = [1, 1]} : vector<4x256xf32> to vector<1x128xf32>
    %43 = vector.extract_strided_slice %31 {offsets = [0, 128], sizes = [1, 128], strides = [1, 1]} : vector<4x256xf32> to vector<1x128xf32>
    %44 = vector.extract_strided_slice %36 {offsets = [0, 0], sizes = [1, 128], strides = [1, 1]} : vector<4x128xf32> to vector<1x128xf32>
    %45 = vector.broadcast %44 : vector<1x128xf32> to vector<16x128xf32>
    %46 = arith.mulf %45, %40 : vector<16x128xf32>
    %cst_28 = arith.constant dense<0.000000e+00> : vector<16x128xf32>
    %47 = tpu.matmul %46, %2, %cst_28 {dimension_numbers = #tpu.dot_dimension_numbers<[1], [0], [0], [1], [0, 0, 1, 1], [], []>} : vector<16x128xf32>, vector<128x128xf32>, vector<16x128xf32> -> vector<16x128xf32>
    %48 = arith.mulf %44, %42 : vector<1x128xf32>
    %cst_29 = arith.constant dense<0.000000e+00> : vector<1x128xf32>
    %49 = tpu.matmul %48, %2, %cst_29 {dimension_numbers = #tpu.dot_dimension_numbers<[1], [0], [0], [1], [0, 0, 1, 1], [], []>} : vector<1x128xf32>, vector<128x128xf32>, vector<1x128xf32> -> vector<1x128xf32>
    %cst_30 = arith.constant dense<0xFF800000> : vector<128xf32>
    %50 = vector.multi_reduction <maximumf>, %47, %cst_30 [0] : vector<16x128xf32> to vector<128xf32>
    %51 = vector.shape_cast %50 : vector<128xf32> to vector<1x128xf32>
    %52 = arith.maximumf %51, %49 : vector<1x128xf32>
    %53 = vector.broadcast %52 : vector<1x128xf32> to vector<16x128xf32>
    %54 = arith.subf %47, %53 : vector<16x128xf32>
    %55 = math.exp %54 : vector<16x128xf32>
    %56 = arith.subf %49, %52 : vector<1x128xf32>
    %57 = math.exp %56 : vector<1x128xf32>
    %cst_31 = arith.constant dense<0.000000e+00> : vector<128xf32>
    %58 = vector.multi_reduction <add>, %55, %cst_31 [0] : vector<16x128xf32> to vector<128xf32>
    %59 = vector.shape_cast %58 : vector<128xf32> to vector<1x128xf32>
    %60 = arith.addf %59, %57 : vector<1x128xf32>
    %61 = tpu.reciprocal %60 : vector<1x128xf32> -> vector<1x128xf32>
    %cst_32 = arith.constant dense<0.000000e+00> : vector<16x128xf32>
    %62 = tpu.matmul %55, %3, %cst_32 {dimension_numbers = #tpu.dot_dimension_numbers<[1], [0], [0], [1], [0, 0, 1, 1], [], []>} : vector<16x128xf32>, vector<128x128xf32>, vector<16x128xf32> -> vector<16x128xf32>
    %cst_33 = arith.constant dense<0.000000e+00> : vector<1x128xf32>
    %63 = tpu.matmul %57, %3, %cst_33 {dimension_numbers = #tpu.dot_dimension_numbers<[1], [0], [0], [1], [0, 0, 1, 1], [], []>} : vector<1x128xf32>, vector<128x128xf32>, vector<1x128xf32> -> vector<1x128xf32>
    %cst_34 = arith.constant dense<0.000000e+00> : vector<1x128xf32>
    %64 = tpu.matmul %61, %3, %cst_34 {dimension_numbers = #tpu.dot_dimension_numbers<[1], [0], [0], [1], [0, 0, 1, 1], [], []>} : vector<1x128xf32>, vector<128x128xf32>, vector<1x128xf32> -> vector<1x128xf32>
    %65 = arith.mulf %62, %41 : vector<16x128xf32>
    %cst_35 = arith.constant dense<0.000000e+00> : vector<128xf32>
    %66 = vector.multi_reduction <add>, %65, %cst_35 [0] : vector<16x128xf32> to vector<128xf32>
    %67 = vector.shape_cast %66 : vector<128xf32> to vector<1x128xf32>
    %68 = arith.mulf %63, %43 : vector<1x128xf32>
    %69 = arith.addf %67, %68 : vector<1x128xf32>
    %70 = arith.mulf %69, %64 : vector<1x128xf32>
    %71 = vector.extract_strided_slice %5 {offsets = [16, 0], sizes = [16, 256], strides = [1, 1]} : vector<64x256xf32> to vector<16x256xf32>
    %72 = arith.addf %71, %37 : vector<16x256xf32>
    %73 = vector.extract_strided_slice %72 {offsets = [0, 0], sizes = [16, 128], strides = [1, 1]} : vector<16x256xf32> to vector<16x128xf32>
    %74 = vector.extract_strided_slice %72 {offsets = [0, 128], sizes = [16, 128], strides = [1, 1]} : vector<16x256xf32> to vector<16x128xf32>
    %75 = vector.extract_strided_slice %31 {offsets = [1, 0], sizes = [1, 128], strides = [1, 1]} : vector<4x256xf32> to vector<1x128xf32>
    %76 = vector.extract_strided_slice %31 {offsets = [1, 128], sizes = [1, 128], strides = [1, 1]} : vector<4x256xf32> to vector<1x128xf32>
    %77 = vector.extract_strided_slice %36 {offsets = [1, 0], sizes = [1, 128], strides = [1, 1]} : vector<4x128xf32> to vector<1x128xf32>
    %78 = vector.broadcast %77 : vector<1x128xf32> to vector<16x128xf32>
    %79 = arith.mulf %78, %73 : vector<16x128xf32>
    %cst_36 = arith.constant dense<0.000000e+00> : vector<16x128xf32>
    %80 = tpu.matmul %79, %2, %cst_36 {dimension_numbers = #tpu.dot_dimension_numbers<[1], [0], [0], [1], [0, 0, 1, 1], [], []>} : vector<16x128xf32>, vector<128x128xf32>, vector<16x128xf32> -> vector<16x128xf32>
    %81 = arith.mulf %77, %75 : vector<1x128xf32>
    %cst_37 = arith.constant dense<0.000000e+00> : vector<1x128xf32>
    %82 = tpu.matmul %81, %2, %cst_37 {dimension_numbers = #tpu.dot_dimension_numbers<[1], [0], [0], [1], [0, 0, 1, 1], [], []>} : vector<1x128xf32>, vector<128x128xf32>, vector<1x128xf32> -> vector<1x128xf32>
    %cst_38 = arith.constant dense<0xFF800000> : vector<128xf32>
    %83 = vector.multi_reduction <maximumf>, %80, %cst_38 [0] : vector<16x128xf32> to vector<128xf32>
    %84 = vector.shape_cast %83 : vector<128xf32> to vector<1x128xf32>
    %85 = arith.maximumf %84, %82 : vector<1x128xf32>
    %86 = vector.broadcast %85 : vector<1x128xf32> to vector<16x128xf32>
    %87 = arith.subf %80, %86 : vector<16x128xf32>
    %88 = math.exp %87 : vector<16x128xf32>
    %89 = arith.subf %82, %85 : vector<1x128xf32>
    %90 = math.exp %89 : vector<1x128xf32>
    %cst_39 = arith.constant dense<0.000000e+00> : vector<128xf32>
    %91 = vector.multi_reduction <add>, %88, %cst_39 [0] : vector<16x128xf32> to vector<128xf32>
    %92 = vector.shape_cast %91 : vector<128xf32> to vector<1x128xf32>
    %93 = arith.addf %92, %90 : vector<1x128xf32>
    %94 = tpu.reciprocal %93 : vector<1x128xf32> -> vector<1x128xf32>
    %cst_40 = arith.constant dense<0.000000e+00> : vector<16x128xf32>
    %95 = tpu.matmul %88, %3, %cst_40 {dimension_numbers = #tpu.dot_dimension_numbers<[1], [0], [0], [1], [0, 0, 1, 1], [], []>} : vector<16x128xf32>, vector<128x128xf32>, vector<16x128xf32> -> vector<16x128xf32>
    %cst_41 = arith.constant dense<0.000000e+00> : vector<1x128xf32>
    %96 = tpu.matmul %90, %3, %cst_41 {dimension_numbers = #tpu.dot_dimension_numbers<[1], [0], [0], [1], [0, 0, 1, 1], [], []>} : vector<1x128xf32>, vector<128x128xf32>, vector<1x128xf32> -> vector<1x128xf32>
    %cst_42 = arith.constant dense<0.000000e+00> : vector<1x128xf32>
    %97 = tpu.matmul %94, %3, %cst_42 {dimension_numbers = #tpu.dot_dimension_numbers<[1], [0], [0], [1], [0, 0, 1, 1], [], []>} : vector<1x128xf32>, vector<128x128xf32>, vector<1x128xf32> -> vector<1x128xf32>
    %98 = arith.mulf %95, %74 : vector<16x128xf32>
    %cst_43 = arith.constant dense<0.000000e+00> : vector<128xf32>
    %99 = vector.multi_reduction <add>, %98, %cst_43 [0] : vector<16x128xf32> to vector<128xf32>
    %100 = vector.shape_cast %99 : vector<128xf32> to vector<1x128xf32>
    %101 = arith.mulf %96, %76 : vector<1x128xf32>
    %102 = arith.addf %100, %101 : vector<1x128xf32>
    %103 = arith.mulf %102, %97 : vector<1x128xf32>
    %104 = vector.extract_strided_slice %5 {offsets = [32, 0], sizes = [16, 256], strides = [1, 1]} : vector<64x256xf32> to vector<16x256xf32>
    %105 = arith.addf %104, %37 : vector<16x256xf32>
    %106 = vector.extract_strided_slice %105 {offsets = [0, 0], sizes = [16, 128], strides = [1, 1]} : vector<16x256xf32> to vector<16x128xf32>
    %107 = vector.extract_strided_slice %105 {offsets = [0, 128], sizes = [16, 128], strides = [1, 1]} : vector<16x256xf32> to vector<16x128xf32>
    %108 = vector.extract_strided_slice %31 {offsets = [2, 0], sizes = [1, 128], strides = [1, 1]} : vector<4x256xf32> to vector<1x128xf32>
    %109 = vector.extract_strided_slice %31 {offsets = [2, 128], sizes = [1, 128], strides = [1, 1]} : vector<4x256xf32> to vector<1x128xf32>
    %110 = vector.extract_strided_slice %36 {offsets = [2, 0], sizes = [1, 128], strides = [1, 1]} : vector<4x128xf32> to vector<1x128xf32>
    %111 = vector.broadcast %110 : vector<1x128xf32> to vector<16x128xf32>
    %112 = arith.mulf %111, %106 : vector<16x128xf32>
    %cst_44 = arith.constant dense<0.000000e+00> : vector<16x128xf32>
    %113 = tpu.matmul %112, %2, %cst_44 {dimension_numbers = #tpu.dot_dimension_numbers<[1], [0], [0], [1], [0, 0, 1, 1], [], []>} : vector<16x128xf32>, vector<128x128xf32>, vector<16x128xf32> -> vector<16x128xf32>
    %114 = arith.mulf %110, %108 : vector<1x128xf32>
    %cst_45 = arith.constant dense<0.000000e+00> : vector<1x128xf32>
    %115 = tpu.matmul %114, %2, %cst_45 {dimension_numbers = #tpu.dot_dimension_numbers<[1], [0], [0], [1], [0, 0, 1, 1], [], []>} : vector<1x128xf32>, vector<128x128xf32>, vector<1x128xf32> -> vector<1x128xf32>
    %cst_46 = arith.constant dense<0xFF800000> : vector<128xf32>
    %116 = vector.multi_reduction <maximumf>, %113, %cst_46 [0] : vector<16x128xf32> to vector<128xf32>
    %117 = vector.shape_cast %116 : vector<128xf32> to vector<1x128xf32>
    %118 = arith.maximumf %117, %115 : vector<1x128xf32>
    %119 = vector.broadcast %118 : vector<1x128xf32> to vector<16x128xf32>
    %120 = arith.subf %113, %119 : vector<16x128xf32>
    %121 = math.exp %120 : vector<16x128xf32>
    %122 = arith.subf %115, %118 : vector<1x128xf32>
    %123 = math.exp %122 : vector<1x128xf32>
    %cst_47 = arith.constant dense<0.000000e+00> : vector<128xf32>
    %124 = vector.multi_reduction <add>, %121, %cst_47 [0] : vector<16x128xf32> to vector<128xf32>
    %125 = vector.shape_cast %124 : vector<128xf32> to vector<1x128xf32>
    %126 = arith.addf %125, %123 : vector<1x128xf32>
    %127 = tpu.reciprocal %126 : vector<1x128xf32> -> vector<1x128xf32>
    %cst_48 = arith.constant dense<0.000000e+00> : vector<16x128xf32>
    %128 = tpu.matmul %121, %3, %cst_48 {dimension_numbers = #tpu.dot_dimension_numbers<[1], [0], [0], [1], [0, 0, 1, 1], [], []>} : vector<16x128xf32>, vector<128x128xf32>, vector<16x128xf32> -> vector<16x128xf32>
    %cst_49 = arith.constant dense<0.000000e+00> : vector<1x128xf32>
    %129 = tpu.matmul %123, %3, %cst_49 {dimension_numbers = #tpu.dot_dimension_numbers<[1], [0], [0], [1], [0, 0, 1, 1], [], []>} : vector<1x128xf32>, vector<128x128xf32>, vector<1x128xf32> -> vector<1x128xf32>
    %cst_50 = arith.constant dense<0.000000e+00> : vector<1x128xf32>
    %130 = tpu.matmul %127, %3, %cst_50 {dimension_numbers = #tpu.dot_dimension_numbers<[1], [0], [0], [1], [0, 0, 1, 1], [], []>} : vector<1x128xf32>, vector<128x128xf32>, vector<1x128xf32> -> vector<1x128xf32>
    %131 = arith.mulf %128, %107 : vector<16x128xf32>
    %cst_51 = arith.constant dense<0.000000e+00> : vector<128xf32>
    %132 = vector.multi_reduction <add>, %131, %cst_51 [0] : vector<16x128xf32> to vector<128xf32>
    %133 = vector.shape_cast %132 : vector<128xf32> to vector<1x128xf32>
    %134 = arith.mulf %129, %109 : vector<1x128xf32>
    %135 = arith.addf %133, %134 : vector<1x128xf32>
    %136 = arith.mulf %135, %130 : vector<1x128xf32>
    %137 = vector.extract_strided_slice %5 {offsets = [48, 0], sizes = [16, 256], strides = [1, 1]} : vector<64x256xf32> to vector<16x256xf32>
    %138 = arith.addf %137, %37 : vector<16x256xf32>
    %139 = vector.extract_strided_slice %138 {offsets = [0, 0], sizes = [16, 128], strides = [1, 1]} : vector<16x256xf32> to vector<16x128xf32>
    %140 = vector.extract_strided_slice %138 {offsets = [0, 128], sizes = [16, 128], strides = [1, 1]} : vector<16x256xf32> to vector<16x128xf32>
    %141 = vector.extract_strided_slice %31 {offsets = [3, 0], sizes = [1, 128], strides = [1, 1]} : vector<4x256xf32> to vector<1x128xf32>
    %142 = vector.extract_strided_slice %31 {offsets = [3, 128], sizes = [1, 128], strides = [1, 1]} : vector<4x256xf32> to vector<1x128xf32>
    %143 = vector.extract_strided_slice %36 {offsets = [3, 0], sizes = [1, 128], strides = [1, 1]} : vector<4x128xf32> to vector<1x128xf32>
    %144 = vector.broadcast %143 : vector<1x128xf32> to vector<16x128xf32>
    %145 = arith.mulf %144, %139 : vector<16x128xf32>
    %cst_52 = arith.constant dense<0.000000e+00> : vector<16x128xf32>
    %146 = tpu.matmul %145, %2, %cst_52 {dimension_numbers = #tpu.dot_dimension_numbers<[1], [0], [0], [1], [0, 0, 1, 1], [], []>} : vector<16x128xf32>, vector<128x128xf32>, vector<16x128xf32> -> vector<16x128xf32>
    %147 = arith.mulf %143, %141 : vector<1x128xf32>
    %cst_53 = arith.constant dense<0.000000e+00> : vector<1x128xf32>
    %148 = tpu.matmul %147, %2, %cst_53 {dimension_numbers = #tpu.dot_dimension_numbers<[1], [0], [0], [1], [0, 0, 1, 1], [], []>} : vector<1x128xf32>, vector<128x128xf32>, vector<1x128xf32> -> vector<1x128xf32>
    %cst_54 = arith.constant dense<0xFF800000> : vector<128xf32>
    %149 = vector.multi_reduction <maximumf>, %146, %cst_54 [0] : vector<16x128xf32> to vector<128xf32>
    %150 = vector.shape_cast %149 : vector<128xf32> to vector<1x128xf32>
    %151 = arith.maximumf %150, %148 : vector<1x128xf32>
    %152 = vector.broadcast %151 : vector<1x128xf32> to vector<16x128xf32>
    %153 = arith.subf %146, %152 : vector<16x128xf32>
    %154 = math.exp %153 : vector<16x128xf32>
    %155 = arith.subf %148, %151 : vector<1x128xf32>
    %156 = math.exp %155 : vector<1x128xf32>
    %cst_55 = arith.constant dense<0.000000e+00> : vector<128xf32>
    %157 = vector.multi_reduction <add>, %154, %cst_55 [0] : vector<16x128xf32> to vector<128xf32>
    %158 = vector.shape_cast %157 : vector<128xf32> to vector<1x128xf32>
    %159 = arith.addf %158, %156 : vector<1x128xf32>
    %160 = tpu.reciprocal %159 : vector<1x128xf32> -> vector<1x128xf32>
    %cst_56 = arith.constant dense<0.000000e+00> : vector<16x128xf32>
    %161 = tpu.matmul %154, %3, %cst_56 {dimension_numbers = #tpu.dot_dimension_numbers<[1], [0], [0], [1], [0, 0, 1, 1], [], []>} : vector<16x128xf32>, vector<128x128xf32>, vector<16x128xf32> -> vector<16x128xf32>
    %cst_57 = arith.constant dense<0.000000e+00> : vector<1x128xf32>
    %162 = tpu.matmul %156, %3, %cst_57 {dimension_numbers = #tpu.dot_dimension_numbers<[1], [0], [0], [1], [0, 0, 1, 1], [], []>} : vector<1x128xf32>, vector<128x128xf32>, vector<1x128xf32> -> vector<1x128xf32>
    %cst_58 = arith.constant dense<0.000000e+00> : vector<1x128xf32>
    %163 = tpu.matmul %160, %3, %cst_58 {dimension_numbers = #tpu.dot_dimension_numbers<[1], [0], [0], [1], [0, 0, 1, 1], [], []>} : vector<1x128xf32>, vector<128x128xf32>, vector<1x128xf32> -> vector<1x128xf32>
    %164 = arith.mulf %161, %140 : vector<16x128xf32>
    %cst_59 = arith.constant dense<0.000000e+00> : vector<128xf32>
    %165 = vector.multi_reduction <add>, %164, %cst_59 [0] : vector<16x128xf32> to vector<128xf32>
    %166 = vector.shape_cast %165 : vector<128xf32> to vector<1x128xf32>
    %167 = arith.mulf %162, %142 : vector<1x128xf32>
    %168 = arith.addf %166, %167 : vector<1x128xf32>
    %169 = arith.mulf %168, %163 : vector<1x128xf32>
    %170 = tpu.concatenate %70, %103, %136, %169 in 0 : vector<1x128xf32>, vector<1x128xf32>, vector<1x128xf32>, vector<1x128xf32> -> vector<4x128xf32>
    %c0_60 = arith.constant 0 : index
    %c0_61 = arith.constant 0 : index
    %171 = vector.load %arg4[%c0_60, %c0_61] : memref<128x128xf32, #tpu.memory_space<vmem>>, vector<128x128xf32>
    %cst_62 = arith.constant dense<0.000000e+00> : vector<4x128xf32>
    %172 = tpu.matmul %170, %171, %cst_62 {dimension_numbers = #tpu.dot_dimension_numbers<[1], [0], [0], [1], [0, 0, 1, 1], [], []>} : vector<4x128xf32>, vector<128x128xf32>, vector<4x128xf32> -> vector<4x128xf32>
    %c0_63 = arith.constant 0 : index
    %c0_64 = arith.constant 0 : index
    %173 = vector.load %arg10[%c0_63, %c0_64] : memref<1x128xf32, #tpu.memory_space<vmem>>, vector<1x128xf32>
    %174 = vector.broadcast %173 : vector<1x128xf32> to vector<4x128xf32>
    %175 = arith.addf %172, %174 : vector<4x128xf32>
    %c0_65 = arith.constant 0 : index
    %c0_66 = arith.constant 0 : index
    %c0_67 = arith.constant 0 : index
    %176 = vector.load %arg11[%c0_65, %c0_66, %c0_67] : memref<1x4x128xf32, #tpu.memory_space<vmem>>, vector<1x4x128xf32>
    %177 = vector.shape_cast %176 : vector<1x4x128xf32> to vector<4x128xf32>
    %178 = vector.shape_cast %175 : vector<4x128xf32> to vector<1x4x128xf32>
    tpu.vector_store %arg11[%c0_65, %c0_66, %c0_67], %178 {strides = array<i32>} : memref<1x4x128xf32, #tpu.memory_space<vmem>>, vector<1x4x128xf32>,
    return
  }
  func.func @transform_0(%arg0: i32) -> (i32, i32, i32) {
    %c0_i32 = arith.constant 0 : i32
    %c0_i32_0 = arith.constant 0 : i32
    %c0_i32_1 = arith.constant 0 : i32
    return %arg0, %c0_i32, %c0_i32_0 : i32, i32, i32
  }
  func.func @transform_1(%arg0: i32) -> (i32, i32) {
    %c0_i32 = arith.constant 0 : i32
    %c0_i32_0 = arith.constant 0 : i32
    %c0_i32_1 = arith.constant 0 : i32
    return %c0_i32, %c0_i32_0 : i32, i32
  }
  func.func @transform_2(%arg0: i32) -> (i32, i32) {
    %c0_i32 = arith.constant 0 : i32
    %c0_i32_0 = arith.constant 0 : i32
    %c0_i32_1 = arith.constant 0 : i32
    return %c0_i32, %c0_i32_0 : i32, i32
  }
  func.func @transform_3(%arg0: i32) -> (i32, i32) {
    %c0_i32 = arith.constant 0 : i32
    %c0_i32_0 = arith.constant 0 : i32
    %c0_i32_1 = arith.constant 0 : i32
    return %c0_i32, %c0_i32_0 : i32, i32
  }
  func.func @transform_4(%arg0: i32) -> (i32, i32) {
    %c0_i32 = arith.constant 0 : i32
    %c0_i32_0 = arith.constant 0 : i32
    %c0_i32_1 = arith.constant 0 : i32
    return %c0_i32, %c0_i32_0 : i32, i32
  }
  func.func @transform_5(%arg0: i32) -> (i32, i32) {
    %c0_i32 = arith.constant 0 : i32
    %c0_i32_0 = arith.constant 0 : i32
    %c0_i32_1 = arith.constant 0 : i32
    return %c0_i32, %c0_i32_0 : i32, i32
  }
  func.func @transform_6(%arg0: i32) -> (i32, i32) {
    %c0_i32 = arith.constant 0 : i32
    %c0_i32_0 = arith.constant 0 : i32
    %c0_i32_1 = arith.constant 0 : i32
    return %c0_i32, %c0_i32_0 : i32, i32
  }
  func.func @transform_7(%arg0: i32) -> (i32, i32) {
    %c0_i32 = arith.constant 0 : i32
    %c0_i32_0 = arith.constant 0 : i32
    %c0_i32_1 = arith.constant 0 : i32
    return %c0_i32, %c0_i32_0 : i32, i32
  }
  func.func @transform_8(%arg0: i32) -> (i32, i32) {
    %c0_i32 = arith.constant 0 : i32
    %c0_i32_0 = arith.constant 0 : i32
    %c0_i32_1 = arith.constant 0 : i32
    return %c0_i32, %c0_i32_0 : i32, i32
  }
  func.func @transform_9(%arg0: i32) -> (i32, i32) {
    %c0_i32 = arith.constant 0 : i32
    %c0_i32_0 = arith.constant 0 : i32
    %c0_i32_1 = arith.constant 0 : i32
    return %c0_i32, %c0_i32_0 : i32, i32
  }
  func.func @transform_10(%arg0: i32) -> (i32, i32, i32) {
    %c0_i32 = arith.constant 0 : i32
    %c0_i32_0 = arith.constant 0 : i32
    %c0_i32_1 = arith.constant 0 : i32
    return %arg0, %c0_i32, %c0_i32_0 : i32, i32, i32
  }
}

</mosaic_0001>

<bundles_post_ra>
// kernel: _attention_pool2d_impl.1
= control target key start
LH: loop header
LB: loop body
LE: loop exit
PB: predicated region body
PF: predicated region fallthrough
CT: control target
= control target key end

     0   :  { %15 = vsyncpa [#allocation3], 0  ;;  %s5567_s0 = inlined_call_operand.vmem [shape: f32[2,64,128], index: 0, kind: input, shape index: {}]   ;;  %s5568_s1 = inlined_call_operand.vmem [shape: f32[128,256], index: 1, kind: input, shape index: {}]   ;;  %s5569_s2 = inlined_call_operand.vmem [shape: f32[128,128], index: 2, kind: input, shape index: {}]   ;;  %s5570_s3 = inlined_call_operand.vmem [shape: f32[128,128], index: 3, kind: input, shape index: {}]   ;;  %s5571_s4 = inlined_call_operand.vmem [shape: f32[128,128], index: 4, kind: input, shape index: {}]   ;;  %s5572_s5 = inlined_call_operand.vmem [shape: f32[128,128], index: 5, kind: input, shape index: {}]   ;;  %s5573_s6 = inlined_call_operand.vmem [shape: f32[16,256], index: 6, kind: input, shape index: {}]   ;;  %s5574_s7 = inlined_call_operand.vmem [shape: f32[1,256], index: 7, kind: input, shape index: {}]   ;;  %s5575_s8 = inlined_call_operand.vmem [shape: f32[1,128], index: 8, kind: input, shape index: {}]   ;;  %s5576_s9 = inlined_call_operand.vmem [shape: f32[1,128], index: 9, kind: input, shape index: {}]   ;;  %s5577_s10 = inlined_call_operand.hbm [shape: f32[2,4,128], index: 10, kind: output, shape index: {}]  }
   0x1   :  { %17 = vsyncpa [#allocation3 + $0x1], 0  ;;  %s4622_s13 = smov 0   ;;  %s4624_s14 = smov 0  }
   0x2   :  { %s4626_s15 = smov 0   ;;  %s4628_s16 = smov 0  }
   0x3 LB: > { %s4643_s17 = sadd.s32 4294967295, %s4561_s16   ;;  %s2603_s18 = sadd.s32 4294967294, %s4561_s16   ;;  %s4561_s16 = sphi %s4628_s16, %s5585_s16   ;;  %s4557_s15 = sphi %s4626_s15, %s5584_s15   ;;  %s4553_s14 = sphi %s4624_s14, %s5583_s14   ;;  %s4549_s13 = sphi %s4622_s13, %s5582_s13  }
   0x4   : > { %s4647_s19 = sadd.s32 1, %s4561_s16   ;;  %s245_s20 = sadd.s32 1, %s4557_s15 }
   0x5   : > { %s242_s21 = ssub.s32 %s4561_s16, %s4647_s19  ;;  %p255_p0 = scmp.ne.s32.totalorder %s4557_s15, %s4553_s14 }
   0x6   : > { %p243_p1 = scmp.eq.s32.totalorder %s242_s21, 0  ;;  %p256_p2 = scmp.eq.s32.totalorder %s4643_s17, 1 }
   0x7   : > { %p261_p3 = scmp.ne.s32.totalorder %s4553_s14, %s4549_s13  ;;  %p262_p4 = scmp.eq.s32.totalorder %s2603_s18, 1 }
   0x8   : > { %s4658_s22 = scalar_select %p243_p1, %s4557_s15, %s245_s20  }
   0x9   : > { %p4660_p5 = por %p256_p2, %p255_p0  ;;  %p4664_p6 = por %p262_p4, %p261_p3 }
   0xa   : > { %5578 = sst [smem:[#allocation5_spill]] %s4658_s22  ;;  %p2606_p7 = scmp.ge.s32.totalorder %s4561_s16, 1 }
   0xb   : > { %p315_p8 = scmp.lt.s32.totalorder %s4561_s16, 3 }
   0xd   : > { %p316_p9 = pnand %p2606_p7, %p315_p8 }
   0xe   : > { %v399_v0 = vld [vmem:[%s5568_s1 + $0x8] sm:$0xff] (!%p316_p9)  ;;  %v401_v1 = vld [vmem:[%s5568_s1 + $0x18] sm:$0xff] (!%p316_p9)  ;;  %v398_v2 = vld [vmem:[%s5568_s1] sm:$0xff] (!%p316_p9)  ;;  %p353_p10 = scmp.lt.s32.totalorder (!%p316_p9), %s4643_s17, 1  ;;  %v4563_v7 = vmov (!%p316_p9), 0.0   ;;  %vm575_vm0 = vcmask (!%p316_p9), 1040384  }
   0xf   : > { %319 = sbr.rel (%p316_p9) target bundleno = 1912 (0x778), region = 60  ;;  %v3769_v3 = vpack.c.bf16 (!%p316_p9), %v401_v1, %v399_v0  ;;  %v400_v4 = vld [vmem:[%s5568_s1 + $0x10] sm:$0xff] (!%p316_p9)  ;;  %v403_v5 = vld [vmem:[%s5568_s1 + $0x28] sm:$0xff] (!%p316_p9)  ;;  %v405_v6 = vld [vmem:[%s5568_s1 + $0x38] sm:$0xff] (!%p316_p9)  ;;  %494 = vmatprep.mubr.f32.mxu0 (!%p316_p9), %v4563_v7  ;;  %657 = vmatprep.mubr.f32.mxu1 (!%p316_p9), %v4563_v7  ;;  %vm577_vm1 = vcmask (!%p316_p9), 1041408   ;;  %vm579_vm2 = vcmask (!%p316_p9), 1042432  }
  0x10   : > { %v3771_v8 = vpack.c.bf16 (!%p316_p9), %v400_v4, %v398_v2  ;;  %v3773_v9 = vpack.c.bf16 (!%p316_p9), %v405_v6, %v403_v5  ;;  %v402_v10 = vld [vmem:[%s5568_s1 + $0x20] sm:$0xff] (!%p316_p9)  ;;  %v404_v11 = vld [vmem:[%s5568_s1 + $0x30] sm:$0xff] (!%p316_p9)  ;;  %v407_v12 = vld [vmem:[%s5568_s1 + $0x48] sm:$0xff] (!%p316_p9)  ;;  %vm4565_vm3 = vmmov (!%p316_p9), 0   ;;  %s350_s18 = sand.u32 (!%p316_p9), 1, %s4553_s14  }
  0x11   : > { %3770 = vmatprep.subr.bf16.mxu0 (!%p316_p9), %v3769_v3  ;;  %v409_v13 = vld [vmem:[%s5568_s1 + $0x58] sm:$0xff] (!%p316_p9)  ;;  %3802 = vmatprep.subr.bf16.mxu1 (!%p316_p9), %v3769_v3  ;;  %v3775_v14 = vpack.c.bf16 (!%p316_p9), %v404_v11, %v402_v10  ;;  %v406_v16 = vld [vmem:[%s5568_s1 + $0x40] sm:$0xff] (!%p316_p9)  ;;  %v408_v17 = vld [vmem:[%s5568_s1 + $0x50] sm:$0xff] (!%p316_p9)  ;;  %s2607_s20 = sshll.u32 (!%p316_p9), %s350_s18, 2  ;;  %s2531_s30 = scalar_lea.sflag (!%p316_p9), [#allocation3], %s350_s18 }
  0x12   : > { %3772 = vmatpush1.bf16.msra.mxu0 (!%p316_p9), %v3771_v8  ;;  %3804 = vmatpush1.bf16.msra.mxu1 (!%p316_p9), %v3771_v8  ;;  %v3777_v15 = vpack.c.bf16 (!%p316_p9), %v409_v13, %v407_v12  ;;  %v411_v18 = vld [vmem:[%s5568_s1 + $0x68] sm:$0xff] (!%p316_p9)  ;;  %v413_v19 = vld [vmem:[%s5568_s1 + $0x78] sm:$0xff] (!%p316_p9)  ;;  %v3779_v20 = vpack.c.bf16 (!%p316_p9), %v408_v17, %v406_v16  ;;  %v410_v22 = vld [vmem:[%s5568_s1 + $0x60] sm:$0xff] (!%p316_p9)  ;;  %s352_s26 = scalar_lea.vmem (!%p316_p9), [#allocation2], %s2607_s20 }
  0x13   : > { %3774 = vmatprep.subr.bf16.mxu0 (!%p316_p9), %v3773_v9  ;;  %3806 = vmatprep.subr.bf16.mxu1 (!%p316_p9), %v3773_v9  ;;  %v3781_v21 = vpack.c.bf16 (!%p316_p9), %v413_v19, %v411_v18  ;;  %v412_v23 = vld [vmem:[%s5568_s1 + $0x70] sm:$0xff] (!%p316_p9)  ;;  %v415_v24 = vld [vmem:[%s5568_s1 + $0x88] sm:$0xff] (!%p316_p9)  ;;  %v417_v25 = vld [vmem:[%s5568_s1 + $0x98] sm:$0xff] (!%p316_p9)  ;;  %s2544_s27 = sshll.u32 (!%p316_p9), %s352_s26, 4  ;;  %s5527_s27 = int_to_ptr.vmem [resolvable:$true] %s2544_s27 }
  0x14   : > { %v3783_v28 = vpack.c.bf16 (!%p316_p9), %v412_v23, %v410_v22  ;;  %v414_v29 = vld [vmem:[%s5568_s1 + $0x80] sm:$0xff] (!%p316_p9)  ;;  %v3785_v31 = vpack.c.bf16 (!%p316_p9), %v417_v25, %v415_v24  ;;  %v416_v32 = vld [vmem:[%s5568_s1 + $0x90] sm:$0xff] (!%p316_p9)  ;;  %v419_v35 = vld [vmem:[%s5568_s1 + $0xa8] sm:$0xff] (!%p316_p9)  ;;  %s4499_s11 = scalar_lea.vmem (!%p316_p9), %s5527_s27, 64 }
  0x15   : > { %v421_v36 = vld [vmem:[%s5568_s1 + $0xb8] sm:$0xff] (!%p316_p9)  ;;  %v3787_v41 = vpack.c.bf16 (!%p316_p9), %v416_v32, %v414_v29  ;;  %v418_v47 = vld [vmem:[%s5568_s1 + $0xa0] sm:$0xff] (!%p316_p9)  ;;  %v420_v48 = vld [vmem:[%s5568_s1 + $0xb0] sm:$0xff] (!%p316_p9)  ;;  %v4564_v32 = vmov (!%p316_p9), 0.0|0.0   ;;  %p4500_p11 = scmp.ne.s32.totalorder (!%p316_p9), %s5527_s27, %s4499_s11 }
  0x16   : > { %s354_s12 = scalar_select %p353_p10, %s4643_s17, 1  ;;  %3776 = vmatpush1.bf16.msra.mxu0 %v3775_v14  ;;  %3808 = vmatpush1.bf16.msra.mxu1 %v3775_v14  ;;  %v3789_v46 = vpack.c.bf16 %v421_v36, %v419_v35  ;;  %v423_v50 = vld [vmem:[%s5568_s1 + $0xc8] sm:$0xff]  ;;  %v425_v51 = vld [vmem:[%s5568_s1 + $0xd8] sm:$0xff]  ;;  %v3791_v56 = vpack.c.bf16 %v420_v48, %v418_v47  ;;  %v422_v61 = vld [vmem:[%s5568_s1 + $0xc0] sm:$0xff] }
  0x17   : > { %3778 = vmatprep.subr.bf16.mxu0 %v3777_v15  ;;  %3810 = vmatprep.subr.bf16.mxu1 %v3777_v15  ;;  %v3793_v60 = vpack.c.bf16 %v425_v51, %v423_v50  ;;  %v424_v62 = vld [vmem:[%s5568_s1 + $0xd0] sm:$0xff]  ;;  %v427_v0 = vld [vmem:[%s5568_s1 + $0xe8] sm:$0xff]  ;;  %v429_v1 = vld [vmem:[%s5568_s1 + $0xf8] sm:$0xff]  ;;  %p4501_p12 = pnand %p4500_p11, %p4660_p5 }
  0x18   : > { %s2616_s28 = sshll.u32 %s354_s12, 6  ;;  %v3795_v6 = vpack.c.bf16 %v424_v62, %v422_v61  ;;  %v3797_v11 = vpack.c.bf16 %v429_v1, %v427_v0  ;;  %v426_v12 = vld [vmem:[%s5568_s1 + $0xe0] sm:$0xff]  ;;  %v428_v13 = vld [vmem:[%s5568_s1 + $0xf0] sm:$0xff]  ;;  %v665_v23 = vld [vmem:[%s5569_s2 + $0x8] sm:$0xff] }
  0x19   : > { %s4719_s21 = scalar_lea.vmem %s5567_s0, %s2616_s28  ;;  %v3799_v19 = vpack.c.bf16 %v428_v13, %v426_v12  ;;  %v664_v22 = vld [vmem:[%s5569_s2] sm:$0xff]  ;;  %v666_v35 = vld [vmem:[%s5569_s2 + $0x10] sm:$0xff]  ;;  %v667_v36 = vld [vmem:[%s5569_s2 + $0x18] sm:$0xff]  ;;  %p4502_p13 = pneg %p4501_p12 }
  0x1a   : > { %v4734_v26 = vld [vmem:[%s4719_s21] sm:$0xff]  ;;  %v4737_v27 = vld [vmem:[%s4719_s21 + $0x8] sm:$0xff]  ;;  %3780 = vmatpush1.bf16.msra.mxu0 %v3779_v20  ;;  %3812 = vmatpush1.bf16.msra.mxu1 %v3779_v20  ;;  %v4748_v33 = vld [vmem:[%s4719_s21 + $0x10] sm:$0xff] }
  0x1b   : > { %v543_v30 = vadd.f32 %v4737_v27, %v4734_v26  ;;  %3782 = vmatprep.subr.bf16.mxu0 %v3781_v21  ;;  %v4751_v34 = vld [vmem:[%s4719_s21 + $0x18] sm:$0xff]  ;;  %3814 = vmatprep.subr.bf16.mxu1 %v3781_v21  ;;  %v4762_v39 = vld [vmem:[%s4719_s21 + $0x20] sm:$0xff]  ;;  %v4765_v40 = vld [vmem:[%s4719_s21 + $0x28] sm:$0xff] }
  0x1c   : > { %v551_v38 = vadd.f32 %v4751_v34, %v4748_v33  ;;  %v559_v44 = vadd.f32 %v4765_v40, %v4762_v39  ;;  %v4770_v45 = vld [vmem:[%s4719_s21 + $0x30] sm:$0xff]  ;;  %v4779_v49 = vld [vmem:[%s4719_s21 + $0x38] sm:$0xff]  ;;  %v672_v47 = vld [vmem:[%s5569_s2 + $0x40] sm:$0xff]  ;;  %s2613_s21 = sshll.u32 %s4643_s17, 6  ;;  %s4566_s17 = smov [#allocation2]  }
  0x1d   : > { %v544_v37 = vrot.slane %v543_v30, 4  ;;  %v567_v55 = vadd.f32 %v4779_v49, %v4770_v45  ;;  %v673_v48 = vld [vmem:[%s5569_s2 + $0x48] sm:$0xff]  ;;  %v674_v50 = vld [vmem:[%s5569_s2 + $0x50] sm:$0xff]  ;;  %v675_v51 = vld [vmem:[%s5569_s2 + $0x58] sm:$0xff]  ;;  %s5525_s28 = scalar_lea.hbm %s5577_s10, %s2613_s21  ;;  %s4503_s20 = sshll.u32 %s4566_s17, 4  ;;  %s4504_s20 = int_to_ptr.vmem [resolvable:$false] %s4503_s20 }
  0x1e   : > { %3784 = vmatpush1.bf16.msra.mxu0 %v3783_v28  ;;  %v552_v43 = vrot.slane %v551_v38, 4  ;;  %3816 = vmatpush1.bf16.msra.mxu1 %v3783_v28  ;;  %v560_v54 = vrot.slane %v559_v44, 4  ;;  %v371_v61 = vld [vmem:[%s5571_s4 + $0x28] sm:$0xff]  ;;  %v373_v0 = vld [vmem:[%s5571_s4 + $0x38] sm:$0xff]  ;;  %v380_v12 = vld [vmem:[%s5571_s4 + $0x70] sm:$0xff]  ;;  %s4505_s12 = scalar_lea.vmem %s4504_s20, 128  ;;  %p4506_p0 = scmp.lt.s32.totalorder %s5527_s27, %s4504_s20 }
  0x1f   : > { %v545_v42 = vadd.f32 %v544_v37, %v543_v30  ;;  %3786 = vmatprep.subr.bf16.mxu0 %v3785_v31  ;;  %3818 = vmatprep.subr.bf16.mxu1 %v3785_v31  ;;  %v568_v63 = vrot.slane %v567_v55, 4  ;;  %v3834_v30 = vpack.c.bf16 %v665_v23, %v664_v22  ;;  %v381_v13 = vld [vmem:[%s5571_s4 + $0x78] sm:$0xff]  ;;  %p4507_p1 = scmp.lt.s32.totalorder %s4505_s12, %s4499_s11 }
  0x20   : > { %v553_v53 = vadd.f32 %v552_v43, %v551_v38  ;;  %v561_v59 = vadd.f32 %v560_v54, %v559_v44  ;;  %v669_v43 = vld [vmem:[%s5569_s2 + $0x28] sm:$0xff]  ;;  %v670_v44 = vld [vmem:[%s5569_s2 + $0x30] sm:$0xff] }
  0x21   : > { %v546_v52 = vrot.slane %v545_v42, 2  ;;  %v569_v5 = vadd.f32 %v568_v63, %v567_v55  ;;  %v678_v54 = vld [vmem:[%s5569_s2 + $0x70] sm:$0xff]  ;;  %v679_v55 = vld [vmem:[%s5569_s2 + $0x78] sm:$0xff]  ;;  %p4508_p2 = por %p4507_p1, %p4506_p0 }
  0x22   : > { %3788 = vmatpush1.bf16.msra.mxu0 %v3787_v41  ;;  %v554_v58 = vrot.slane %v553_v53, 2  ;;  %3820 = vmatpush1.bf16.msra.mxu1 %v3787_v41  ;;  %v562_v4 = vrot.slane %v561_v59, 2  ;;  %v3837_v41 = vpack.c.bf16 %v667_v36, %v666_v35  ;;  %v372_v63 = vld [vmem:[%s5571_s4 + $0x30] sm:$0xff] }
  0x23   : > { %v547_v57 = vadd.f32 %v546_v52, %v545_v42  ;;  %3790 = vmatprep.subr.bf16.mxu0 %v3789_v46  ;;  %3822 = vmatprep.subr.bf16.mxu1 %v3789_v46  ;;  %v570_v14 = vrot.slane %v569_v5, 2  ;;  %v668_v42 = vld [vmem:[%s5569_s2 + $0x20] sm:$0xff]  ;;  %v671_v46 = vld [vmem:[%s5569_s2 + $0x38] sm:$0xff]  ;;  %v4928_v1 = vpack.c.bf16 %v373_v0, %v372_v63  ;;  %v759_v36 = vld [vmem:[%s5573_s6 + $0x10] sm:$0xff]  ;;  %p4509_p3 = pnand %p4508_p2, %p4502_p13 }
  0x24   : > { %v555_v3 = vadd.f32 %v554_v58, %v553_v53  ;;  %v563_v10 = vadd.f32 %v562_v4, %v561_v59  ;;  %v676_v52 = vld [vmem:[%s5569_s2 + $0x60] sm:$0xff]  ;;  %v677_v53 = vld [vmem:[%s5569_s2 + $0x68] sm:$0xff]  ;;  %v369_v58 = vld [vmem:[%s5571_s4 + $0x18] sm:$0xff] }
  0x25   : > { %v548_v2 = vrot.slane %v547_v57, 1  ;;  %v571_v18 = vadd.f32 %v570_v14, %v569_v5  ;;  %v376_v5 = vld [vmem:[%s5571_s4 + $0x50] sm:$0xff]  ;;  %v4976_v14 = vpack.c.bf16 %v381_v13, %v380_v12 }
  0x26   : > { %3792 = vmatpush1.bf16.msra.mxu0 %v3791_v56  ;;  %v556_v9 = vrot.slane %v555_v3, 1  ;;  %3824 = vmatpush1.bf16.msra.mxu1 %v3791_v56  ;;  %v564_v17 = vrot.slane %v563_v10, 1  ;;  %v367_v56 = vld [vmem:[%s5571_s4 + $0x8] sm:$0xff] }
  0x27   : > { %v549_v8 = vadd.f32 %v548_v2, %v547_v57  ;;  %3794 = vmatprep.subr.bf16.mxu0 %v3793_v60  ;;  %3826 = vmatprep.subr.bf16.mxu1 %v3793_v60  ;;  %v572_v24 = vrot.slane %v571_v18, 1  ;;  %v368_v57 = vld [vmem:[%s5571_s4 + $0x10] sm:$0xff]  ;;  %v370_v60 = vld [vmem:[%s5571_s4 + $0x20] sm:$0xff] }
  0x28   : > { %v557_v16 = vadd.f32 %v556_v9, %v555_v3  ;;  %v565_v21 = vadd.f32 %v564_v17, %v563_v10  ;;  %v4904_v59 = vpack.c.bf16 %v369_v58, %v368_v57  ;;  %v4916_v62 = vpack.c.bf16 %v371_v61, %v370_v60  ;;  %v374_v2 = vld [vmem:[%s5571_s4 + $0x40] sm:$0xff]  ;;  %v375_v3 = vld [vmem:[%s5571_s4 + $0x48] sm:$0xff] }
  0x29   : > { %v550_v15 = vmul.f32 0.0625, %v549_v8  ;;  %v573_v29 = vadd.f32 %v572_v24, %v571_v18  ;;  %v4940_v4 = vpack.c.bf16 %v375_v3, %v374_v2  ;;  %v378_v9 = vld [vmem:[%s5571_s4 + $0x60] sm:$0xff]  ;;  %v379_v10 = vld [vmem:[%s5571_s4 + $0x68] sm:$0xff] }
  0x2a   : > { %3796 = vmatpush1.bf16.msra.mxu0 %v3795_v6  ;;  %v558_v20 = vmul.f32 0.0625, %v557_v16  ;;  %3828 = vmatpush1.bf16.msra.mxu1 %v3795_v6  ;;  %v566_v25 = vmul.f32 0.0625, %v565_v21  ;;  %v377_v6 = vld [vmem:[%s5571_s4 + $0x58] sm:$0xff]  ;;  %v581_v18 = vld [vmem:[%s5574_s7] sm:$0x3] }
  0x2b   : > { %3798 = vmatprep.subr.bf16.mxu0 %v3797_v11  ;;  %3830 = vmatprep.subr.bf16.mxu1 %v3797_v11  ;;  %v574_v37 = vmul.f32 0.0625, %v573_v29  ;;  %v4952_v8 = vpack.c.bf16 %v377_v6, %v376_v5  ;;  %v4964_v11 = vpack.c.bf16 %v379_v10, %v378_v9  ;;  %v757_v29 = vld [vmem:[%s5573_s6] sm:$0xff] }
  0x2c   : > { %v576_v28 = vsel %vm575_vm0, %v550_v15, %v558_v20  ;;  %v583_v15 = vlaneseq }
  0x2d   : > { %v578_v31 = vsel %vm577_vm1, %v576_v28, %v566_v25 }
  0x2e   : > { %3800 = vmatpush1.bf16.msra.mxu0 %v3799_v19  ;;  %3832 = vmatpush1.bf16.msra.mxu1 %v3799_v19  ;;  %v580_v38 = vsel %vm579_vm2, %v578_v31, %v574_v37  ;;  %v584_v16 = vshrl.u32 %v583_v15, 7 }
  0x2f   : > { %3833 = vmatprep.subr.bf16.mxu0 %v4564_v32 }
  0x30   : > { %v589_v17 = vsub.s32 1, %v584_v16 }
  0x31   : > { %495 = vmatmul.mubr.f32.vlgmr.msra.gmra.mrb[0].mxu0 %v4734_v26  ;;  %658 = vmatmul.mubr.f32.vlgmr.msra.gmra.mrb[0].mxu1 %v580_v38  ;;  %v3840_v26 = vpack.c.bf16 %v669_v43, %v668_v42 }
  0x32   : > { %3835 = vmatpush3.bf16.msra.mxu0 %v3834_v30  ;;  %500 = vmatprep.mubr.f32.mxu0 %v4563_v7  ;;  %v590_v20 = vrot.slane %v581_v18, %v589_v17 }
  0x33   : > { %3836 = vmatprep.subr.bf16.mxu0 %v4564_v32 }
  0x35   : > { %501 = vmatmul.mubr.f32.gmra.mrb[2].mxu0 %v4737_v27  ;;  %v3843_v27 = vpack.c.bf16 %v671_v46, %v670_v44 }
  0x36   : > { %3838 = vmatpush3.bf16.msra.mxu0 %v3837_v41  ;;  %506 = vmatprep.mubr.f32.mxu0 %v4563_v7 }
  0x37   : > { %3839 = vmatprep.subr.bf16.mxu0 %v4564_v32 }
  0x39   : > { %507 = vmatmul.mubr.f32.gmra.mrb[4].mxu0 %v4748_v33  ;;  %v3846_v33 = vpack.c.bf16 %v673_v48, %v672_v47  ;;  %v5005_v47 = vsub.s32 0, %v584_v16 }
  0x3a   : > { %3841 = vmatpush3.bf16.msra.mxu0 %v3840_v26  ;;  %512 = vmatprep.mubr.f32.mxu0 %v4563_v7 }
  0x3b   : > { %3842 = vmatprep.subr.bf16.mxu0 %v4564_v32 }
  0x3d   : > { %513 = vmatmul.mubr.f32.gmra.mrb[6].mxu0 %v4751_v34  ;;  %v3849_v34 = vpack.c.bf16 %v675_v51, %v674_v50  ;;  %v586_v51 = vrot.slane %v581_v18, %v5005_v47  ;;  %v383_v18 = vld [vmem:[%s5572_s5 + $0x8] sm:$0xff] }
  0x3e   : > { %3844 = vmatpush3.bf16.msra.mxu0 %v3843_v27  ;;  %518 = vmatprep.mubr.f32.mxu0 %v4563_v7 }
  0x3f   : > { %3845 = vmatprep.subr.bf16.mxu0 %v4564_v32 }
  0x41   : > { %519 = vmatmul.mubr.f32.gmra.mrb[8].mxu0 %v4762_v39  ;;  %v3852_v39 = vpack.c.bf16 %v677_v53, %v676_v52 }
  0x42   : > { %3847 = vmatpush3.bf16.msra.mxu0 %v3846_v33  ;;  %524 = vmatprep.mubr.f32.mxu0 %v4563_v7 }
  0x43   : > { %3848 = vmatprep.subr.bf16.mxu0 %v4564_v32 }
  0x45   : > { %525 = vmatmul.mubr.f32.gmra.mrb[10].mxu0 %v4765_v40  ;;  %v3855_v40 = vpack.c.bf16 %v679_v55, %v678_v54  ;;  %v1598_v55 = vsub.s32 2, %v584_v16 }
  0x46   : > { %3850 = vmatpush3.bf16.msra.mxu0 %v3849_v34  ;;  %530 = vmatprep.mubr.f32.mxu0 %v4563_v7 }
  0x47   : > { %3851 = vmatprep.subr.bf16.mxu0 %v4564_v32 }
  0x49   : > { %531 = vmatmul.mubr.f32.gmra.mrb[12].mxu0 %v4770_v45  ;;  %v366_v45 = vld [vmem:[%s5571_s4] sm:$0xff] }
  0x4a   : > { %3853 = vmatpush3.bf16.msra.mxu0 %v3852_v39  ;;  %536 = vmatprep.mubr.f32.mxu0 %v4563_v7  ;;  %v2610_v39 = vld [vmem:[%s5575_s8] ss:$0 sm:$0xff] }
  0x4b   : > { %3854 = vmatprep.subr.bf16.mxu0 %v4564_v32 }
  0x4d   : > { %537 = vmatmul.mubr.f32.gmra.mrb[14].mxu0 %v4779_v49  ;;  %v4892_v49 = vpack.c.bf16 %v367_v56, %v366_v45  ;;  %v2014_v45 = vsub.s32 3, %v584_v16 }
  0x4e   : > { %3856 = vmatpush3.bf16.msra.mxu0 %v3855_v40  ;;  %3031 = vmatprep.mubr.msk.f32.mxu0 %vm4565_vm3, %v4563_v7 }
  0x4f   : > { %3889 = vmatprep.subr.bf16.mxu0 %v4564_v32  ;;  %3858 = vmatprep.subr.bf16.mxu1 %v4892_v49 }
  0x50   : > { %3860 = vmatpush3.bf16.msra.mxu1 %v4892_v49 }
  0x51   : > { %3032 = vmatmul.mubr.f32.vlgmr.msra.gmra.mrb[16].mxu0 %v580_v38  ;;  %3862 = vmatprep.subr.bf16.mxu1 %v4904_v59 }
  0x52   : > { %3101 = vmatprep.mubr.msk.f32.mxu0 %vm4565_vm3, %v4563_v7  ;;  %3891 = vmatpush3.bf16.msra.mxu0 %v4892_v49 }
  0x53   : > { %3892 = vmatprep.subr.bf16.mxu0 %v4564_v32 }
  0x54   : > { %3864 = vmatpush3.bf16.msra.mxu1 %v4904_v59 }
  0x55   : > { %3866 = vmatprep.subr.bf16.mxu1 %v4916_v62 }
  0x56   : > { %3894 = vmatpush3.bf16.msra.mxu0 %v4904_v59 }
  0x57   : > { %3895 = vmatprep.subr.bf16.mxu0 %v4564_v32 }
  0x58   : > { %3868 = vmatpush3.bf16.msra.mxu1 %v4916_v62 }
  0x59   : > { %3870 = vmatprep.subr.bf16.mxu1 %v4928_v1 }
  0x5a   : > { %3897 = vmatpush3.bf16.msra.mxu0 %v4916_v62 }
  0x5b   : > { %3898 = vmatprep.subr.bf16.mxu0 %v4564_v32 }
  0x5c   : > { %3872 = vmatpush3.bf16.msra.mxu1 %v4928_v1 }
  0x5d   : > { %3874 = vmatprep.subr.bf16.mxu1 %v4940_v4 }
  0x5e   : > { %3900 = vmatpush3.bf16.msra.mxu0 %v4928_v1 }
  0x5f   : > { %3901 = vmatprep.subr.bf16.mxu0 %v4564_v32 }
  0x60   : > { %3876 = vmatpush3.bf16.msra.mxu1 %v4940_v4 }
  0x61   : > { %3878 = vmatprep.subr.bf16.mxu1 %v4952_v8 }
  0x62   : > { %3903 = vmatpush3.bf16.msra.mxu0 %v4940_v4 }
  0x63   : > { %3904 = vmatprep.subr.bf16.mxu0 %v4564_v32 }
  0x64   : > { %3880 = vmatpush3.bf16.msra.mxu1 %v4952_v8 }
  0x65   : > { %3882 = vmatprep.subr.bf16.mxu1 %v4964_v11 }
  0x66   : > { %3906 = vmatpush3.bf16.msra.mxu0 %v4952_v8 }
  0x67   : > { %3907 = vmatprep.subr.bf16.mxu0 %v4564_v32 }
  0x68   : > { %3884 = vmatpush3.bf16.msra.mxu1 %v4964_v11 }
  0x69   : > { %3886 = vmatprep.subr.bf16.mxu1 %v4976_v14 }
  0x6a   : > { %3909 = vmatpush3.bf16.msra.mxu0 %v4964_v11 }
  0x6b   : > { %3910 = vmatprep.subr.bf16.mxu0 %v4564_v32 }
  0x6c   : > { %3888 = vmatpush3.bf16.msra.mxu1 %v4976_v14 }
  0x6e   : > { %3912 = vmatpush3.bf16.msra.mxu0 %v4976_v14 }
  0x6f   : > { %3945 = vmatprep.subr.bf16.mxu0 %v4564_v32 }
 0x104   : > { %v496_v19 = vpop.f32.mrb[0].mxu0  ;;  %v659_v22 = vpop.f32.mrb[0].mxu1 }
 0x105   : > { %v4985_v21 = vpop.f32.mrb[1].mxu0  ;;  %v661_v23 = vpop.f32.mrb[1].mxu1  ;;  %v660_v54 = vadd.f32 %v659_v22, %v586_v51  ;;  %v761_v58 = vadd.f32 %v757_v29, %v496_v19  ;;  %v385_v22 = vld [vmem:[%s5572_s5 + $0x18] sm:$0xff]  ;;  %v395_v51 = vld [vmem:[%s5572_s5 + $0x68] sm:$0xff] }
 0x106   : > { %v4987_v25 = vadd.f32 %v661_v23, %v590_v20  ;;  %v384_v20 = vld [vmem:[%s5572_s5 + $0x10] sm:$0xff] }
 0x107   : > { %v5051_v23 = vpack.c.bf16 %v385_v22, %v384_v20 }
 0x108   : > { %v502_v24 = vpop.f32.mrb[2].mxu0 }
 0x109   : > { %v4989_v28 = vpop.f32.mrb[3].mxu0  ;;  %v763_v60 = vadd.f32 %v759_v36, %v502_v24  ;;  %v386_v24 = vld [vmem:[%s5572_s5 + $0x20] sm:$0xff] }
 0x10c   : > { %v508_v30 = vpop.f32.mrb[4].mxu0 }
 0x10d   : > { %v1174_v31 = vadd.f32 %v757_v29, %v508_v30  ;;  %v4994_v35 = vpop.f32.mrb[5].mxu0 }
 0x110   : > { %v514_v37 = vpop.f32.mrb[6].mxu0 }
 0x111   : > { %v1176_v38 = vadd.f32 %v759_v36, %v514_v37  ;;  %v4999_v41 = vpop.f32.mrb[7].mxu0 }
 0x114   : > { %v520_v42 = vpop.f32.mrb[8].mxu0 }
 0x115   : > { %v1592_v43 = vadd.f32 %v757_v29, %v520_v42  ;;  %v5001_v26 = vpop.f32.mrb[9].mxu0  ;;  %v391_v42 = vld [vmem:[%s5572_s5 + $0x48] sm:$0xff] }
 0x118   : > { %v526_v44 = vpop.f32.mrb[10].mxu0 }
 0x119   : > { %v1594_v46 = vadd.f32 %v759_v36, %v526_v44  ;;  %v5003_v27 = vpop.f32.mrb[11].mxu0  ;;  %v392_v44 = vld [vmem:[%s5572_s5 + $0x50] sm:$0xff] }
 0x11c   : > { %v532_v48 = vpop.f32.mrb[12].mxu0 }
 0x11d   : > { %v2008_v33 = vadd.f32 %v757_v29, %v532_v48  ;;  %v5007_v50 = vpop.f32.mrb[13].mxu0  ;;  %v387_v29 = vld [vmem:[%s5572_s5 + $0x28] sm:$0xff] }
 0x11e   : > { %v5063_v30 = vpack.c.bf16 %v387_v29, %v386_v24 }
 0x120   : > { %v538_v34 = vpop.f32.mrb[14].mxu0 }
 0x121   : > { %v2010_v52 = vadd.f32 %v759_v36, %v538_v34  ;;  %v5010_v53 = vpop.f32.mrb[15].mxu0  ;;  %v389_v36 = vld [vmem:[%s5572_s5 + $0x38] sm:$0xff] }
 0x124   : > { %v753_v40 = vpop.f32.mrb[16].mxu0 }
 0x125   : > { %v754_v56 = vadd.f32 %v2610_v39, %v753_v40  ;;  %v3033_v57 = vpop.f32.mrb[17].mxu0  ;;  %v397_v39 = vld [vmem:[%s5572_s5 + $0x78] sm:$0xff] }
 0x127   : > { %v5015_v61 = vmul.f32 %v754_v56, %v660_v54  ;;  %v768_v63 = vrot.slane %v754_v56, %v5005_v47  ;;  %v1181_v0 = vrot.slane %v754_v56, %v589_v17  ;;  %v1599_v2 = vrot.slane %v754_v56, %v1598_v55  ;;  %v382_v17 = vld [vmem:[%s5572_s5] sm:$0xff] }
 0x128   : > { %v2015_v3 = vrot.slane %v754_v56, %v2014_v45  ;;  %v5039_v19 = vpack.c.bf16 %v383_v18, %v382_v17 }
 0x129   : > { %3102 = vmatmul.mubr.f32.vlgmr.msra.gmra.mrb[18].mxu0 %v5015_v61  ;;  %v769_v5 = vmul.f32 %v768_v63, %v761_v58  ;;  %v770_v6 = vmul.f32 %v768_v63, %v763_v60  ;;  %v5019_v9 = vmul.f32 %v1181_v0, %v1174_v31  ;;  %v5021_v10 = vmul.f32 %v1181_v0, %v1176_v38  ;;  %v388_v31 = vld [vmem:[%s5572_s5 + $0x30] sm:$0xff]  ;;  %v390_v38 = vld [vmem:[%s5572_s5 + $0x40] sm:$0xff] }
 0x12a   : > { %3171 = vmatprep.mubr.msk.f32.mxu0 %vm4565_vm3, %v4563_v7  ;;  %v5025_v12 = vmul.f32 %v1599_v2, %v1592_v43  ;;  %v5027_v13 = vmul.f32 %v1599_v2, %v1594_v46  ;;  %v5029_v15 = vmul.f32 %v2015_v3, %v2008_v33  ;;  %v5031_v16 = vmul.f32 %v2015_v3, %v2010_v52  ;;  %v393_v46 = vld [vmem:[%s5572_s5 + $0x58] sm:$0xff]  ;;  %v394_v33 = vld [vmem:[%s5572_s5 + $0x60] sm:$0xff]  ;;  %v396_v52 = vld [vmem:[%s5572_s5 + $0x70] sm:$0xff] }
 0x12b   : > { %3066 = vmatprep.mubr.f32.mxu1 %v769_v5  ;;  %3947 = vmatpush3.bf16.msra.mxu0 %v5039_v19  ;;  %v5075_v37 = vpack.c.bf16 %v389_v36, %v388_v31  ;;  %v5087_v43 = vpack.c.bf16 %v391_v42, %v390_v38  ;;  %v5099_v48 = vpack.c.bf16 %v393_v46, %v392_v44 }
 0x12c   : > { %3067 = vmatmul.mubr.f32.vlgmr.msra.gmra.mrb[2].mxu1 %v770_v6  ;;  %3914 = vmatprep.subr.bf16.mxu1 %v5039_v19  ;;  %v5111_v34 = vpack.c.bf16 %v395_v51, %v394_v33  ;;  %v5123_v54 = vpack.c.bf16 %v397_v39, %v396_v52 }
 0x12d   : > { %3916 = vmatpush3.bf16.msra.mxu1 %v5039_v19  ;;  %3948 = vmatprep.subr.bf16.mxu0 %v4564_v32 }
 0x12e   : > { %3918 = vmatprep.subr.bf16.mxu1 %v5051_v23 }
 0x12f   : > { %3950 = vmatpush3.bf16.msra.mxu0 %v5051_v23 }
 0x130   : > { %3951 = vmatprep.subr.bf16.mxu0 %v4564_v32 }
 0x131   : > { %3920 = vmatpush3.bf16.msra.mxu1 %v5051_v23 }
 0x132   : > { %3922 = vmatprep.subr.bf16.mxu1 %v5063_v30 }
 0x133   : > { %3953 = vmatpush3.bf16.msra.mxu0 %v5063_v30 }
 0x134   : > { %3954 = vmatprep.subr.bf16.mxu0 %v4564_v32 }
 0x135   : > { %3924 = vmatpush3.bf16.msra.mxu1 %v5063_v30 }
 0x136   : > { %3926 = vmatprep.subr.bf16.mxu1 %v5075_v37 }
 0x137   : > { %3956 = vmatpush3.bf16.msra.mxu0 %v5075_v37 }
 0x138   : > { %3957 = vmatprep.subr.bf16.mxu0 %v4564_v32 }
 0x139   : > { %3928 = vmatpush3.bf16.msra.mxu1 %v5075_v37 }
 0x13a   : > { %3930 = vmatprep.subr.bf16.mxu1 %v5087_v43 }
 0x13b   : > { %3959 = vmatpush3.bf16.msra.mxu0 %v5087_v43 }
 0x13c   : > { %3960 = vmatprep.subr.bf16.mxu0 %v4564_v32 }
 0x13d   : > { %3932 = vmatpush3.bf16.msra.mxu1 %v5087_v43 }
 0x13e   : > { %3934 = vmatprep.subr.bf16.mxu1 %v5099_v48 }
 0x13f   : > { %3962 = vmatpush3.bf16.msra.mxu0 %v5099_v48 }
 0x140   : > { %3963 = vmatprep.subr.bf16.mxu0 %v4564_v32 }
 0x141   : > { %3936 = vmatpush3.bf16.msra.mxu1 %v5099_v48 }
 0x142   : > { %3938 = vmatprep.subr.bf16.mxu1 %v5111_v34 }
 0x143   : > { %3965 = vmatpush3.bf16.msra.mxu0 %v5111_v34 }
 0x144   : > { %3966 = vmatprep.subr.bf16.mxu0 %v4564_v32 }
 0x145   : > { %3940 = vmatpush3.bf16.msra.mxu1 %v5111_v34 }
 0x146   : > { %3942 = vmatprep.subr.bf16.mxu1 %v5123_v54 }
 0x147   : > { %3968 = vmatpush3.bf16.msra.mxu0 %v5123_v54 }
 0x148   : > { %3994 = vmatprep.subr.bf16.mxu0 %v4892_v49 }
 0x149   : > { %3944 = vmatpush3.bf16.msra.mxu1 %v5123_v54 }
 0x14a   : > { %3969 = vmatprep.subr.bf16.mxu1 %v4564_v32 }
 0x1fc   : > { %v913_v55 = vpop.f32.mrb[18].mxu0 }
 0x1fd   : > { %v3103_v40 = vpop.f32.mrb[19].mxu0 }
 0x1fe   : > { %v5223_v40 = vld [vmem:[%s5573_s6 + $0x18] sm:$0xff] }
 0x1ff   : > { %v3068_v45 = vpop.f32.mrb[2].mxu1 }
 0x200   : > { %v837_v56 = vpop.f32.mrb[3].mxu1 }
 0x201   : > { %v917_v57 = vmax.f32 %v837_v56, %v3068_v45 }
 0x203   : > { %v918_v58 = vrot.slane %v917_v57, 4 }
 0x205   : > { %v919_v60 = vmax.f32 %v917_v57, %v918_v58 }
 0x207   : > { %v920_v63 = vrot.slane %v919_v60, 2 }
 0x209   : > { %v921_v0 = vmax.f32 %v919_v60, %v920_v63  ;;  %v764_v60 = vadd.f32 %v5223_v40, %v4989_v28 }
 0x20b   : > { %v922_v2 = vrot.slane %v921_v0, 1 }
 0x20d   : > { %v923_v3 = vmax.f32 %v921_v0, %v922_v2 }
 0x20f   : > { %v924_v5 = vmax.f32 %v923_v3, %v913_v55 }
 0x211   : > { %v928_v6 = vrot.slane %v924_v5, %v5005_v47  ;;  %v935_v17 = vsub.f32 %v913_v55, %v924_v5 }
 0x213   : > { %v929_v18 = vsub.f32 %v837_v56, %v928_v6  ;;  %v930_v20 = vsub.f32 %v3068_v45, %v928_v6  ;;  %v936_v22 = vmul.f32 1.442695, %v935_v17  ;;  %v5228_v45 = vld [vmem:[%s5573_s6 + $0x8] sm:$0xff] }
 0x214   : > { %v762_v63 = vadd.f32 %v5228_v45, %v4985_v21 }
 0x215   : > { %v931_v24 = vmul.f32 1.442695, %v929_v18  ;;  %v933_v29 = vmul.f32 1.442695, %v930_v20  ;;  %4467 = vpow2.f32 %v936_v22 }
 0x217   : > { %4469 = vpow2.f32 %v931_v24 }
 0x218   : > { %4471 = vpow2.f32 %v933_v29 }
 0x21f   : > { %v4468_v31 = vpop.eup %4467 }
 0x220   : > { %3172 = vmatmul.mubr.f32.vlgmr.msra.gmra.mrb[20].mxu0 %v4468_v31 }
 0x221   : > { %v4470_v36 = vpop.eup %4469  ;;  %3996 = vmatpush3.bf16.msra.mxu0 %v4892_v49  ;;  %3241 = vmatprep.mubr.f32.mxu0 %v5019_v9 }
 0x222   : > { %v4472_v38 = vpop.eup %4471  ;;  %3136 = vmatprep.mubr.f32.mxu1 %v4470_v36  ;;  %3998 = vmatprep.subr.bf16.mxu0 %v4904_v59 }
 0x223   : > { %v938_v42 = vadd.f32 %v4472_v38, %v4470_v36  ;;  %3137 = vmatmul.mubr.f32.vlgmr.msra.gmra.mrb[4].mxu1 %v4472_v38 }
 0x224   : > { %3971 = vmatpush3.bf16.msra.mxu1 %v5039_v19  ;;  %3206 = vmatprep.mubr.msk.f32.mxu1 %vm4565_vm3, %v4563_v7 }
 0x225   : > { %v939_v44 = vrot.slane %v938_v42, 4  ;;  %4000 = vmatpush3.bf16.msra.mxu0 %v4904_v59  ;;  %3972 = vmatprep.subr.bf16.mxu1 %v4564_v32 }
 0x226   : > { %4002 = vmatprep.subr.bf16.mxu0 %v4916_v62 }
 0x227   : > { %v940_v46 = vadd.f32 %v939_v44, %v938_v42 }
 0x228   : > { %3974 = vmatpush3.bf16.msra.mxu1 %v5051_v23 }
 0x229   : > { %v941_v9 = vrot.slane %v940_v46, 2  ;;  %4004 = vmatpush3.bf16.msra.mxu0 %v4916_v62  ;;  %3975 = vmatprep.subr.bf16.mxu1 %v4564_v32 }
 0x22a   : > { %4006 = vmatprep.subr.bf16.mxu0 %v4928_v1 }
 0x22b   : > { %v942_v33 = vadd.f32 %v941_v9, %v940_v46 }
 0x22c   : > { %3977 = vmatpush3.bf16.msra.mxu1 %v5063_v30 }
 0x22d   : > { %v943_v51 = vrot.slane %v942_v33, 1  ;;  %4008 = vmatpush3.bf16.msra.mxu0 %v4928_v1  ;;  %3978 = vmatprep.subr.bf16.mxu1 %v4564_v32 }
 0x22e   : > { %4010 = vmatprep.subr.bf16.mxu0 %v4940_v4 }
 0x22f   : > { %v944_v52 = vadd.f32 %v943_v51, %v942_v33 }
 0x230   : > { %3980 = vmatpush3.bf16.msra.mxu1 %v5075_v37 }
 0x231   : > { %v945_v39 = vadd.f32 %v4468_v31, %v944_v52  ;;  %4012 = vmatpush3.bf16.msra.mxu0 %v4940_v4  ;;  %3981 = vmatprep.subr.bf16.mxu1 %v4564_v32 }
 0x232   : > { %4014 = vmatprep.subr.bf16.mxu0 %v4952_v8 }
 0x233   : > { %4473 = vrcp.f32 %v945_v39 }
 0x234   : > { %3983 = vmatpush3.bf16.msra.mxu1 %v5087_v43 }
 0x235   : > { %4016 = vmatpush3.bf16.msra.mxu0 %v4952_v8  ;;  %3984 = vmatprep.subr.bf16.mxu1 %v4564_v32 }
 0x236   : > { %4018 = vmatprep.subr.bf16.mxu0 %v4964_v11 }
 0x238   : > { %3986 = vmatpush3.bf16.msra.mxu1 %v5099_v48 }
 0x239   : > { %4020 = vmatpush3.bf16.msra.mxu0 %v4964_v11  ;;  %3987 = vmatprep.subr.bf16.mxu1 %v4564_v32 }
 0x23a   : > { %4022 = vmatprep.subr.bf16.mxu0 %v4976_v14 }
 0x23c   : > { %3989 = vmatpush3.bf16.msra.mxu1 %v5111_v34 }
 0x23d   : > { %4024 = vmatpush3.bf16.msra.mxu0 %v4976_v14  ;;  %3990 = vmatprep.subr.bf16.mxu1 %v4564_v32  ;;  %v4474_v55 = vpop.eup %4473 }
 0x23e   : > { %4050 = vmatprep.subr.bf16.mxu0 %v5039_v19 }
 0x240   : > { %3992 = vmatpush3.bf16.msra.mxu1 %v5123_v54  ;;  %3242 = vmatmul.mubr.f32.vlgmr.msra.gmra.mrb[22].mxu0 %v5021_v10  ;;  %v1260_v10 = vrot.slane %v5015_v61, 1 }
 0x241   : > { %4025 = vmatprep.subr.bf16.mxu1 %v4564_v32  ;;  %4052 = vmatpush3.bf16.msra.mxu0 %v5039_v19 }
 0x242   : > { %4054 = vmatprep.subr.bf16.mxu0 %v5051_v23 }
 0x243   : > { %3207 = vmatmul.mubr.f32.vlgmr.msra.gmra.mrb[6].mxu1 %v4474_v55 }
 0x244   : > { %4027 = vmatpush3.bf16.msra.mxu1 %v4892_v49  ;;  %3276 = vmatprep.mubr.msk.f32.mxu1 %vm4565_vm3, %v4563_v7 }
 0x245   : > { %4028 = vmatprep.subr.bf16.mxu1 %v4564_v32  ;;  %4056 = vmatpush3.bf16.msra.mxu0 %v5051_v23 }
 0x246   : > { %4058 = vmatprep.subr.bf16.mxu0 %v5063_v30 }
 0x248   : > { %4030 = vmatpush3.bf16.msra.mxu1 %v4904_v59 }
 0x249   : > { %4031 = vmatprep.subr.bf16.mxu1 %v4564_v32  ;;  %4060 = vmatpush3.bf16.msra.mxu0 %v5063_v30 }
 0x24a   : > { %4062 = vmatprep.subr.bf16.mxu0 %v5075_v37 }
 0x24c   : > { %4033 = vmatpush3.bf16.msra.mxu1 %v4916_v62 }
 0x24d   : > { %4034 = vmatprep.subr.bf16.mxu1 %v4564_v32  ;;  %4064 = vmatpush3.bf16.msra.mxu0 %v5075_v37 }
 0x24e   : > { %4066 = vmatprep.subr.bf16.mxu0 %v5087_v43 }
 0x250   : > { %4036 = vmatpush3.bf16.msra.mxu1 %v4928_v1 }
 0x251   : > { %4037 = vmatprep.subr.bf16.mxu1 %v4564_v32  ;;  %4068 = vmatpush3.bf16.msra.mxu0 %v5087_v43 }
 0x252   : > { %4070 = vmatprep.subr.bf16.mxu0 %v5099_v48 }
 0x254   : > { %4039 = vmatpush3.bf16.msra.mxu1 %v4940_v4 }
 0x255   : > { %4040 = vmatprep.subr.bf16.mxu1 %v4564_v32  ;;  %4072 = vmatpush3.bf16.msra.mxu0 %v5099_v48 }
 0x256   : > { %4074 = vmatprep.subr.bf16.mxu0 %v5111_v34 }
 0x258   : > { %4042 = vmatpush3.bf16.msra.mxu1 %v4952_v8 }
 0x259   : > { %4043 = vmatprep.subr.bf16.mxu1 %v4564_v32  ;;  %4076 = vmatpush3.bf16.msra.mxu0 %v5111_v34 }
 0x25a   : > { %4078 = vmatprep.subr.bf16.mxu0 %v5123_v54 }
 0x25c   : > { %4045 = vmatpush3.bf16.msra.mxu1 %v4964_v11 }
 0x25d   : > { %4046 = vmatprep.subr.bf16.mxu1 %v4564_v32  ;;  %4080 = vmatpush3.bf16.msra.mxu0 %v5123_v54 }
 0x25e   : > { %4105 = vmatprep.subr.bf16.mxu0 %v4564_v32 }
 0x260   : > { %4048 = vmatpush3.bf16.msra.mxu1 %v4976_v14 }
 0x261   : > { %4081 = vmatprep.subr.bf16.mxu1 %v4564_v32 }
 0x263   : > { %3277 = vmatmul.mubr.f32.vlgmr.msra.gmra.mrb[8].mxu1 %v1260_v10 }
 0x264   : > { %4083 = vmatpush3.bf16.msra.mxu1 %v5039_v19  ;;  %3346 = vmatprep.mubr.msk.f32.mxu1 %vm4565_vm3, %v4563_v7 }
 0x265   : > { %4084 = vmatprep.subr.bf16.mxu1 %v4564_v32 }
 0x268   : > { %4086 = vmatpush3.bf16.msra.mxu1 %v5051_v23 }
 0x269   : > { %4087 = vmatprep.subr.bf16.mxu1 %v4564_v32 }
 0x26c   : > { %4089 = vmatpush3.bf16.msra.mxu1 %v5063_v30 }
 0x26d   : > { %4090 = vmatprep.subr.bf16.mxu1 %v4564_v32 }
 0x270   : > { %4092 = vmatpush3.bf16.msra.mxu1 %v5075_v37 }
 0x271   : > { %4093 = vmatprep.subr.bf16.mxu1 %v4564_v32 }
 0x274   : > { %4095 = vmatpush3.bf16.msra.mxu1 %v5087_v43 }
 0x275   : > { %4096 = vmatprep.subr.bf16.mxu1 %v4564_v32 }
 0x278   : > { %4098 = vmatpush3.bf16.msra.mxu1 %v5099_v48 }
 0x279   : > { %4099 = vmatprep.subr.bf16.mxu1 %v4564_v32 }
 0x27c   : > { %4101 = vmatpush3.bf16.msra.mxu1 %v5111_v34 }
 0x27d   : > { %4102 = vmatprep.subr.bf16.mxu1 %v4564_v32 }
 0x280   : > { %4104 = vmatpush3.bf16.msra.mxu1 %v5123_v54 }
 0x281   : > { %4130 = vmatprep.subr.bf16.mxu1 %v4892_v49 }
 0x2f3   : > { %v1088_v56 = vpop.f32.mrb[20].mxu0 }
 0x2f4   : > { %v1171_v57 = vmul.f32 %v1088_v56, %v4987_v25  ;;  %v3173_v58 = vpop.f32.mrb[21].mxu0 }
 0x2f6   : > { %v3138_v0 = vpop.f32.mrb[4].mxu1 }
 0x2f7   : > { %v1163_v2 = vmul.f32 %v3138_v0, %v764_v60  ;;  %v1013_v3 = vpop.f32.mrb[5].mxu1 }
 0x2f8   : > { %v1162_v5 = vmul.f32 %v1013_v3, %v762_v63 }
 0x2fa   : > { %v1164_v6 = vadd.f32 %v1163_v2, %v1162_v5 }
 0x2fc   : > { %v1165_v17 = vrot.slane %v1164_v6, 4 }
 0x2fe   : > { %v1166_v18 = vadd.f32 %v1165_v17, %v1164_v6 }
 0x300   : > { %v1167_v20 = vrot.slane %v1166_v18, 2 }
 0x302   : > { %v1168_v22 = vadd.f32 %v1167_v20, %v1166_v18 }
 0x304   : > { %v1169_v24 = vrot.slane %v1168_v22, 1 }
 0x306   : > { %v1170_v29 = vadd.f32 %v1169_v24, %v1168_v22 }
 0x308   : > { %v1172_v31 = vadd.f32 %v1171_v57, %v1170_v29 }
 0x313   : > { %v3243_v36 = vpop.f32.mrb[22].mxu0 }
 0x314   : > { %v1250_v38 = vpop.f32.mrb[23].mxu0 }
 0x315   : > { %v1332_v42 = vmax.f32 %v1250_v38, %v3243_v36 }
 0x316   : > { %v1158_v44 = vpop.f32.mrb[6].mxu1 }
 0x317   : > { %v5235_v28 = vmul.f32 %v1172_v31, %v1158_v44  ;;  %v3208_v46 = vpop.f32.mrb[7].mxu1  ;;  %v1333_v21 = vrot.slane %v1332_v42, 4 }
 0x319   : > { %v1334_v9 = vmax.f32 %v1332_v42, %v1333_v21  ;;  %v1587_v42 = vrot.slane %v4987_v25, 1 }
 0x31b   : > { %v1335_v33 = vrot.slane %v1334_v9, 2 }
 0x31d   : > { %v1336_v51 = vmax.f32 %v1334_v9, %v1335_v33  ;;  %v1177_v9 = vadd.f32 %v5223_v40, %v4999_v41  ;;  %v1175_v33 = vadd.f32 %v5228_v45, %v4994_v35 }
 0x31f   : > { %v1337_v52 = vrot.slane %v1336_v51, 1 }
 0x321   : > { %v1338_v39 = vmax.f32 %v1336_v51, %v1337_v52 }
 0x336   : > { %v1328_v55 = vpop.f32.mrb[8].mxu1 }
 0x337   : > { %v1339_v10 = vmax.f32 %v1338_v39, %v1328_v55  ;;  %v3278_v56 = vpop.f32.mrb[9].mxu1 }
 0x339   : > { %v1343_v58 = vrot.slane %v1339_v10, %v5005_v47  ;;  %v1350_v60 = vsub.f32 %v1328_v55, %v1339_v10 }
 0x33b   : > { %v1344_v57 = vsub.f32 %v1250_v38, %v1343_v58  ;;  %v1345_v63 = vsub.f32 %v3243_v36, %v1343_v58  ;;  %v1351_v0 = vmul.f32 1.442695, %v1350_v60 }
 0x33d   : > { %v1346_v2 = vmul.f32 1.442695, %v1344_v57  ;;  %v1348_v3 = vmul.f32 1.442695, %v1345_v63  ;;  %4475 = vpow2.f32 %v1351_v0 }
 0x33f   : > { %4477 = vpow2.f32 %v1346_v2 }
 0x340   : > { %4479 = vpow2.f32 %v1348_v3 }
 0x347   : > { %v4476_v5 = vpop.eup %4475 }
 0x348   : > { %3347 = vmatmul.mubr.f32.vlgmr.msra.gmra.mrb[10].mxu1 %v4476_v5 }
 0x349   : > { %v4478_v6 = vpop.eup %4477  ;;  %4132 = vmatpush3.bf16.msra.mxu1 %v4892_v49  ;;  %3416 = vmatprep.mubr.f32.mxu1 %v5025_v12 }
 0x34a   : > { %v4480_v17 = vpop.eup %4479  ;;  %3311 = vmatprep.mubr.f32.mxu0 %v4478_v6  ;;  %4134 = vmatprep.subr.bf16.mxu1 %v4904_v59 }
 0x34b   : > { %v1353_v18 = vadd.f32 %v4480_v17, %v4478_v6  ;;  %3312 = vmatmul.mubr.f32.vlgmr.msra.gmra.mrb[24].mxu0 %v4480_v17 }
 0x34c   : > { %4107 = vmatpush3.bf16.msra.mxu0 %v5039_v19  ;;  %3381 = vmatprep.mubr.msk.f32.mxu0 %vm4565_vm3, %v4563_v7 }
 0x34d   : > { %v1354_v20 = vrot.slane %v1353_v18, 4  ;;  %4136 = vmatpush3.bf16.msra.mxu1 %v4904_v59  ;;  %4108 = vmatprep.subr.bf16.mxu0 %v4564_v32 }
 0x34e   : > { %4138 = vmatprep.subr.bf16.mxu1 %v4916_v62 }
 0x34f   : > { %v1355_v22 = vadd.f32 %v1354_v20, %v1353_v18 }
 0x350   : > { %4110 = vmatpush3.bf16.msra.mxu0 %v5051_v23 }
 0x351   : > { %v1356_v12 = vrot.slane %v1355_v22, 2  ;;  %4140 = vmatpush3.bf16.msra.mxu1 %v4916_v62  ;;  %4111 = vmatprep.subr.bf16.mxu0 %v4564_v32 }
 0x352   : > { %4142 = vmatprep.subr.bf16.mxu1 %v4928_v1 }
 0x353   : > { %v1357_v24 = vadd.f32 %v1356_v12, %v1355_v22 }
 0x354   : > { %4113 = vmatpush3.bf16.msra.mxu0 %v5063_v30 }
 0x355   : > { %v1358_v29 = vrot.slane %v1357_v24, 1  ;;  %4144 = vmatpush3.bf16.msra.mxu1 %v4928_v1  ;;  %4114 = vmatprep.subr.bf16.mxu0 %v4564_v32 }
 0x356   : > { %4146 = vmatprep.subr.bf16.mxu1 %v4940_v4 }
 0x357   : > { %v1359_v31 = vadd.f32 %v1358_v29, %v1357_v24 }
 0x358   : > { %4116 = vmatpush3.bf16.msra.mxu0 %v5075_v37 }
 0x359   : > { %v1360_v36 = vadd.f32 %v4476_v5, %v1359_v31  ;;  %4148 = vmatpush3.bf16.msra.mxu1 %v4940_v4  ;;  %4117 = vmatprep.subr.bf16.mxu0 %v4564_v32 }
 0x35a   : > { %4150 = vmatprep.subr.bf16.mxu1 %v4952_v8 }
 0x35b   : > { %4481 = vrcp.f32 %v1360_v36 }
 0x35c   : > { %4119 = vmatpush3.bf16.msra.mxu0 %v5087_v43 }
 0x35d   : > { %4152 = vmatpush3.bf16.msra.mxu1 %v4952_v8  ;;  %4120 = vmatprep.subr.bf16.mxu0 %v4564_v32 }
 0x35e   : > { %4154 = vmatprep.subr.bf16.mxu1 %v4964_v11 }
 0x360   : > { %4122 = vmatpush3.bf16.msra.mxu0 %v5099_v48 }
 0x361   : > { %4156 = vmatpush3.bf16.msra.mxu1 %v4964_v11  ;;  %4123 = vmatprep.subr.bf16.mxu0 %v4564_v32 }
 0x362   : > { %4158 = vmatprep.subr.bf16.mxu1 %v4976_v14 }
 0x364   : > { %4125 = vmatpush3.bf16.msra.mxu0 %v5111_v34 }
 0x365   : > { %4160 = vmatpush3.bf16.msra.mxu1 %v4976_v14  ;;  %4126 = vmatprep.subr.bf16.mxu0 %v4564_v32  ;;  %v4482_v38 = vpop.eup %4481 }
 0x366   : > { %4186 = vmatprep.subr.bf16.mxu1 %v5039_v19 }
 0x368   : > { %4128 = vmatpush3.bf16.msra.mxu0 %v5123_v54  ;;  %3417 = vmatmul.mubr.f32.vlgmr.msra.gmra.mrb[12].mxu1 %v5027_v13  ;;  %v1677_v13 = vrot.slane %v5015_v61, 2 }
 0x369   : > { %4161 = vmatprep.subr.bf16.mxu0 %v4564_v32  ;;  %4188 = vmatpush3.bf16.msra.mxu1 %v5039_v19 }
 0x36a   : > { %4190 = vmatprep.subr.bf16.mxu1 %v5051_v23 }
 0x36b   : > { %3382 = vmatmul.mubr.f32.vlgmr.msra.gmra.mrb[26].mxu0 %v4482_v38 }
 0x36c   : > { %4163 = vmatpush3.bf16.msra.mxu0 %v4892_v49  ;;  %3451 = vmatprep.mubr.msk.f32.mxu0 %vm4565_vm3, %v4563_v7 }
 0x36d   : > { %4164 = vmatprep.subr.bf16.mxu0 %v4564_v32  ;;  %4192 = vmatpush3.bf16.msra.mxu1 %v5051_v23 }
 0x36e   : > { %4194 = vmatprep.subr.bf16.mxu1 %v5063_v30 }
 0x370   : > { %4166 = vmatpush3.bf16.msra.mxu0 %v4904_v59 }
 0x371   : > { %4167 = vmatprep.subr.bf16.mxu0 %v4564_v32  ;;  %4196 = vmatpush3.bf16.msra.mxu1 %v5063_v30 }
 0x372   : > { %4198 = vmatprep.subr.bf16.mxu1 %v5075_v37 }
 0x374   : > { %4169 = vmatpush3.bf16.msra.mxu0 %v4916_v62 }
 0x375   : > { %4170 = vmatprep.subr.bf16.mxu0 %v4564_v32  ;;  %4200 = vmatpush3.bf16.msra.mxu1 %v5075_v37 }
 0x376   : > { %4202 = vmatprep.subr.bf16.mxu1 %v5087_v43 }
 0x378   : > { %4172 = vmatpush3.bf16.msra.mxu0 %v4928_v1 }
 0x379   : > { %4173 = vmatprep.subr.bf16.mxu0 %v4564_v32  ;;  %4204 = vmatpush3.bf16.msra.mxu1 %v5087_v43 }
 0x37a   : > { %4206 = vmatprep.subr.bf16.mxu1 %v5099_v48 }
 0x37c   : > { %4175 = vmatpush3.bf16.msra.mxu0 %v4940_v4 }
 0x37d   : > { %4176 = vmatprep.subr.bf16.mxu0 %v4564_v32  ;;  %4208 = vmatpush3.bf16.msra.mxu1 %v5099_v48 }
 0x37e   : > { %4210 = vmatprep.subr.bf16.mxu1 %v5111_v34 }
 0x380   : > { %4178 = vmatpush3.bf16.msra.mxu0 %v4952_v8 }
 0x381   : > { %4179 = vmatprep.subr.bf16.mxu0 %v4564_v32  ;;  %4212 = vmatpush3.bf16.msra.mxu1 %v5111_v34 }
 0x382   : > { %4214 = vmatprep.subr.bf16.mxu1 %v5123_v54 }
 0x384   : > { %4181 = vmatpush3.bf16.msra.mxu0 %v4964_v11 }
 0x385   : > { %4182 = vmatprep.subr.bf16.mxu0 %v4564_v32  ;;  %4216 = vmatpush3.bf16.msra.mxu1 %v5123_v54 }
 0x386   : > { %4241 = vmatprep.subr.bf16.mxu1 %v4564_v32 }
 0x388   : > { %4184 = vmatpush3.bf16.msra.mxu0 %v4976_v14 }
 0x389   : > { %4217 = vmatprep.subr.bf16.mxu0 %v4564_v32 }
 0x38b   : > { %3452 = vmatmul.mubr.f32.vlgmr.msra.gmra.mrb[28].mxu0 %v1677_v13 }
 0x38c   : > { %4219 = vmatpush3.bf16.msra.mxu0 %v5039_v19  ;;  %3521 = vmatprep.mubr.msk.f32.mxu0 %vm4565_vm3, %v4563_v7 }
 0x38d   : > { %4220 = vmatprep.subr.bf16.mxu0 %v4564_v32 }
 0x390   : > { %4222 = vmatpush3.bf16.msra.mxu0 %v5051_v23 }
 0x391   : > { %4223 = vmatprep.subr.bf16.mxu0 %v4564_v32 }
 0x394   : > { %4225 = vmatpush3.bf16.msra.mxu0 %v5063_v30 }
 0x395   : > { %4226 = vmatprep.subr.bf16.mxu0 %v4564_v32 }
 0x398   : > { %4228 = vmatpush3.bf16.msra.mxu0 %v5075_v37 }
 0x399   : > { %4229 = vmatprep.subr.bf16.mxu0 %v4564_v32 }
 0x39c   : > { %4231 = vmatpush3.bf16.msra.mxu0 %v5087_v43 }
 0x39d   : > { %4232 = vmatprep.subr.bf16.mxu0 %v4564_v32 }
 0x3a0   : > { %4234 = vmatpush3.bf16.msra.mxu0 %v5099_v48 }
 0x3a1   : > { %4235 = vmatprep.subr.bf16.mxu0 %v4564_v32 }
 0x3a4   : > { %4237 = vmatpush3.bf16.msra.mxu0 %v5111_v34 }
 0x3a5   : > { %4238 = vmatprep.subr.bf16.mxu0 %v4564_v32 }
 0x3a8   : > { %4240 = vmatpush3.bf16.msra.mxu0 %v5123_v54 }
 0x3a9   : > { %4266 = vmatprep.subr.bf16.mxu0 %v4892_v49 }
 0x41b   : > { %v1503_v44 = vpop.f32.mrb[10].mxu1 }
 0x41c   : > { %v1589_v46 = vmul.f32 %v1587_v42, %v1503_v44  ;;  %v3348_v21 = vpop.f32.mrb[11].mxu1 }
 0x41e   : > { %v3313_v51 = vpop.f32.mrb[24].mxu0 }
 0x41f   : > { %v1578_v52 = vmul.f32 %v3313_v51, %v1177_v9  ;;  %v1428_v39 = vpop.f32.mrb[25].mxu0 }
 0x420   : > { %v1577_v55 = vmul.f32 %v1428_v39, %v1175_v33 }
 0x422   : > { %v1579_v10 = vadd.f32 %v1578_v52, %v1577_v55 }
 0x424   : > { %v1580_v56 = vrot.slane %v1579_v10, 4 }
 0x426   : > { %v1581_v58 = vadd.f32 %v1580_v56, %v1579_v10 }
 0x428   : > { %v1582_v60 = vrot.slane %v1581_v58, 2 }
 0x42a   : > { %v1583_v57 = vadd.f32 %v1582_v60, %v1581_v58 }
 0x42c   : > { %v1584_v63 = vrot.slane %v1583_v57, 1 }
 0x42e   : > { %v1585_v0 = vadd.f32 %v1584_v63, %v1583_v57 }
 0x430   : > { %v1590_v2 = vadd.f32 %v1589_v46, %v1585_v0 }
 0x43b   : > { %v3418_v3 = vpop.f32.mrb[12].mxu1 }
 0x43c   : > { %v1668_v5 = vpop.f32.mrb[13].mxu1 }
 0x43d   : > { %v1749_v6 = vmax.f32 %v1668_v5, %v3418_v3 }
 0x43e   : > { %v1573_v17 = vpop.f32.mrb[26].mxu0 }
 0x43f   : > { %v1591_v41 = vmul.f32 %v1590_v2, %v1573_v17  ;;  %v3383_v18 = vpop.f32.mrb[27].mxu0  ;;  %v1750_v22 = vrot.slane %v1749_v6, 4 }
 0x441   : > { %v2425_v20 = vrot.slane %v1591_v41, 7  ;;  %v1751_v12 = vmax.f32 %v1749_v6, %v1750_v22 }
 0x443   : > { %v5334_v35 = vsel %vm575_vm0, %v5235_v28, %v2425_v20  ;;  %v1752_v24 = vrot.slane %v1751_v12, 2 }
 0x445   : > { %v1753_v29 = vmax.f32 %v1751_v12, %v1752_v24 }
 0x447   : > { %v1754_v31 = vrot.slane %v1753_v29, 1 }
 0x449   : > { %v1755_v36 = vmax.f32 %v1753_v29, %v1754_v31 }
 0x45e   : > { %v1745_v38 = vpop.f32.mrb[28].mxu0 }
 0x45f   : > { %v1756_v13 = vmax.f32 %v1755_v36, %v1745_v38  ;;  %v3453_v42 = vpop.f32.mrb[29].mxu0 }
 0x461   : > { %v1760_v44 = vrot.slane %v1756_v13, %v5005_v47  ;;  %v1767_v46 = vsub.f32 %v1745_v38, %v1756_v13 }
 0x463   : > { %v1761_v21 = vsub.f32 %v1668_v5, %v1760_v44  ;;  %v1762_v9 = vsub.f32 %v3418_v3, %v1760_v44  ;;  %v1768_v33 = vmul.f32 1.442695, %v1767_v46 }
 0x465   : > { %v1763_v51 = vmul.f32 1.442695, %v1761_v21  ;;  %v1765_v52 = vmul.f32 1.442695, %v1762_v9  ;;  %4483 = vpow2.f32 %v1768_v33 }
 0x467   : > { %4485 = vpow2.f32 %v1763_v51 }
 0x468   : > { %4487 = vpow2.f32 %v1765_v52 }
 0x46f   : > { %v4484_v28 = vpop.eup %4483 }
 0x470   : > { %3522 = vmatmul.mubr.f32.vlgmr.msra.gmra.mrb[30].mxu0 %v4484_v28 }
 0x471   : > { %v4486_v39 = vpop.eup %4485  ;;  %4268 = vmatpush3.bf16.msra.mxu0 %v4892_v49  ;;  %3591 = vmatprep.mubr.f32.mxu0 %v5029_v15 }
 0x472   : > { %v4488_v55 = vpop.eup %4487  ;;  %3486 = vmatprep.mubr.f32.mxu1 %v4486_v39  ;;  %4270 = vmatprep.subr.bf16.mxu0 %v4904_v59 }
 0x473   : > { %v1770_v10 = vadd.f32 %v4488_v55, %v4486_v39  ;;  %3487 = vmatmul.mubr.f32.vlgmr.msra.gmra.mrb[14].mxu1 %v4488_v55 }
 0x474   : > { %4243 = vmatpush3.bf16.msra.mxu1 %v5039_v19  ;;  %3556 = vmatprep.mubr.msk.f32.mxu1 %vm4565_vm3, %v4563_v7 }
 0x475   : > { %v1771_v56 = vrot.slane %v1770_v10, 4  ;;  %4272 = vmatpush3.bf16.msra.mxu0 %v4904_v59  ;;  %4244 = vmatprep.subr.bf16.mxu1 %v4564_v32 }
 0x476   : > { %4274 = vmatprep.subr.bf16.mxu0 %v4916_v62 }
 0x477   : > { %v1772_v58 = vadd.f32 %v1771_v56, %v1770_v10 }
 0x478   : > { %4246 = vmatpush3.bf16.msra.mxu1 %v5051_v23 }
 0x479   : > { %v1773_v15 = vrot.slane %v1772_v58, 2  ;;  %4276 = vmatpush3.bf16.msra.mxu0 %v4916_v62  ;;  %4247 = vmatprep.subr.bf16.mxu1 %v4564_v32 }
 0x47a   : > { %4278 = vmatprep.subr.bf16.mxu0 %v4928_v1 }
 0x47b   : > { %v1774_v60 = vadd.f32 %v1773_v15, %v1772_v58 }
 0x47c   : > { %4249 = vmatpush3.bf16.msra.mxu1 %v5063_v30 }
 0x47d   : > { %v1775_v57 = vrot.slane %v1774_v60, 1  ;;  %4280 = vmatpush3.bf16.msra.mxu0 %v4928_v1  ;;  %4250 = vmatprep.subr.bf16.mxu1 %v4564_v32 }
 0x47e   : > { %4282 = vmatprep.subr.bf16.mxu0 %v4940_v4 }
 0x47f   : > { %v1776_v63 = vadd.f32 %v1775_v57, %v1774_v60 }
 0x480   : > { %4252 = vmatpush3.bf16.msra.mxu1 %v5075_v37 }
 0x481   : > { %v1777_v0 = vadd.f32 %v4484_v28, %v1776_v63  ;;  %4284 = vmatpush3.bf16.msra.mxu0 %v4940_v4  ;;  %4253 = vmatprep.subr.bf16.mxu1 %v4564_v32 }
 0x482   : > { %4286 = vmatprep.subr.bf16.mxu0 %v4952_v8 }
 0x483   : > { %4489 = vrcp.f32 %v1777_v0 }
 0x484   : > { %4255 = vmatpush3.bf16.msra.mxu1 %v5087_v43 }
 0x485   : > { %4288 = vmatpush3.bf16.msra.mxu0 %v4952_v8  ;;  %4256 = vmatprep.subr.bf16.mxu1 %v4564_v32 }
 0x486   : > { %4290 = vmatprep.subr.bf16.mxu0 %v4964_v11 }
 0x488   : > { %4258 = vmatpush3.bf16.msra.mxu1 %v5099_v48 }
 0x489   : > { %4292 = vmatpush3.bf16.msra.mxu0 %v4964_v11  ;;  %4259 = vmatprep.subr.bf16.mxu1 %v4564_v32 }
 0x48a   : > { %4294 = vmatprep.subr.bf16.mxu0 %v4976_v14 }
 0x48c   : > { %4261 = vmatpush3.bf16.msra.mxu1 %v5111_v34 }
 0x48d   : > { %4296 = vmatpush3.bf16.msra.mxu0 %v4976_v14  ;;  %4262 = vmatprep.subr.bf16.mxu1 %v4564_v32  ;;  %v4490_v2 = vpop.eup %4489 }
 0x48e   : > { %4322 = vmatprep.subr.bf16.mxu0 %v5039_v19 }
 0x490   : > { %4264 = vmatpush3.bf16.msra.mxu1 %v5123_v54  ;;  %3592 = vmatmul.mubr.f32.vlgmr.msra.gmra.mrb[32].mxu0 %v5031_v16 }
 0x491   : > { %4297 = vmatprep.subr.bf16.mxu1 %v4564_v32  ;;  %4324 = vmatpush3.bf16.msra.mxu0 %v5039_v19 }
 0x492   : > { %4326 = vmatprep.subr.bf16.mxu0 %v5051_v23 }
 0x493   : > { %3557 = vmatmul.mubr.f32.vlgmr.msra.gmra.mrb[16].mxu1 %v4490_v2 }
 0x494   : > { %4299 = vmatpush3.bf16.msra.mxu1 %v4892_v49  ;;  %3626 = vmatprep.mubr.msk.f32.mxu1 %vm4565_vm3, %v4563_v7  ;;  %v2093_v49 = vrot.slane %v5015_v61, 3 }
 0x495   : > { %4300 = vmatprep.subr.bf16.mxu1 %v4564_v32  ;;  %4328 = vmatpush3.bf16.msra.mxu0 %v5051_v23 }
 0x496   : > { %4330 = vmatprep.subr.bf16.mxu0 %v5063_v30 }
 0x498   : > { %4302 = vmatpush3.bf16.msra.mxu1 %v4904_v59  ;;  %v2003_v59 = vrot.slane %v4987_v25, 2 }
 0x499   : > { %4303 = vmatprep.subr.bf16.mxu1 %v4564_v32  ;;  %4332 = vmatpush3.bf16.msra.mxu0 %v5063_v30 }
 0x49a   : > { %4334 = vmatprep.subr.bf16.mxu0 %v5075_v37 }
 0x49c   : > { %4305 = vmatpush3.bf16.msra.mxu1 %v4916_v62 }
 0x49d   : > { %4306 = vmatprep.subr.bf16.mxu1 %v4564_v32  ;;  %4336 = vmatpush3.bf16.msra.mxu0 %v5075_v37 }
 0x49e   : > { %4338 = vmatprep.subr.bf16.mxu0 %v5087_v43 }
 0x4a0   : > { %4308 = vmatpush3.bf16.msra.mxu1 %v4928_v1 }
 0x4a1   : > { %4309 = vmatprep.subr.bf16.mxu1 %v4564_v32  ;;  %4340 = vmatpush3.bf16.msra.mxu0 %v5087_v43 }
 0x4a2   : > { %4342 = vmatprep.subr.bf16.mxu0 %v5099_v48 }
 0x4a4   : > { %4311 = vmatpush3.bf16.msra.mxu1 %v4940_v4 }
 0x4a5   : > { %4312 = vmatprep.subr.bf16.mxu1 %v4564_v32  ;;  %4344 = vmatpush3.bf16.msra.mxu0 %v5099_v48 }
 0x4a6   : > { %4346 = vmatprep.subr.bf16.mxu0 %v5111_v34 }
 0x4a8   : > { %4314 = vmatpush3.bf16.msra.mxu1 %v4952_v8  ;;  %v1595_v8 = vadd.f32 %v5223_v40, %v5003_v27 }
 0x4a9   : > { %4315 = vmatprep.subr.bf16.mxu1 %v4564_v32  ;;  %4348 = vmatpush3.bf16.msra.mxu0 %v5111_v34 }
 0x4aa   : > { %4350 = vmatprep.subr.bf16.mxu0 %v5123_v54 }
 0x4ac   : > { %4317 = vmatpush3.bf16.msra.mxu1 %v4964_v11  ;;  %v1593_v11 = vadd.f32 %v5228_v45, %v5001_v26 }
 0x4ad   : > { %4318 = vmatprep.subr.bf16.mxu1 %v4564_v32  ;;  %4352 = vmatpush3.bf16.msra.mxu0 %v5123_v54 }
 0x4ae   : > { %4377 = vmatprep.subr.bf16.mxu0 %v4564_v32 }
 0x4b0   : > { %4320 = vmatpush3.bf16.msra.mxu1 %v4976_v14 }
 0x4b1   : > { %4353 = vmatprep.subr.bf16.mxu1 %v4564_v32 }
 0x4b3   : > { %3627 = vmatmul.mubr.f32.vlgmr.msra.gmra.mrb[18].mxu1 %v2093_v49 }
 0x4b4   : > { %4355 = vmatpush3.bf16.msra.mxu1 %v5039_v19  ;;  %3696 = vmatprep.mubr.msk.f32.mxu1 %vm4565_vm3, %v4563_v7 }
 0x4b5   : > { %4356 = vmatprep.subr.bf16.mxu1 %v4564_v32 }
 0x4b8   : > { %4358 = vmatpush3.bf16.msra.mxu1 %v5051_v23 }
 0x4b9   : > { %4359 = vmatprep.subr.bf16.mxu1 %v4564_v32 }
 0x4bc   : > { %4361 = vmatpush3.bf16.msra.mxu1 %v5063_v30 }
 0x4bd   : > { %4362 = vmatprep.subr.bf16.mxu1 %v4564_v32 }
 0x4c0   : > { %4364 = vmatpush3.bf16.msra.mxu1 %v5075_v37 }
 0x4c1   : > { %4365 = vmatprep.subr.bf16.mxu1 %v4564_v32 }
 0x4c4   : > { %4367 = vmatpush3.bf16.msra.mxu1 %v5087_v43 }
 0x4c5   : > { %4368 = vmatprep.subr.bf16.mxu1 %v4564_v32 }
 0x4c8   : > { %4370 = vmatpush3.bf16.msra.mxu1 %v5099_v48 }
 0x4c9   : > { %4371 = vmatprep.subr.bf16.mxu1 %v4564_v32 }
 0x4cc   : > { %4373 = vmatpush3.bf16.msra.mxu1 %v5111_v34 }
 0x4cd   : > { %4374 = vmatprep.subr.bf16.mxu1 %v4564_v32 }
 0x4d0   : > { %4376 = vmatpush3.bf16.msra.mxu1 %v5123_v54 }
 0x4d1   : > { %4401 = vmatprep.subr.bf16.mxu1 %v4564_v32 }
 0x543   : > { %v1920_v62 = vpop.f32.mrb[30].mxu0 }
 0x544   : > { %v2005_v1 = vmul.f32 %v2003_v59, %v1920_v62  ;;  %v3523_v4 = vpop.f32.mrb[31].mxu0 }
 0x545   : > { %v2441_v4 = vld [vmem:[%s5570_s3 + $0x28] sm:$0xff] }
 0x546   : > { %v3488_v14 = vpop.f32.mrb[14].mxu1 }
 0x547   : > { %v1995_v61 = vmul.f32 %v3488_v14, %v1595_v8  ;;  %v1845_v16 = vpop.f32.mrb[15].mxu1  ;;  %v2443_v14 = vld [vmem:[%s5570_s3 + $0x38] sm:$0xff] }
 0x548   : > { %v1994_v3 = vmul.f32 %v1845_v16, %v1593_v11  ;;  %v2442_v11 = vld [vmem:[%s5570_s3 + $0x30] sm:$0xff]  ;;  %v2444_v16 = vld [vmem:[%s5570_s3 + $0x40] sm:$0xff] }
 0x54a   : > { %v1996_v5 = vadd.f32 %v1995_v61, %v1994_v3  ;;  %v4411_v61 = vpack.c.bf16 %v2443_v14, %v2442_v11  ;;  %v2445_v3 = vld [vmem:[%s5570_s3 + $0x48] sm:$0xff] }
 0x54c   : > { %v1997_v6 = vrot.slane %v1996_v5, 4 }
 0x54e   : > { %v1998_v17 = vadd.f32 %v1997_v6, %v1996_v5  ;;  %v4414_v5 = vpack.c.bf16 %v2445_v3, %v2444_v16  ;;  %v2446_v6 = vld [vmem:[%s5570_s3 + $0x50] sm:$0xff] }
 0x550   : > { %v1999_v41 = vrot.slane %v1998_v17, 2 }
 0x552   : > { %v2000_v18 = vadd.f32 %v1999_v41, %v1998_v17  ;;  %v2447_v17 = vld [vmem:[%s5570_s3 + $0x58] sm:$0xff] }
 0x553   : > { %v4417_v41 = vpack.c.bf16 %v2447_v17, %v2446_v6 }
 0x554   : > { %v2001_v20 = vrot.slane %v2000_v18, 1 }
 0x556   : > { %v2002_v22 = vadd.f32 %v2001_v20, %v2000_v18  ;;  %v2448_v18 = vld [vmem:[%s5570_s3 + $0x60] sm:$0xff]  ;;  %v2449_v20 = vld [vmem:[%s5570_s3 + $0x68] sm:$0xff] }
 0x558   : > { %v2006_v12 = vadd.f32 %v2005_v1, %v2002_v22  ;;  %v4420_v22 = vpack.c.bf16 %v2449_v20, %v2448_v18 }
 0x563   : > { %v3593_v24 = vpop.f32.mrb[32].mxu0 }
 0x564   : > { %v2084_v29 = vpop.f32.mrb[33].mxu0 }
 0x565   : > { %v2165_v31 = vmax.f32 %v2084_v29, %v3593_v24 }
 0x566   : > { %v1990_v36 = vpop.f32.mrb[16].mxu1 }
 0x567   : > { %v2007_v27 = vmul.f32 %v2006_v12, %v1990_v36  ;;  %v3558_v38 = vpop.f32.mrb[17].mxu1  ;;  %v2166_v42 = vrot.slane %v2165_v31, 4  ;;  %v2450_v12 = vld [vmem:[%s5570_s3 + $0x70] sm:$0xff] }
 0x569   : > { %v2428_v13 = vrot.slane %v2007_v27, 6  ;;  %v2167_v44 = vmax.f32 %v2165_v31, %v2166_v42  ;;  %v2419_v31 = vrot.slane %v4987_v25, 3 }
 0x56b   : > { %v5433_v26 = vsel %vm577_vm1, %v5334_v35, %v2428_v13  ;;  %v2168_v46 = vrot.slane %v2167_v44, 2  ;;  %v2011_v13 = vadd.f32 %v5223_v40, %v5010_v53 }
 0x56d   : > { %v2169_v21 = vmax.f32 %v2167_v44, %v2168_v46 }
 0x56f   : > { %v2170_v9 = vrot.slane %v2169_v21, 1 }
 0x571   : > { %v2171_v33 = vmax.f32 %v2169_v21, %v2170_v9 }
 0x586   : > { %v2161_v51 = vpop.f32.mrb[18].mxu1 }
 0x587   : > { %v2172_v52 = vmax.f32 %v2171_v33, %v2161_v51  ;;  %v3628_v28 = vpop.f32.mrb[19].mxu1 }
 0x589   : > { %v2176_v39 = vrot.slane %v2172_v52, %v5005_v47  ;;  %v2183_v55 = vsub.f32 %v2161_v51, %v2172_v52 }
 0x58b   : > { %v2177_v10 = vsub.f32 %v2084_v29, %v2176_v39  ;;  %v2178_v56 = vsub.f32 %v3593_v24, %v2176_v39  ;;  %v2184_v58 = vmul.f32 1.442695, %v2183_v55  ;;  %v2451_v24 = vld [vmem:[%s5570_s3 + $0x78] sm:$0xff] }
 0x58c   : > { %v4423_v29 = vpack.c.bf16 %v2451_v24, %v2450_v12 }
 0x58d   : > { %v2179_v15 = vmul.f32 1.442695, %v2177_v10  ;;  %v2181_v60 = vmul.f32 1.442695, %v2178_v56  ;;  %4491 = vpow2.f32 %v2184_v58 }
 0x58f   : > { %4493 = vpow2.f32 %v2179_v15 }
 0x590   : > { %4495 = vpow2.f32 %v2181_v60 }
 0x597   : > { %v4492_v35 = vpop.eup %4491 }
 0x598   : > { %3697 = vmatmul.mubr.f32.vlgmr.msra.gmra.mrb[20].mxu1 %v4492_v35 }
 0x599   : > { %v4494_v57 = vpop.eup %4493  ;;  %3766 = vmatprep.mubr.msk.f32.mxu1 %vm4565_vm3, %v4563_v7 }
 0x59a   : > { %v4496_v63 = vpop.eup %4495  ;;  %3661 = vmatprep.mubr.f32.mxu0 %v4494_v57 }
 0x59b   : > { %v2186_v0 = vadd.f32 %v4496_v63, %v4494_v57  ;;  %3662 = vmatmul.mubr.f32.vlgmr.msra.gmra.mrb[34].mxu0 %v4496_v63 }
 0x59c   : > { %4379 = vmatpush3.bf16.msra.mxu0 %v5039_v19  ;;  %3731 = vmatprep.mubr.msk.f32.mxu0 %vm4565_vm3, %v4563_v7 }
 0x59d   : > { %v2187_v47 = vrot.slane %v2186_v0, 4  ;;  %4380 = vmatprep.subr.bf16.mxu0 %v4564_v32 }
 0x59f   : > { %v2188_v2 = vadd.f32 %v2187_v47, %v2186_v0 }
 0x5a0   : > { %4382 = vmatpush3.bf16.msra.mxu0 %v5051_v23  ;;  %v2436_v23 = vld [vmem:[%s5570_s3] sm:$0xff] }
 0x5a1   : > { %v2189_v49 = vrot.slane %v2188_v2, 2  ;;  %4383 = vmatprep.subr.bf16.mxu0 %v4564_v32 }
 0x5a3   : > { %v2190_v59 = vadd.f32 %v2189_v49, %v2188_v2 }
 0x5a4   : > { %4385 = vmatpush3.bf16.msra.mxu0 %v5063_v30  ;;  %v2437_v30 = vld [vmem:[%s5570_s3 + $0x8] sm:$0xff] }
 0x5a5   : > { %v2191_v62 = vrot.slane %v2190_v59, 1  ;;  %4386 = vmatprep.subr.bf16.mxu0 %v4564_v32 }
 0x5a7   : > { %v2192_v1 = vadd.f32 %v2191_v62, %v2190_v59 }
 0x5a8   : > { %4388 = vmatpush3.bf16.msra.mxu0 %v5075_v37  ;;  %v4402_v37 = vpack.c.bf16 %v2437_v30, %v2436_v23 }
 0x5a9   : > { %v2193_v19 = vadd.f32 %v4492_v35, %v2192_v1  ;;  %4389 = vmatprep.subr.bf16.mxu0 %v4564_v32 }
 0x5aa   : > { %4403 = vmatpush3.bf16.msra.mxu1 %v4402_v37 }
 0x5ab   : > { %4497 = vrcp.f32 %v2193_v19  ;;  %4404 = vmatprep.subr.bf16.mxu1 %v4564_v32 }
 0x5ac   : > { %4391 = vmatpush3.bf16.msra.mxu0 %v5087_v43  ;;  %v2438_v43 = vld [vmem:[%s5570_s3 + $0x10] sm:$0xff] }
 0x5ad   : > { %4392 = vmatprep.subr.bf16.mxu0 %v4564_v32 }
 0x5b0   : > { %4394 = vmatpush3.bf16.msra.mxu0 %v5099_v48  ;;  %v2439_v48 = vld [vmem:[%s5570_s3 + $0x18] sm:$0xff] }
 0x5b1   : > { %4395 = vmatprep.subr.bf16.mxu0 %v4564_v32 }
 0x5b4   : > { %4397 = vmatpush3.bf16.msra.mxu0 %v5111_v34  ;;  %v4405_v34 = vpack.c.bf16 %v2439_v48, %v2438_v43 }
 0x5b5   : > { %4398 = vmatprep.subr.bf16.mxu0 %v4564_v32  ;;  %v4498_v7 = vpop.eup %4497 }
 0x5b6   : > { %4406 = vmatpush3.bf16.msra.mxu1 %v4405_v34 }
 0x5b7   : > { %4407 = vmatprep.subr.bf16.mxu1 %v4564_v32 }
 0x5b8   : > { %4400 = vmatpush3.bf16.msra.mxu0 %v5123_v54  ;;  %v2440_v54 = vld [vmem:[%s5570_s3 + $0x20] sm:$0xff] }
 0x5b9   : > { %v4408_v8 = vpack.c.bf16 %v2441_v4, %v2440_v54 }
 0x5bb   : > { %3732 = vmatmul.mubr.f32.vlgmr.msra.gmra.mrb[36].mxu0 %v4498_v7  ;;  %4409 = vmatpush3.bf16.msra.mxu1 %v4408_v8 }
 0x5bc   : > { %4410 = vmatprep.subr.bf16.mxu1 %v4564_v32 }
 0x5bf   : > { %4412 = vmatpush3.bf16.msra.mxu1 %v4411_v61 }
 0x5c0   : > { %4413 = vmatprep.subr.bf16.mxu1 %v4564_v32 }
 0x5c3   : > { %4415 = vmatpush3.bf16.msra.mxu1 %v4414_v5 }
 0x5c4   : > { %4416 = vmatprep.subr.bf16.mxu1 %v4564_v32 }
 0x5c7   : > { %4418 = vmatpush3.bf16.msra.mxu1 %v4417_v41 }
 0x5c8   : > { %4419 = vmatprep.subr.bf16.mxu1 %v4564_v32 }
 0x5cb   : > { %4421 = vmatpush3.bf16.msra.mxu1 %v4420_v22 }
 0x5cc   : > { %4422 = vmatprep.subr.bf16.mxu1 %v4564_v32  ;;  %v2009_v32 = vadd.f32 %v5228_v45, %v5007_v50  ;;  %v2611_v45 = vld [vmem:[%s5576_s9] ss:$0 sm:$0xff] }
 0x5cf   : > { %4424 = vmatpush3.bf16.msra.mxu1 %v4423_v29 }
 0x66b   : > { %v2336_v36 = vpop.f32.mrb[20].mxu1 }
 0x66c   : > { %v2421_v27 = vmul.f32 %v2419_v31, %v2336_v36  ;;  %v3698_v38 = vpop.f32.mrb[21].mxu1 }
 0x66e   : > { %v3663_v42 = vpop.f32.mrb[34].mxu0 }
 0x66f   : > { %v2411_v44 = vmul.f32 %v3663_v42, %v2011_v13  ;;  %v2261_v46 = vpop.f32.mrb[35].mxu0 }
 0x670   : > { %v2410_v21 = vmul.f32 %v2261_v46, %v2009_v32 }
 0x672   : > { %v2412_v9 = vadd.f32 %v2411_v44, %v2410_v21 }
 0x674   : > { %v2413_v33 = vrot.slane %v2412_v9, 4 }
 0x676   : > { %v2414_v51 = vadd.f32 %v2413_v33, %v2412_v9 }
 0x678   : > { %v2415_v52 = vrot.slane %v2414_v51, 2 }
 0x67a   : > { %v2416_v25 = vadd.f32 %v2415_v52, %v2414_v51 }
 0x67c   : > { %v2417_v28 = vrot.slane %v2416_v25, 1 }
 0x67e   : > { %v2418_v39 = vadd.f32 %v2417_v28, %v2416_v25 }
 0x680   : > { %v2422_v55 = vadd.f32 %v2421_v27, %v2418_v39 }
 0x68e   : > { %v2406_v10 = vpop.f32.mrb[36].mxu0 }
 0x68f   : > { %v2423_v56 = vmul.f32 %v2422_v55, %v2406_v10  ;;  %v3733_v53 = vpop.f32.mrb[37].mxu0 }
 0x691   : > { %v2431_v40 = vrot.slane %v2423_v56, 5 }
 0x693   : > { %v2435_v50 = vsel %vm579_vm2, %v5433_v26, %v2431_v40 }
 0x694   : > { %3767 = vmatmul.mubr.f32.vlgmr.msra.gmra.mrb[22].mxu1 %v2435_v50 }
 0x767   : > { %v2525_v58 = vpop.f32.mrb[22].mxu1 }
 0x768   : > { %v2526_v15 = vadd.f32 %v2611_v45, %v2525_v58  ;;  %v3768_v60 = vpop.f32.mrb[23].mxu1 }
 0x76a   : > { %2529 = vst [vmem:[%s352_s26] sm:$0xf] %v2526_v15 }
 0x76b   : > { %4512 = shalt.err (!%p4509_p3)
}
 0x76c   : > { %s4513_s18 = scalar_lea.hbm %s5525_s28, 64  ;;  %s4517_s26 = scalar_lea.hbm %s5577_s10, 128 }
 0x76d   : > { %p4514_p4 = scmp.ne.s32.totalorder %s5525_s28, %s4513_s18  ;;  %p4518_p9 = scmp.lt.u32.totalorder %s5525_s28, %s5577_s10 }
 0x76e   : > { %p4519_p10 = scmp.lt.u32.totalorder %s4517_s26, %s4513_s18  ;;  %p4521_p12 = scmp.lt.u32.totalorder %s4513_s18, %s5525_s28 }
 0x76f   : > { %p4515_p7 = pnand %p4514_p4, %p4660_p5 }
 0x770   : > { %p4520_p11 = por %p4519_p10, %p4518_p9 }
 0x771   : > { %p4516_p8 = pneg %p4515_p7 }
 0x772   : > { %p4522_p13 = por %p4521_p12, %p4520_p11 }
 0x774   : > { %p4523_p0 = pnand %p4522_p13, %p4516_p8 }
 0x776   : > { %4526 = shalt.err (!%p4523_p0)
}
 0x777   : > { %4425 = dma.vmem_to_hbm [thread:$0]  (%p4660_p5), %s5527_s27, 64, %s5525_s28, %s2531_s30  }
 0x778 PF: > { %p4431_p1 = scmp.ge.s32.totalorder %s4561_s16, 2  ;;  %s2556_s11 = sand.u32 1, %s4549_s13  }
 0x779   : > { %s2557_s17 = scalar_lea.sflag [#allocation3], %s2556_s11 }
 0x77a   : > { %p4428_p2 = pnand %p4431_p1, %p4664_p6 }
 0x77c   : > { %4544 = dma.done.wait (!%p4428_p2), %s2557_s17, 64  }
 0x77d   : > { %4546 = vsyncadd (!%p4428_p2), %s2557_s17, 4294967232  ;;  %s5581_s20 = sld [smem:[#allocation5_spill]]  ;;  %p20_p3 = scmp.ge.s32.totalorder %s4647_s19, 4  }
 0x77e   : > { %s5582_s13 = smov %s4553_s14  ;;  %s5583_s14 = smov %s4557_s15 }
 0x77f   : > { %s5585_s16 = smov %s4647_s19  ;;  %22 = sbr.rel (!%p20_p3) target bundleno = 3 (0x3), region = 95 }
 0x783   : > { %s5584_s15 = smov %s5581_s20 }
 0x786   :  { %2562 = vsyncpa [#allocation3], 1 }
 0x787   :  { %2564 = vsyncpa [#allocation3 + $0x1], 1 }

// kernel: _attention_pool2d_impl.1
= control target key start
LH: loop header
LB: loop body
LE: loop exit
PB: predicated region body
PF: predicated region fallthrough
CT: control target
= control target key end

     0   :  { %15 = vsyncpa [#allocation3], 0  ;;  %s5567_s0 = inlined_call_operand.vmem [shape: f32[2,64,128], index: 0, kind: input, shape index: {}]   ;;  %s5568_s1 = inlined_call_operand.vmem [shape: f32[128,256], index: 1, kind: input, shape index: {}]   ;;  %s5569_s2 = inlined_call_operand.vmem [shape: f32[128,128], index: 2, kind: input, shape index: {}]   ;;  %s5570_s3 = inlined_call_operand.vmem [shape: f32[128,128], index: 3, kind: input, shape index: {}]   ;;  %s5571_s4 = inlined_call_operand.vmem [shape: f32[128,128], index: 4, kind: input, shape index: {}]   ;;  %s5572_s5 = inlined_call_operand.vmem [shape: f32[128,128], index: 5, kind: input, shape index: {}]   ;;  %s5573_s6 = inlined_call_operand.vmem [shape: f32[16,256], index: 6, kind: input, shape index: {}]   ;;  %s5574_s7 = inlined_call_operand.vmem [shape: f32[1,256], index: 7, kind: input, shape index: {}]   ;;  %s5575_s8 = inlined_call_operand.vmem [shape: f32[1,128], index: 8, kind: input, shape index: {}]   ;;  %s5576_s9 = inlined_call_operand.vmem [shape: f32[1,128], index: 9, kind: input, shape index: {}]   ;;  %s5577_s10 = inlined_call_operand.hbm [shape: f32[2,4,128], index: 10, kind: output, shape index: {}]  }
   0x1   :  { %17 = vsyncpa [#allocation3 + $0x1], 0  ;;  %s4622_s13 = smov 0   ;;  %s4624_s14 = smov 0  }
   0x2   :  { %s4626_s15 = smov 0   ;;  %s4628_s16 = smov 0  }
   0x3 LB: > { %s4643_s17 = sadd.s32 4294967295, %s4561_s16   ;;  %s2603_s18 = sadd.s32 4294967294, %s4561_s16   ;;  %s4561_s16 = sphi %s4628_s16, %s5585_s16   ;;  %s4557_s15 = sphi %s4626_s15, %s5584_s15   ;;  %s4553_s14 = sphi %s4624_s14, %s5583_s14   ;;  %s4549_s13 = sphi %s4622_s13, %s5582_s13  }
   0x4   : > { %s4647_s19 = sadd.s32 1, %s4561_s16   ;;  %s245_s20 = sadd.s32 1, %s4557_s15 }
   0x5   : > { %s242_s21 = ssub.s32 %s4561_s16, %s4647_s19  ;;  %p255_p0 = scmp.ne.s32.totalorder %s4557_s15, %s4553_s14 }
   0x6   : > { %p243_p1 = scmp.eq.s32.totalorder %s242_s21, 0  ;;  %p256_p2 = scmp.eq.s32.totalorder %s4643_s17, 1 }
   0x7   : > { %p261_p3 = scmp.ne.s32.totalorder %s4553_s14, %s4549_s13  ;;  %p262_p4 = scmp.eq.s32.totalorder %s2603_s18, 1 }
   0x8   : > { %s4658_s22 = scalar_select %p243_p1, %s4557_s15, %s245_s20  }
   0x9   : > { %p4660_p5 = por %p256_p2, %p255_p0  ;;  %p4664_p6 = por %p262_p4, %p261_p3 }
   0xa   : > { %5578 = sst [smem:[#allocation5_spill]] %s4658_s22  ;;  %p2606_p7 = scmp.ge.s32.totalorder %s4561_s16, 1 }
   0xb   : > { %p315_p8 = scmp.lt.s32.totalorder %s4561_s16, 3 }
   0xd   : > { %p316_p9 = pnand %p2606_p7, %p315_p8 }
   0xe   : > { %v399_v0 = vld [vmem:[%s5568_s1 + $0x8] sm:$0xff] (!%p316_p9)  ;;  %v401_v1 = vld [vmem:[%s5568_s1 + $0x18] sm:$0xff] (!%p316_p9)  ;;  %v398_v2 = vld [vmem:[%s5568_s1] sm:$0xff] (!%p316_p9)  ;;  %p353_p10 = scmp.lt.s32.totalorder (!%p316_p9), %s4643_s17, 1  ;;  %v4563_v7 = vmov (!%p316_p9), 0.0   ;;  %vm575_vm0 = vcmask (!%p316_p9), 1040384  }
   0xf   : > { %319 = sbr.rel (%p316_p9) target bundleno = 1912 (0x778), region = 60  ;;  %v3769_v3 = vpack.c.bf16 (!%p316_p9), %v401_v1, %v399_v0  ;;  %v400_v4 = vld [vmem:[%s5568_s1 + $0x10] sm:$0xff] (!%p316_p9)  ;;  %v403_v5 = vld [vmem:[%s5568_s1 + $0x28] sm:$0xff] (!%p316_p9)  ;;  %v405_v6 = vld [vmem:[%s5568_s1 + $0x38] sm:$0xff] (!%p316_p9)  ;;  %494 = vmatprep.mubr.f32.mxu0 (!%p316_p9), %v4563_v7  ;;  %657 = vmatprep.mubr.f32.mxu1 (!%p316_p9), %v4563_v7  ;;  %vm577_vm1 = vcmask (!%p316_p9), 1041408   ;;  %vm579_vm2 = vcmask (!%p316_p9), 1042432  }
  0x10   : > { %v3771_v8 = vpack.c.bf16 (!%p316_p9), %v400_v4, %v398_v2  ;;  %v3773_v9 = vpack.c.bf16 (!%p316_p9), %v405_v6, %v403_v5  ;;  %v402_v10 = vld [vmem:[%s5568_s1 + $0x20] sm:$0xff] (!%p316_p9)  ;;  %v404_v11 = vld [vmem:[%s5568_s1 + $0x30] sm:$0xff] (!%p316_p9)  ;;  %v407_v12 = vld [vmem:[%s5568_s1 + $0x48] sm:$0xff] (!%p316_p9)  ;;  %vm4565_vm3 = vmmov (!%p316_p9), 0   ;;  %s350_s18 = sand.u32 (!%p316_p9), 1, %s4553_s14  }
  0x11   : > { %3770 = vmatprep.subr.bf16.mxu0 (!%p316_p9), %v3769_v3  ;;  %v409_v13 = vld [vmem:[%s5568_s1 + $0x58] sm:$0xff] (!%p316_p9)  ;;  %3802 = vmatprep.subr.bf16.mxu1 (!%p316_p9), %v3769_v3  ;;  %v3775_v14 = vpack.c.bf16 (!%p316_p9), %v404_v11, %v402_v10  ;;  %v406_v16 = vld [vmem:[%s5568_s1 + $0x40] sm:$0xff] (!%p316_p9)  ;;  %v408_v17 = vld [vmem:[%s5568_s1 + $0x50] sm:$0xff] (!%p316_p9)  ;;  %s2607_s20 = sshll.u32 (!%p316_p9), %s350_s18, 2  ;;  %s2531_s30 = scalar_lea.sflag (!%p316_p9), [#allocation3], %s350_s18 }
  0x12   : > { %3772 = vmatpush1.bf16.msra.mxu0 (!%p316_p9), %v3771_v8  ;;  %3804 = vmatpush1.bf16.msra.mxu1 (!%p316_p9), %v3771_v8  ;;  %v3777_v15 = vpack.c.bf16 (!%p316_p9), %v409_v13, %v407_v12  ;;  %v411_v18 = vld [vmem:[%s5568_s1 + $0x68] sm:$0xff] (!%p316_p9)  ;;  %v413_v19 = vld [vmem:[%s5568_s1 + $0x78] sm:$0xff] (!%p316_p9)  ;;  %v3779_v20 = vpack.c.bf16 (!%p316_p9), %v408_v17, %v406_v16  ;;  %v410_v22 = vld [vmem:[%s5568_s1 + $0x60] sm:$0xff] (!%p316_p9)  ;;  %s352_s26 = scalar_lea.vmem (!%p316_p9), [#allocation2], %s2607_s20 }
  0x13   : > { %3774 = vmatprep.subr.bf16.mxu0 (!%p316_p9), %v3773_v9  ;;  %3806 = vmatprep.subr.bf16.mxu1 (!%p316_p9), %v3773_v9  ;;  %v3781_v21 = vpack.c.bf16 (!%p316_p9), %v413_v19, %v411_v18  ;;  %v412_v23 = vld [vmem:[%s5568_s1 + $0x70] sm:$0xff] (!%p316_p9)  ;;  %v415_v24 = vld [vmem:[%s5568_s1 + $0x88] sm:$0xff] (!%p316_p9)  ;;  %v417_v25 = vld [vmem:[%s5568_s1 + $0x98] sm:$0xff] (!%p316_p9)  ;;  %s2544_s27 = sshll.u32 (!%p316_p9), %s352_s26, 4  ;;  %s5527_s27 = int_to_ptr.vmem [resolvable:$true] %s2544_s27 }
  0x14   : > { %v3783_v28 = vpack.c.bf16 (!%p316_p9), %v412_v23, %v410_v22  ;;  %v414_v29 = vld [vmem:[%s5568_s1 + $0x80] sm:$0xff] (!%p316_p9)  ;;  %v3785_v31 = vpack.c.bf16 (!%p316_p9), %v417_v25, %v415_v24  ;;  %v416_v32 = vld [vmem:[%s5568_s1 + $0x90] sm:$0xff] (!%p316_p9)  ;;  %v419_v35 = vld [vmem:[%s5568_s1 + $0xa8] sm:$0xff] (!%p316_p9)  ;;  %s4499_s11 = scalar_lea.vmem (!%p316_p9), %s5527_s27, 64 }
  0x15   : > { %v421_v36 = vld [vmem:[%s5568_s1 + $0xb8] sm:$0xff] (!%p316_p9)  ;;  %v3787_v41 = vpack.c.bf16 (!%p316_p9), %v416_v32, %v414_v29  ;;  %v418_v47 = vld [vmem:[%s5568_s1 + $0xa0] sm:$0xff] (!%p316_p9)  ;;  %v420_v48 = vld [vmem:[%s5568_s1 + $0xb0] sm:$0xff] (!%p316_p9)  ;;  %v4564_v32 = vmov (!%p316_p9), 0.0|0.0   ;;  %p4500_p11 = scmp.ne.s32.totalorder (!%p316_p9), %s5527_s27, %s4499_s11 }
  0x16   : > { %s354_s12 = scalar_select %p353_p10, %s4643_s17, 1  ;;  %3776 = vmatpush1.bf16.msra.mxu0 %v3775_v14  ;;  %3808 = vmatpush1.bf16.msra.mxu1 %v3775_v14  ;;  %v3789_v46 = vpack.c.bf16 %v421_v36, %v419_v35  ;;  %v423_v50 = vld [vmem:[%s5568_s1 + $0xc8] sm:$0xff]  ;;  %v425_v51 = vld [vmem:[%s5568_s1 + $0xd8] sm:$0xff]  ;;  %v3791_v56 = vpack.c.bf16 %v420_v48, %v418_v47  ;;  %v422_v61 = vld [vmem:[%s5568_s1 + $0xc0] sm:$0xff] }
  0x17   : > { %3778 = vmatprep.subr.bf16.mxu0 %v3777_v15  ;;  %3810 = vmatprep.subr.bf16.mxu1 %v3777_v15  ;;  %v3793_v60 = vpack.c.bf16 %v425_v51, %v423_v50  ;;  %v424_v62 = vld [vmem:[%s5568_s1 + $0xd0] sm:$0xff]  ;;  %v427_v0 = vld [vmem:[%s5568_s1 + $0xe8] sm:$0xff]  ;;  %v429_v1 = vld [vmem:[%s5568_s1 + $0xf8] sm:$0xff]  ;;  %p4501_p12 = pnand %p4500_p11, %p4660_p5 }
  0x18   : > { %s2616_s28 = sshll.u32 %s354_s12, 6  ;;  %v3795_v6 = vpack.c.bf16 %v424_v62, %v422_v61  ;;  %v3797_v11 = vpack.c.bf16 %v429_v1, %v427_v0  ;;  %v426_v12 = vld [vmem:[%s5568_s1 + $0xe0] sm:$0xff]  ;;  %v428_v13 = vld [vmem:[%s5568_s1 + $0xf0] sm:$0xff]  ;;  %v665_v23 = vld [vmem:[%s5569_s2 + $0x8] sm:$0xff] }
  0x19   : > { %s4719_s21 = scalar_lea.vmem %s5567_s0, %s2616_s28  ;;  %v3799_v19 = vpack.c.bf16 %v428_v13, %v426_v12  ;;  %v664_v22 = vld [vmem:[%s5569_s2] sm:$0xff]  ;;  %v666_v35 = vld [vmem:[%s5569_s2 + $0x10] sm:$0xff]  ;;  %v667_v36 = vld [vmem:[%s5569_s2 + $0x18] sm:$0xff]  ;;  %p4502_p13 = pneg %p4501_p12 }
  0x1a   : > { %v4734_v26 = vld [vmem:[%s4719_s21] sm:$0xff]  ;;  %v4737_v27 = vld [vmem:[%s4719_s21 + $0x8] sm:$0xff]  ;;  %3780 = vmatpush1.bf16.msra.mxu0 %v3779_v20  ;;  %3812 = vmatpush1.bf16.msra.mxu1 %v3779_v20  ;;  %v4748_v33 = vld [vmem:[%s4719_s21 + $0x10] sm:$0xff] }
  0x1b   : > { %v543_v30 = vadd.f32 %v4737_v27, %v4734_v26  ;;  %3782 = vmatprep.subr.bf16.mxu0 %v3781_v21  ;;  %v4751_v34 = vld [vmem:[%s4719_s21 + $0x18] sm:$0xff]  ;;  %3814 = vmatprep.subr.bf16.mxu1 %v3781_v21  ;;  %v4762_v39 = vld [vmem:[%s4719_s21 + $0x20] sm:$0xff]  ;;  %v4765_v40 = vld [vmem:[%s4719_s21 + $0x28] sm:$0xff] }
  0x1c   : > { %v551_v38 = vadd.f32 %v4751_v34, %v4748_v33  ;;  %v559_v44 = vadd.f32 %v4765_v40, %v4762_v39  ;;  %v4770_v45 = vld [vmem:[%s4719_s21 + $0x30] sm:$0xff]  ;;  %v4779_v49 = vld [vmem:[%s4719_s21 + $0x38] sm:$0xff]  ;;  %v672_v47 = vld [vmem:[%s5569_s2 + $0x40] sm:$0xff]  ;;  %s2613_s21 = sshll.u32 %s4643_s17, 6  ;;  %s4566_s17 = smov [#allocation2]  }
  0x1d   : > { %v544_v37 = vrot.slane %v543_v30, 4  ;;  %v567_v55 = vadd.f32 %v4779_v49, %v4770_v45  ;;  %v673_v48 = vld [vmem:[%s5569_s2 + $0x48] sm:$0xff]  ;;  %v674_v50 = vld [vmem:[%s5569_s2 + $0x50] sm:$0xff]  ;;  %v675_v51 = vld [vmem:[%s5569_s2 + $0x58] sm:$0xff]  ;;  %s5525_s28 = scalar_lea.hbm %s5577_s10, %s2613_s21  ;;  %s4503_s20 = sshll.u32 %s4566_s17, 4  ;;  %s4504_s20 = int_to_ptr.vmem [resolvable:$false] %s4503_s20 }
  0x1e   : > { %3784 = vmatpush1.bf16.msra.mxu0 %v3783_v28  ;;  %v552_v43 = vrot.slane %v551_v38, 4  ;;  %3816 = vmatpush1.bf16.msra.mxu1 %v3783_v28  ;;  %v560_v54 = vrot.slane %v559_v44, 4  ;;  %v371_v61 = vld [vmem:[%s5571_s4 + $0x28] sm:$0xff]  ;;  %v373_v0 = vld [vmem:[%s5571_s4 + $0x38] sm:$0xff]  ;;  %v380_v12 = vld [vmem:[%s5571_s4 + $0x70] sm:$0xff]  ;;  %s4505_s12 = scalar_lea.vmem %s4504_s20, 128  ;;  %p4506_p0 = scmp.lt.s32.totalorder %s5527_s27, %s4504_s20 }
  0x1f   : > { %v545_v42 = vadd.f32 %v544_v37, %v543_v30  ;;  %3786 = vmatprep.subr.bf16.mxu0 %v3785_v31  ;;  %3818 = vmatprep.subr.bf16.mxu1 %v3785_v31  ;;  %v568_v63 = vrot.slane %v567_v55, 4  ;;  %v3834_v30 = vpack.c.bf16 %v665_v23, %v664_v22  ;;  %v381_v13 = vld [vmem:[%s5571_s4 + $0x78] sm:$0xff]  ;;  %p4507_p1 = scmp.lt.s32.totalorder %s4505_s12, %s4499_s11 }
  0x20   : > { %v553_v53 = vadd.f32 %v552_v43, %v551_v38  ;;  %v561_v59 = vadd.f32 %v560_v54, %v559_v44  ;;  %v669_v43 = vld [vmem:[%s5569_s2 + $0x28] sm:$0xff]  ;;  %v670_v44 = vld [vmem:[%s5569_s2 + $0x30] sm:$0xff] }
  0x21   : > { %v546_v52 = vrot.slane %v545_v42, 2  ;;  %v569_v5 = vadd.f32 %v568_v63, %v567_v55  ;;  %v678_v54 = vld [vmem:[%s5569_s2 + $0x70] sm:$0xff]  ;;  %v679_v55 = vld [vmem:[%s5569_s2 + $0x78] sm:$0xff]  ;;  %p4508_p2 = por %p4507_p1, %p4506_p0 }
  0x22   : > { %3788 = vmatpush1.bf16.msra.mxu0 %v3787_v41  ;;  %v554_v58 = vrot.slane %v553_v53, 2  ;;  %3820 = vmatpush1.bf16.msra.mxu1 %v3787_v41  ;;  %v562_v4 = vrot.slane %v561_v59, 2  ;;  %v3837_v41 = vpack.c.bf16 %v667_v36, %v666_v35  ;;  %v372_v63 = vld [vmem:[%s5571_s4 + $0x30] sm:$0xff] }
  0x23   : > { %v547_v57 = vadd.f32 %v546_v52, %v545_v42  ;;  %3790 = vmatprep.subr.bf16.mxu0 %v3789_v46  ;;  %3822 = vmatprep.subr.bf16.mxu1 %v3789_v46  ;;  %v570_v14 = vrot.slane %v569_v5, 2  ;;  %v668_v42 = vld [vmem:[%s5569_s2 + $0x20] sm:$0xff]  ;;  %v671_v46 = vld [vmem:[%s5569_s2 + $0x38] sm:$0xff]  ;;  %v4928_v1 = vpack.c.bf16 %v373_v0, %v372_v63  ;;  %v759_v36 = vld [vmem:[%s5573_s6 + $0x10] sm:$0xff]  ;;  %p4509_p3 = pnand %p4508_p2, %p4502_p13 }
  0x24   : > { %v555_v3 = vadd.f32 %v554_v58, %v553_v53  ;;  %v563_v10 = vadd.f32 %v562_v4, %v561_v59  ;;  %v676_v52 = vld [vmem:[%s5569_s2 + $0x60] sm:$0xff]  ;;  %v677_v53 = vld [vmem:[%s5569_s2 + $0x68] sm:$0xff]  ;;  %v369_v58 = vld [vmem:[%s5571_s4 + $0x18] sm:$0xff] }
  0x25   : > { %v548_v2 = vrot.slane %v547_v57, 1  ;;  %v571_v18 = vadd.f32 %v570_v14, %v569_v5  ;;  %v376_v5 = vld [vmem:[%s5571_s4 + $0x50] sm:$0xff]  ;;  %v4976_v14 = vpack.c.bf16 %v381_v13, %v380_v12 }
  0x26   : > { %3792 = vmatpush1.bf16.msra.mxu0 %v3791_v56  ;;  %v556_v9 = vrot.slane %v555_v3, 1  ;;  %3824 = vmatpush1.bf16.msra.mxu1 %v3791_v56  ;;  %v564_v17 = vrot.slane %v563_v10, 1  ;;  %v367_v56 = vld [vmem:[%s5571_s4 + $0x8] sm:$0xff] }
  0x27   : > { %v549_v8 = vadd.f32 %v548_v2, %v547_v57  ;;  %3794 = vmatprep.subr.bf16.mxu0 %v3793_v60  ;;  %3826 = vmatprep.subr.bf16.mxu1 %v3793_v60  ;;  %v572_v24 = vrot.slane %v571_v18, 1  ;;  %v368_v57 = vld [vmem:[%s5571_s4 + $0x10] sm:$0xff]  ;;  %v370_v60 = vld [vmem:[%s5571_s4 + $0x20] sm:$0xff] }
  0x28   : > { %v557_v16 = vadd.f32 %v556_v9, %v555_v3  ;;  %v565_v21 = vadd.f32 %v564_v17, %v563_v10  ;;  %v4904_v59 = vpack.c.bf16 %v369_v58, %v368_v57  ;;  %v4916_v62 = vpack.c.bf16 %v371_v61, %v370_v60  ;;  %v374_v2 = vld [vmem:[%s5571_s4 + $0x40] sm:$0xff]  ;;  %v375_v3 = vld [vmem:[%s5571_s4 + $0x48] sm:$0xff] }
  0x29   : > { %v550_v15 = vmul.f32 0.0625, %v549_v8  ;;  %v573_v29 = vadd.f32 %v572_v24, %v571_v18  ;;  %v4940_v4 = vpack.c.bf16 %v375_v3, %v374_v2  ;;  %v378_v9 = vld [vmem:[%s5571_s4 + $0x60] sm:$0xff]  ;;  %v379_v10 = vld [vmem:[%s5571_s4 + $0x68] sm:$0xff] }
  0x2a   : > { %3796 = vmatpush1.bf16.msra.mxu0 %v3795_v6  ;;  %v558_v20 = vmul.f32 0.0625, %v557_v16  ;;  %3828 = vmatpush1.bf16.msra.mxu1 %v3795_v6  ;;  %v566_v25 = vmul.f32 0.0625, %v565_v21  ;;  %v377_v6 = vld [vmem:[%s5571_s4 + $0x58] sm:$0xff]  ;;  %v581_v18 = vld [vmem:[%s5574_s7] sm:$0x3] }
  0x2b   : > { %3798 = vmatprep.subr.bf16.mxu0 %v3797_v11  ;;  %3830 = vmatprep.subr.bf16.mxu1 %v3797_v11  ;;  %v574_v37 = vmul.f32 0.0625, %v573_v29  ;;  %v4952_v8 = vpack.c.bf16 %v377_v6, %v376_v5  ;;  %v4964_v11 = vpack.c.bf16 %v379_v10, %v378_v9  ;;  %v757_v29 = vld [vmem:[%s5573_s6] sm:$0xff] }
  0x2c   : > { %v576_v28 = vsel %vm575_vm0, %v550_v15, %v558_v20  ;;  %v583_v15 = vlaneseq }
  0x2d   : > { %v578_v31 = vsel %vm577_vm1, %v576_v28, %v566_v25 }
  0x2e   : > { %3800 = vmatpush1.bf16.msra.mxu0 %v3799_v19  ;;  %3832 = vmatpush1.bf16.msra.mxu1 %v3799_v19  ;;  %v580_v38 = vsel %vm579_vm2, %v578_v31, %v574_v37  ;;  %v584_v16 = vshrl.u32 %v583_v15, 7 }
  0x2f   : > { %3833 = vmatprep.subr.bf16.mxu0 %v4564_v32 }
  0x30   : > { %v589_v17 = vsub.s32 1, %v584_v16 }
  0x31   : > { %495 = vmatmul.mubr.f32.vlgmr.msra.gmra.mrb[0].mxu0 %v4734_v26  ;;  %658 = vmatmul.mubr.f32.vlgmr.msra.gmra.mrb[0].mxu1 %v580_v38  ;;  %v3840_v26 = vpack.c.bf16 %v669_v43, %v668_v42 }
  0x32   : > { %3835 = vmatpush3.bf16.msra.mxu0 %v3834_v30  ;;  %500 = vmatprep.mubr.f32.mxu0 %v4563_v7  ;;  %v590_v20 = vrot.slane %v581_v18, %v589_v17 }
  0x33   : > { %3836 = vmatprep.subr.bf16.mxu0 %v4564_v32 }
  0x35   : > { %501 = vmatmul.mubr.f32.gmra.mrb[2].mxu0 %v4737_v27  ;;  %v3843_v27 = vpack.c.bf16 %v671_v46, %v670_v44 }
  0x36   : > { %3838 = vmatpush3.bf16.msra.mxu0 %v3837_v41  ;;  %506 = vmatprep.mubr.f32.mxu0 %v4563_v7 }
  0x37   : > { %3839 = vmatprep.subr.bf16.mxu0 %v4564_v32 }
  0x39   : > { %507 = vmatmul.mubr.f32.gmra.mrb[4].mxu0 %v4748_v33  ;;  %v3846_v33 = vpack.c.bf16 %v673_v48, %v672_v47  ;;  %v5005_v47 = vsub.s32 0, %v584_v16 }
  0x3a   : > { %3841 = vmatpush3.bf16.msra.mxu0 %v3840_v26  ;;  %512 = vmatprep.mubr.f32.mxu0 %v4563_v7 }
  0x3b   : > { %3842 = vmatprep.subr.bf16.mxu0 %v4564_v32 }
  0x3d   : > { %513 = vmatmul.mubr.f32.gmra.mrb[6].mxu0 %v4751_v34  ;;  %v3849_v34 = vpack.c.bf16 %v675_v51, %v674_v50  ;;  %v586_v51 = vrot.slane %v581_v18, %v5005_v47  ;;  %v383_v18 = vld [vmem:[%s5572_s5 + $0x8] sm:$0xff] }
  0x3e   : > { %3844 = vmatpush3.bf16.msra.mxu0 %v3843_v27  ;;  %518 = vmatprep.mubr.f32.mxu0 %v4563_v7 }
  0x3f   : > { %3845 = vmatprep.subr.bf16.mxu0 %v4564_v32 }
  0x41   : > { %519 = vmatmul.mubr.f32.gmra.mrb[8].mxu0 %v4762_v39  ;;  %v3852_v39 = vpack.c.bf16 %v677_v53, %v676_v52 }
  0x42   : > { %3847 = vmatpush3.bf16.msra.mxu0 %v3846_v33  ;;  %524 = vmatprep.mubr.f32.mxu0 %v4563_v7 }
  0x43   : > { %3848 = vmatprep.subr.bf16.mxu0 %v4564_v32 }
  0x45   : > { %525 = vmatmul.mubr.f32.gmra.mrb[10].mxu0 %v4765_v40  ;;  %v3855_v40 = vpack.c.bf16 %v679_v55, %v678_v54  ;;  %v1598_v55 = vsub.s32 2, %v584_v16 }
  0x46   : > { %3850 = vmatpush3.bf16.msra.mxu0 %v3849_v34  ;;  %530 = vmatprep.mubr.f32.mxu0 %v4563_v7 }
  0x47   : > { %3851 = vmatprep.subr.bf16.mxu0 %v4564_v32 }
  0x49   : > { %531 = vmatmul.mubr.f32.gmra.mrb[12].mxu0 %v4770_v45  ;;  %v366_v45 = vld [vmem:[%s5571_s4] sm:$0xff] }
  0x4a   : > { %3853 = vmatpush3.bf16.msra.mxu0 %v3852_v39  ;;  %536 = vmatprep.mubr.f32.mxu0 %v4563_v7  ;;  %v2610_v39 = vld [vmem:[%s5575_s8] ss:$0 sm:$0xff] }
  0x4b   : > { %3854 = vmatprep.subr.bf16.mxu0 %v4564_v32 }
  0x4d   : > { %537 = vmatmul.mubr.f32.gmra.mrb[14].mxu0 %v4779_v49  ;;  %v4892_v49 = vpack.c.bf16 %v367_v56, %v366_v45  ;;  %v2014_v45 = vsub.s32 3, %v584_v16 }
  0x4e   : > { %3856 = vmatpush3.bf16.msra.mxu0 %v3855_v40  ;;  %3031 = vmatprep.mubr.msk.f32.mxu0 %vm4565_vm3, %v4563_v7 }
  0x4f   : > { %3889 = vmatprep.subr.bf16.mxu0 %v4564_v32  ;;  %3858 = vmatprep.subr.bf16.mxu1 %v4892_v49 }
  0x50   : > { %3860 = vmatpush3.bf16.msra.mxu1 %v4892_v49 }
  0x51   : > { %3032 = vmatmul.mubr.f32.vlgmr.msra.gmra.mrb[16].mxu0 %v580_v38  ;;  %3862 = vmatprep.subr.bf16.mxu1 %v4904_v59 }
  0x52   : > { %3101 = vmatprep.mubr.msk.f32.mxu0 %vm4565_vm3, %v4563_v7  ;;  %3891 = vmatpush3.bf16.msra.mxu0 %v4892_v49 }
  0x53   : > { %3892 = vmatprep.subr.bf16.mxu0 %v4564_v32 }
  0x54   : > { %3864 = vmatpush3.bf16.msra.mxu1 %v4904_v59 }
  0x55   : > { %3866 = vmatprep.subr.bf16.mxu1 %v4916_v62 }
  0x56   : > { %3894 = vmatpush3.bf16.msra.mxu0 %v4904_v59 }
  0x57   : > { %3895 = vmatprep.subr.bf16.mxu0 %v4564_v32 }
  0x58   : > { %3868 = vmatpush3.bf16.msra.mxu1 %v4916_v62 }
  0x59   : > { %3870 = vmatprep.subr.bf16.mxu1 %v4928_v1 }
  0x5a   : > { %3897 = vmatpush3.bf16.msra.mxu0 %v4916_v62 }
  0x5b   : > { %3898 = vmatprep.subr.bf16.mxu0 %v4564_v32 }
  0x5c   : > { %3872 = vmatpush3.bf16.msra.mxu1 %v4928_v1 }
  0x5d   : > { %3874 = vmatprep.subr.bf16.mxu1 %v4940_v4 }
  0x5e   : > { %3900 = vmatpush3.bf16.msra.mxu0 %v4928_v1 }
  0x5f   : > { %3901 = vmatprep.subr.bf16.mxu0 %v4564_v32 }
  0x60   : > { %3876 = vmatpush3.bf16.msra.mxu1 %v4940_v4 }
  0x61   : > { %3878 = vmatprep.subr.bf16.mxu1 %v4952_v8 }
  0x62   : > { %3903 = vmatpush3.bf16.msra.mxu0 %v4940_v4 }
  0x63   : > { %3904 = vmatprep.subr.bf16.mxu0 %v4564_v32 }
  0x64   : > { %3880 = vmatpush3.bf16.msra.mxu1 %v4952_v8 }
  0x65   : > { %3882 = vmatprep.subr.bf16.mxu1 %v4964_v11 }
  0x66   : > { %3906 = vmatpush3.bf16.msra.mxu0 %v4952_v8 }
  0x67   : > { %3907 = vmatprep.subr.bf16.mxu0 %v4564_v32 }
  0x68   : > { %3884 = vmatpush3.bf16.msra.mxu1 %v4964_v11 }
  0x69   : > { %3886 = vmatprep.subr.bf16.mxu1 %v4976_v14 }
  0x6a   : > { %3909 = vmatpush3.bf16.msra.mxu0 %v4964_v11 }
  0x6b   : > { %3910 = vmatprep.subr.bf16.mxu0 %v4564_v32 }
  0x6c   : > { %3888 = vmatpush3.bf16.msra.mxu1 %v4976_v14 }
  0x6e   : > { %3912 = vmatpush3.bf16.msra.mxu0 %v4976_v14 }
  0x6f   : > { %3945 = vmatprep.subr.bf16.mxu0 %v4564_v32 }
 0x104   : > { %v496_v19 = vpop.f32.mrb[0].mxu0  ;;  %v659_v22 = vpop.f32.mrb[0].mxu1 }
 0x105   : > { %v4985_v21 = vpop.f32.mrb[1].mxu0  ;;  %v661_v23 = vpop.f32.mrb[1].mxu1  ;;  %v660_v54 = vadd.f32 %v659_v22, %v586_v51  ;;  %v761_v58 = vadd.f32 %v757_v29, %v496_v19  ;;  %v385_v22 = vld [vmem:[%s5572_s5 + $0x18] sm:$0xff]  ;;  %v395_v51 = vld [vmem:[%s5572_s5 + $0x68] sm:$0xff] }
 0x106   : > { %v4987_v25 = vadd.f32 %v661_v23, %v590_v20  ;;  %v384_v20 = vld [vmem:[%s5572_s5 + $0x10] sm:$0xff] }
 0x107   : > { %v5051_v23 = vpack.c.bf16 %v385_v22, %v384_v20 }
 0x108   : > { %v502_v24 = vpop.f32.mrb[2].mxu0 }
 0x109   : > { %v4989_v28 = vpop.f32.mrb[3].mxu0  ;;  %v763_v60 = vadd.f32 %v759_v36, %v502_v24  ;;  %v386_v24 = vld [vmem:[%s5572_s5 + $0x20] sm:$0xff] }
 0x10c   : > { %v508_v30 = vpop.f32.mrb[4].mxu0 }
 0x10d   : > { %v1174_v31 = vadd.f32 %v757_v29, %v508_v30  ;;  %v4994_v35 = vpop.f32.mrb[5].mxu0 }
 0x110   : > { %v514_v37 = vpop.f32.mrb[6].mxu0 }
 0x111   : > { %v1176_v38 = vadd.f32 %v759_v36, %v514_v37  ;;  %v4999_v41 = vpop.f32.mrb[7].mxu0 }
 0x114   : > { %v520_v42 = vpop.f32.mrb[8].mxu0 }
 0x115   : > { %v1592_v43 = vadd.f32 %v757_v29, %v520_v42  ;;  %v5001_v26 = vpop.f32.mrb[9].mxu0  ;;  %v391_v42 = vld [vmem:[%s5572_s5 + $0x48] sm:$0xff] }
 0x118   : > { %v526_v44 = vpop.f32.mrb[10].mxu0 }
 0x119   : > { %v1594_v46 = vadd.f32 %v759_v36, %v526_v44  ;;  %v5003_v27 = vpop.f32.mrb[11].mxu0  ;;  %v392_v44 = vld [vmem:[%s5572_s5 + $0x50] sm:$0xff] }
 0x11c   : > { %v532_v48 = vpop.f32.mrb[12].mxu0 }
 0x11d   : > { %v2008_v33 = vadd.f32 %v757_v29, %v532_v48  ;;  %v5007_v50 = vpop.f32.mrb[13].mxu0  ;;  %v387_v29 = vld [vmem:[%s5572_s5 + $0x28] sm:$0xff] }
 0x11e   : > { %v5063_v30 = vpack.c.bf16 %v387_v29, %v386_v24 }
 0x120   : > { %v538_v34 = vpop.f32.mrb[14].mxu0 }
 0x121   : > { %v2010_v52 = vadd.f32 %v759_v36, %v538_v34  ;;  %v5010_v53 = vpop.f32.mrb[15].mxu0  ;;  %v389_v36 = vld [vmem:[%s5572_s5 + $0x38] sm:$0xff] }
 0x124   : > { %v753_v40 = vpop.f32.mrb[16].mxu0 }
 0x125   : > { %v754_v56 = vadd.f32 %v2610_v39, %v753_v40  ;;  %v3033_v57 = vpop.f32.mrb[17].mxu0  ;;  %v397_v39 = vld [vmem:[%s5572_s5 + $0x78] sm:$0xff] }
 0x127   : > { %v5015_v61 = vmul.f32 %v754_v56, %v660_v54  ;;  %v768_v63 = vrot.slane %v754_v56, %v5005_v47  ;;  %v1181_v0 = vrot.slane %v754_v56, %v589_v17  ;;  %v1599_v2 = vrot.slane %v754_v56, %v1598_v55  ;;  %v382_v17 = vld [vmem:[%s5572_s5] sm:$0xff] }
 0x128   : > { %v2015_v3 = vrot.slane %v754_v56, %v2014_v45  ;;  %v5039_v19 = vpack.c.bf16 %v383_v18, %v382_v17 }
 0x129   : > { %3102 = vmatmul.mubr.f32.vlgmr.msra.gmra.mrb[18].mxu0 %v5015_v61  ;;  %v769_v5 = vmul.f32 %v768_v63, %v761_v58  ;;  %v770_v6 = vmul.f32 %v768_v63, %v763_v60  ;;  %v5019_v9 = vmul.f32 %v1181_v0, %v1174_v31  ;;  %v5021_v10 = vmul.f32 %v1181_v0, %v1176_v38  ;;  %v388_v31 = vld [vmem:[%s5572_s5 + $0x30] sm:$0xff]  ;;  %v390_v38 = vld [vmem:[%s5572_s5 + $0x40] sm:$0xff] }
 0x12a   : > { %3171 = vmatprep.mubr.msk.f32.mxu0 %vm4565_vm3, %v4563_v7  ;;  %v5025_v12 = vmul.f32 %v1599_v2, %v1592_v43  ;;  %v5027_v13 = vmul.f32 %v1599_v2, %v1594_v46  ;;  %v5029_v15 = vmul.f32 %v2015_v3, %v2008_v33  ;;  %v5031_v16 = vmul.f32 %v2015_v3, %v2010_v52  ;;  %v393_v46 = vld [vmem:[%s5572_s5 + $0x58] sm:$0xff]  ;;  %v394_v33 = vld [vmem:[%s5572_s5 + $0x60] sm:$0xff]  ;;  %v396_v52 = vld [vmem:[%s5572_s5 + $0x70] sm:$0xff] }
 0x12b   : > { %3066 = vmatprep.mubr.f32.mxu1 %v769_v5  ;;  %3947 = vmatpush3.bf16.msra.mxu0 %v5039_v19  ;;  %v5075_v37 = vpack.c.bf16 %v389_v36, %v388_v31  ;;  %v5087_v43 = vpack.c.bf16 %v391_v42, %v390_v38  ;;  %v5099_v48 = vpack.c.bf16 %v393_v46, %v392_v44 }
 0x12c   : > { %3067 = vmatmul.mubr.f32.vlgmr.msra.gmra.mrb[2].mxu1 %v770_v6  ;;  %3914 = vmatprep.subr.bf16.mxu1 %v5039_v19  ;;  %v5111_v34 = vpack.c.bf16 %v395_v51, %v394_v33  ;;  %v5123_v54 = vpack.c.bf16 %v397_v39, %v396_v52 }
 0x12d   : > { %3916 = vmatpush3.bf16.msra.mxu1 %v5039_v19  ;;  %3948 = vmatprep.subr.bf16.mxu0 %v4564_v32 }
 0x12e   : > { %3918 = vmatprep.subr.bf16.mxu1 %v5051_v23 }
 0x12f   : > { %3950 = vmatpush3.bf16.msra.mxu0 %v5051_v23 }
 0x130   : > { %3951 = vmatprep.subr.bf16.mxu0 %v4564_v32 }
 0x131   : > { %3920 = vmatpush3.bf16.msra.mxu1 %v5051_v23 }
 0x132   : > { %3922 = vmatprep.subr.bf16.mxu1 %v5063_v30 }
 0x133   : > { %3953 = vmatpush3.bf16.msra.mxu0 %v5063_v30 }
 0x134   : > { %3954 = vmatprep.subr.bf16.mxu0 %v4564_v32 }
 0x135   : > { %3924 = vmatpush3.bf16.msra.mxu1 %v5063_v30 }
 0x136   : > { %3926 = vmatprep.subr.bf16.mxu1 %v5075_v37 }
 0x137   : > { %3956 = vmatpush3.bf16.msra.mxu0 %v5075_v37 }
 0x138   : > { %3957 = vmatprep.subr.bf16.mxu0 %v4564_v32 }
 0x139   : > { %3928 = vmatpush3.bf16.msra.mxu1 %v5075_v37 }
 0x13a   : > { %3930 = vmatprep.subr.bf16.mxu1 %v5087_v43 }
 0x13b   : > { %3959 = vmatpush3.bf16.msra.mxu0 %v5087_v43 }
 0x13c   : > { %3960 = vmatprep.subr.bf16.mxu0 %v4564_v32 }
 0x13d   : > { %3932 = vmatpush3.bf16.msra.mxu1 %v5087_v43 }
 0x13e   : > { %3934 = vmatprep.subr.bf16.mxu1 %v5099_v48 }
 0x13f   : > { %3962 = vmatpush3.bf16.msra.mxu0 %v5099_v48 }
 0x140   : > { %3963 = vmatprep.subr.bf16.mxu0 %v4564_v32 }
 0x141   : > { %3936 = vmatpush3.bf16.msra.mxu1 %v5099_v48 }
 0x142   : > { %3938 = vmatprep.subr.bf16.mxu1 %v5111_v34 }
 0x143   : > { %3965 = vmatpush3.bf16.msra.mxu0 %v5111_v34 }
 0x144   : > { %3966 = vmatprep.subr.bf16.mxu0 %v4564_v32 }
 0x145   : > { %3940 = vmatpush3.bf16.msra.mxu1 %v5111_v34 }
 0x146   : > { %3942 = vmatprep.subr.bf16.mxu1 %v5123_v54 }
 0x147   : > { %3968 = vmatpush3.bf16.msra.mxu0 %v5123_v54 }
 0x148   : > { %3994 = vmatprep.subr.bf16.mxu0 %v4892_v49 }
 0x149   : > { %3944 = vmatpush3.bf16.msra.mxu1 %v5123_v54 }
 0x14a   : > { %3969 = vmatprep.subr.bf16.mxu1 %v4564_v32 }
 0x1fc   : > { %v913_v55 = vpop.f32.mrb[18].mxu0 }
 0x1fd   : > { %v3103_v40 = vpop.f32.mrb[19].mxu0 }
 0x1fe   : > { %v5223_v40 = vld [vmem:[%s5573_s6 + $0x18] sm:$0xff] }
 0x1ff   : > { %v3068_v45 = vpop.f32.mrb[2].mxu1 }
 0x200   : > { %v837_v56 = vpop.f32.mrb[3].mxu1 }
 0x201   : > { %v917_v57 = vmax.f32 %v837_v56, %v3068_v45 }
 0x203   : > { %v918_v58 = vrot.slane %v917_v57, 4 }
 0x205   : > { %v919_v60 = vmax.f32 %v917_v57, %v918_v58 }
 0x207   : > { %v920_v63 = vrot.slane %v919_v60, 2 }
 0x209   : > { %v921_v0 = vmax.f32 %v919_v60, %v920_v63  ;;  %v764_v60 = vadd.f32 %v5223_v40, %v4989_v28 }
 0x20b   : > { %v922_v2 = vrot.slane %v921_v0, 1 }
 0x20d   : > { %v923_v3 = vmax.f32 %v921_v0, %v922_v2 }
 0x20f   : > { %v924_v5 = vmax.f32 %v923_v3, %v913_v55 }
 0x211   : > { %v928_v6 = vrot.slane %v924_v5, %v5005_v47  ;;  %v935_v17 = vsub.f32 %v913_v55, %v924_v5 }
 0x213   : > { %v929_v18 = vsub.f32 %v837_v56, %v928_v6  ;;  %v930_v20 = vsub.f32 %v3068_v45, %v928_v6  ;;  %v936_v22 = vmul.f32 1.442695, %v935_v17  ;;  %v5228_v45 = vld [vmem:[%s5573_s6 + $0x8] sm:$0xff] }
 0x214   : > { %v762_v63 = vadd.f32 %v5228_v45, %v4985_v21 }
 0x215   : > { %v931_v24 = vmul.f32 1.442695, %v929_v18  ;;  %v933_v29 = vmul.f32 1.442695, %v930_v20  ;;  %4467 = vpow2.f32 %v936_v22 }
 0x217   : > { %4469 = vpow2.f32 %v931_v24 }
 0x218   : > { %4471 = vpow2.f32 %v933_v29 }
 0x21f   : > { %v4468_v31 = vpop.eup %4467 }
 0x220   : > { %3172 = vmatmul.mubr.f32.vlgmr.msra.gmra.mrb[20].mxu0 %v4468_v31 }
 0x221   : > { %v4470_v36 = vpop.eup %4469  ;;  %3996 = vmatpush3.bf16.msra.mxu0 %v4892_v49  ;;  %3241 = vmatprep.mubr.f32.mxu0 %v5019_v9 }
 0x222   : > { %v4472_v38 = vpop.eup %4471  ;;  %3136 = vmatprep.mubr.f32.mxu1 %v4470_v36  ;;  %3998 = vmatprep.subr.bf16.mxu0 %v4904_v59 }
 0x223   : > { %v938_v42 = vadd.f32 %v4472_v38, %v4470_v36  ;;  %3137 = vmatmul.mubr.f32.vlgmr.msra.gmra.mrb[4].mxu1 %v4472_v38 }
 0x224   : > { %3971 = vmatpush3.bf16.msra.mxu1 %v5039_v19  ;;  %3206 = vmatprep.mubr.msk.f32.mxu1 %vm4565_vm3, %v4563_v7 }
 0x225   : > { %v939_v44 = vrot.slane %v938_v42, 4  ;;  %4000 = vmatpush3.bf16.msra.mxu0 %v4904_v59  ;;  %3972 = vmatprep.subr.bf16.mxu1 %v4564_v32 }
 0x226   : > { %4002 = vmatprep.subr.bf16.mxu0 %v4916_v62 }
 0x227   : > { %v940_v46 = vadd.f32 %v939_v44, %v938_v42 }
 0x228   : > { %3974 = vmatpush3.bf16.msra.mxu1 %v5051_v23 }
 0x229   : > { %v941_v9 = vrot.slane %v940_v46, 2  ;;  %4004 = vmatpush3.bf16.msra.mxu0 %v4916_v62  ;;  %3975 = vmatprep.subr.bf16.mxu1 %v4564_v32 }
 0x22a   : > { %4006 = vmatprep.subr.bf16.mxu0 %v4928_v1 }
 0x22b   : > { %v942_v33 = vadd.f32 %v941_v9, %v940_v46 }
 0x22c   : > { %3977 = vmatpush3.bf16.msra.mxu1 %v5063_v30 }
 0x22d   : > { %v943_v51 = vrot.slane %v942_v33, 1  ;;  %4008 = vmatpush3.bf16.msra.mxu0 %v4928_v1  ;;  %3978 = vmatprep.subr.bf16.mxu1 %v4564_v32 }
 0x22e   : > { %4010 = vmatprep.subr.bf16.mxu0 %v4940_v4 }
 0x22f   : > { %v944_v52 = vadd.f32 %v943_v51, %v942_v33 }
 0x230   : > { %3980 = vmatpush3.bf16.msra.mxu1 %v5075_v37 }
 0x231   : > { %v945_v39 = vadd.f32 %v4468_v31, %v944_v52  ;;  %4012 = vmatpush3.bf16.msra.mxu0 %v4940_v4  ;;  %3981 = vmatprep.subr.bf16.mxu1 %v4564_v32 }
 0x232   : > { %4014 = vmatprep.subr.bf16.mxu0 %v4952_v8 }
 0x233   : > { %4473 = vrcp.f32 %v945_v39 }
 0x234   : > { %3983 = vmatpush3.bf16.msra.mxu1 %v5087_v43 }
 0x235   : > { %4016 = vmatpush3.bf16.msra.mxu0 %v4952_v8  ;;  %3984 = vmatprep.subr.bf16.mxu1 %v4564_v32 }
 0x236   : > { %4018 = vmatprep.subr.bf16.mxu0 %v4964_v11 }
 0x238   : > { %3986 = vmatpush3.bf16.msra.mxu1 %v5099_v48 }
 0x239   : > { %4020 = vmatpush3.bf16.msra.mxu0 %v4964_v11  ;;  %3987 = vmatprep.subr.bf16.mxu1 %v4564_v32 }
 0x23a   : > { %4022 = vmatprep.subr.bf16.mxu0 %v4976_v14 }
 0x23c   : > { %3989 = vmatpush3.bf16.msra.mxu1 %v5111_v34 }
 0x23d   : > { %4024 = vmatpush3.bf16.msra.mxu0 %v4976_v14  ;;  %3990 = vmatprep.subr.bf16.mxu1 %v4564_v32  ;;  %v4474_v55 = vpop.eup %4473 }
 0x23e   : > { %4050 = vmatprep.subr.bf16.mxu0 %v5039_v19 }
 0x240   : > { %3992 = vmatpush3.bf16.msra.mxu1 %v5123_v54  ;;  %3242 = vmatmul.mubr.f32.vlgmr.msra.gmra.mrb[22].mxu0 %v5021_v10  ;;  %v1260_v10 = vrot.slane %v5015_v61, 1 }
 0x241   : > { %4025 = vmatprep.subr.bf16.mxu1 %v4564_v32  ;;  %4052 = vmatpush3.bf16.msra.mxu0 %v5039_v19 }
 0x242   : > { %4054 = vmatprep.subr.bf16.mxu0 %v5051_v23 }
 0x243   : > { %3207 = vmatmul.mubr.f32.vlgmr.msra.gmra.mrb[6].mxu1 %v4474_v55 }
 0x244   : > { %4027 = vmatpush3.bf16.msra.mxu1 %v4892_v49  ;;  %3276 = vmatprep.mubr.msk.f32.mxu1 %vm4565_vm3, %v4563_v7 }
 0x245   : > { %4028 = vmatprep.subr.bf16.mxu1 %v4564_v32  ;;  %4056 = vmatpush3.bf16.msra.mxu0 %v5051_v23 }
 0x246   : > { %4058 = vmatprep.subr.bf16.mxu0 %v5063_v30 }
 0x248   : > { %4030 = vmatpush3.bf16.msra.mxu1 %v4904_v59 }
 0x249   : > { %4031 = vmatprep.subr.bf16.mxu1 %v4564_v32  ;;  %4060 = vmatpush3.bf16.msra.mxu0 %v5063_v30 }
 0x24a   : > { %4062 = vmatprep.subr.bf16.mxu0 %v5075_v37 }
 0x24c   : > { %4033 = vmatpush3.bf16.msra.mxu1 %v4916_v62 }
 0x24d   : > { %4034 = vmatprep.subr.bf16.mxu1 %v4564_v32  ;;  %4064 = vmatpush3.bf16.msra.mxu0 %v5075_v37 }
 0x24e   : > { %4066 = vmatprep.subr.bf16.mxu0 %v5087_v43 }
 0x250   : > { %4036 = vmatpush3.bf16.msra.mxu1 %v4928_v1 }
 0x251   : > { %4037 = vmatprep.subr.bf16.mxu1 %v4564_v32  ;;  %4068 = vmatpush3.bf16.msra.mxu0 %v5087_v43 }
 0x252   : > { %4070 = vmatprep.subr.bf16.mxu0 %v5099_v48 }
 0x254   : > { %4039 = vmatpush3.bf16.msra.mxu1 %v4940_v4 }
 0x255   : > { %4040 = vmatprep.subr.bf16.mxu1 %v4564_v32  ;;  %4072 = vmatpush3.bf16.msra.mxu0 %v5099_v48 }
 0x256   : > { %4074 = vmatprep.subr.bf16.mxu0 %v5111_v34 }
 0x258   : > { %4042 = vmatpush3.bf16.msra.mxu1 %v4952_v8 }
 0x259   : > { %4043 = vmatprep.subr.bf16.mxu1 %v4564_v32  ;;  %4076 = vmatpush3.bf16.msra.mxu0 %v5111_v34 }
 0x25a   : > { %4078 = vmatprep.subr.bf16.mxu0 %v5123_v54 }
 0x25c   : > { %4045 = vmatpush3.bf16.msra.mxu1 %v4964_v11 }
 0x25d   : > { %4046 = vmatprep.subr.bf16.mxu1 %v4564_v32  ;;  %4080 = vmatpush3.bf16.msra.mxu0 %v5123_v54 }
 0x25e   : > { %4105 = vmatprep.subr.bf16.mxu0 %v4564_v32 }
 0x260   : > { %4048 = vmatpush3.bf16.msra.mxu1 %v4976_v14 }
 0x261   : > { %4081 = vmatprep.subr.bf16.mxu1 %v4564_v32 }
 0x263   : > { %3277 = vmatmul.mubr.f32.vlgmr.msra.gmra.mrb[8].mxu1 %v1260_v10 }
 0x264   : > { %4083 = vmatpush3.bf16.msra.mxu1 %v5039_v19  ;;  %3346 = vmatprep.mubr.msk.f32.mxu1 %vm4565_vm3, %v4563_v7 }
 0x265   : > { %4084 = vmatprep.subr.bf16.mxu1 %v4564_v32 }
 0x268   : > { %4086 = vmatpush3.bf16.msra.mxu1 %v5051_v23 }
 0x269   : > { %4087 = vmatprep.subr.bf16.mxu1 %v4564_v32 }
 0x26c   : > { %4089 = vmatpush3.bf16.msra.mxu1 %v5063_v30 }
 0x26d   : > { %4090 = vmatprep.subr.bf16.mxu1 %v4564_v32 }
 0x270   : > { %4092 = vmatpush3.bf16.msra.mxu1 %v5075_v37 }
 0x271   : > { %4093 = vmatprep.subr.bf16.mxu1 %v4564_v32 }
 0x274   : > { %4095 = vmatpush3.bf16.msra.mxu1 %v5087_v43 }
 0x275   : > { %4096 = vmatprep.subr.bf16.mxu1 %v4564_v32 }
 0x278   : > { %4098 = vmatpush3.bf16.msra.mxu1 %v5099_v48 }
 0x279   : > { %4099 = vmatprep.subr.bf16.mxu1 %v4564_v32 }
 0x27c   : > { %4101 = vmatpush3.bf16.msra.mxu1 %v5111_v34 }
 0x27d   : > { %4102 = vmatprep.subr.bf16.mxu1 %v4564_v32 }
 0x280   : > { %4104 = vmatpush3.bf16.msra.mxu1 %v5123_v54 }
 0x281   : > { %4130 = vmatprep.subr.bf16.mxu1 %v4892_v49 }
 0x2f3   : > { %v1088_v56 = vpop.f32.mrb[20].mxu0 }
 0x2f4   : > { %v1171_v57 = vmul.f32 %v1088_v56, %v4987_v25  ;;  %v3173_v58 = vpop.f32.mrb[21].mxu0 }
 0x2f6   : > { %v3138_v0 = vpop.f32.mrb[4].mxu1 }
 0x2f7   : > { %v1163_v2 = vmul.f32 %v3138_v0, %v764_v60  ;;  %v1013_v3 = vpop.f32.mrb[5].mxu1 }
 0x2f8   : > { %v1162_v5 = vmul.f32 %v1013_v3, %v762_v63 }
 0x2fa   : > { %v1164_v6 = vadd.f32 %v1163_v2, %v1162_v5 }
 0x2fc   : > { %v1165_v17 = vrot.slane %v1164_v6, 4 }
 0x2fe   : > { %v1166_v18 = vadd.f32 %v1165_v17, %v1164_v6 }
 0x300   : > { %v1167_v20 = vrot.slane %v1166_v18, 2 }
 0x302   : > { %v1168_v22 = vadd.f32 %v1167_v20, %v1166_v18 }
 0x304   : > { %v1169_v24 = vrot.slane %v1168_v22, 1 }
 0x306   : > { %v1170_v29 = vadd.f32 %v1169_v24, %v1168_v22 }
 0x308   : > { %v1172_v31 = vadd.f32 %v1171_v57, %v1170_v29 }
 0x313   : > { %v3243_v36 = vpop.f32.mrb[22].mxu0 }
 0x314   : > { %v1250_v38 = vpop.f32.mrb[23].mxu0 }
 0x315   : > { %v1332_v42 = vmax.f32 %v1250_v38, %v3243_v36 }
 0x316   : > { %v1158_v44 = vpop.f32.mrb[6].mxu1 }
 0x317   : > { %v5235_v28 = vmul.f32 %v1172_v31, %v1158_v44  ;;  %v3208_v46 = vpop.f32.mrb[7].mxu1  ;;  %v1333_v21 = vrot.slane %v1332_v42, 4 }
 0x319   : > { %v1334_v9 = vmax.f32 %v1332_v42, %v1333_v21  ;;  %v1587_v42 = vrot.slane %v4987_v25, 1 }
 0x31b   : > { %v1335_v33 = vrot.slane %v1334_v9, 2 }
 0x31d   : > { %v1336_v51 = vmax.f32 %v1334_v9, %v1335_v33  ;;  %v1177_v9 = vadd.f32 %v5223_v40, %v4999_v41  ;;  %v1175_v33 = vadd.f32 %v5228_v45, %v4994_v35 }
 0x31f   : > { %v1337_v52 = vrot.slane %v1336_v51, 1 }
 0x321   : > { %v1338_v39 = vmax.f32 %v1336_v51, %v1337_v52 }
 0x336   : > { %v1328_v55 = vpop.f32.mrb[8].mxu1 }
 0x337   : > { %v1339_v10 = vmax.f32 %v1338_v39, %v1328_v55  ;;  %v3278_v56 = vpop.f32.mrb[9].mxu1 }
 0x339   : > { %v1343_v58 = vrot.slane %v1339_v10, %v5005_v47  ;;  %v1350_v60 = vsub.f32 %v1328_v55, %v1339_v10 }
 0x33b   : > { %v1344_v57 = vsub.f32 %v1250_v38, %v1343_v58  ;;  %v1345_v63 = vsub.f32 %v3243_v36, %v1343_v58  ;;  %v1351_v0 = vmul.f32 1.442695, %v1350_v60 }
 0x33d   : > { %v1346_v2 = vmul.f32 1.442695, %v1344_v57  ;;  %v1348_v3 = vmul.f32 1.442695, %v1345_v63  ;;  %4475 = vpow2.f32 %v1351_v0 }
 0x33f   : > { %4477 = vpow2.f32 %v1346_v2 }
 0x340   : > { %4479 = vpow2.f32 %v1348_v3 }
 0x347   : > { %v4476_v5 = vpop.eup %4475 }
 0x348   : > { %3347 = vmatmul.mubr.f32.vlgmr.msra.gmra.mrb[10].mxu1 %v4476_v5 }
 0x349   : > { %v4478_v6 = vpop.eup %4477  ;;  %4132 = vmatpush3.bf16.msra.mxu1 %v4892_v49  ;;  %3416 = vmatprep.mubr.f32.mxu1 %v5025_v12 }
 0x34a   : > { %v4480_v17 = vpop.eup %4479  ;;  %3311 = vmatprep.mubr.f32.mxu0 %v4478_v6  ;;  %4134 = vmatprep.subr.bf16.mxu1 %v4904_v59 }
 0x34b   : > { %v1353_v18 = vadd.f32 %v4480_v17, %v4478_v6  ;;  %3312 = vmatmul.mubr.f32.vlgmr.msra.gmra.mrb[24].mxu0 %v4480_v17 }
 0x34c   : > { %4107 = vmatpush3.bf16.msra.mxu0 %v5039_v19  ;;  %3381 = vmatprep.mubr.msk.f32.mxu0 %vm4565_vm3, %v4563_v7 }
 0x34d   : > { %v1354_v20 = vrot.slane %v1353_v18, 4  ;;  %4136 = vmatpush3.bf16.msra.mxu1 %v4904_v59  ;;  %4108 = vmatprep.subr.bf16.mxu0 %v4564_v32 }
 0x34e   : > { %4138 = vmatprep.subr.bf16.mxu1 %v4916_v62 }
 0x34f   : > { %v1355_v22 = vadd.f32 %v1354_v20, %v1353_v18 }
 0x350   : > { %4110 = vmatpush3.bf16.msra.mxu0 %v5051_v23 }
 0x351   : > { %v1356_v12 = vrot.slane %v1355_v22, 2  ;;  %4140 = vmatpush3.bf16.msra.mxu1 %v4916_v62  ;;  %4111 = vmatprep.subr.bf16.mxu0 %v4564_v32 }
 0x352   : > { %4142 = vmatprep.subr.bf16.mxu1 %v4928_v1 }
 0x353   : > { %v1357_v24 = vadd.f32 %v1356_v12, %v1355_v22 }
 0x354   : > { %4113 = vmatpush3.bf16.msra.mxu0 %v5063_v30 }
 0x355   : > { %v1358_v29 = vrot.slane %v1357_v24, 1  ;;  %4144 = vmatpush3.bf16.msra.mxu1 %v4928_v1  ;;  %4114 = vmatprep.subr.bf16.mxu0 %v4564_v32 }
 0x356   : > { %4146 = vmatprep.subr.bf16.mxu1 %v4940_v4 }
 0x357   : > { %v1359_v31 = vadd.f32 %v1358_v29, %v1357_v24 }
 0x358   : > { %4116 = vmatpush3.bf16.msra.mxu0 %v5075_v37 }
 0x359   : > { %v1360_v36 = vadd.f32 %v4476_v5, %v1359_v31  ;;  %4148 = vmatpush3.bf16.msra.mxu1 %v4940_v4  ;;  %4117 = vmatprep.subr.bf16.mxu0 %v4564_v32 }
 0x35a   : > { %4150 = vmatprep.subr.bf16.mxu1 %v4952_v8 }
 0x35b   : > { %4481 = vrcp.f32 %v1360_v36 }
 0x35c   : > { %4119 = vmatpush3.bf16.msra.mxu0 %v5087_v43 }
 0x35d   : > { %4152 = vmatpush3.bf16.msra.mxu1 %v4952_v8  ;;  %4120 = vmatprep.subr.bf16.mxu0 %v4564_v32 }
 0x35e   : > { %4154 = vmatprep.subr.bf16.mxu1 %v4964_v11 }
 0x360   : > { %4122 = vmatpush3.bf16.msra.mxu0 %v5099_v48 }
 0x361   : > { %4156 = vmatpush3.bf16.msra.mxu1 %v4964_v11  ;;  %4123 = vmatprep.subr.bf16.mxu0 %v4564_v32 }
 0x362   : > { %4158 = vmatprep.subr.bf16.mxu1 %v4976_v14 }
 0x364   : > { %4125 = vmatpush3.bf16.msra.mxu0 %v5111_v34 }
 0x365   : > { %4160 = vmatpush3.bf16.msra.mxu1 %v4976_v14  ;;  %4126 = vmatprep.subr.bf16.mxu0 %v4564_v32  ;;  %v4482_v38 = vpop.eup %4481 }
 0x366   : > { %4186 = vmatprep.subr.bf16.mxu1 %v5039_v19 }
 0x368   : > { %4128 = vmatpush3.bf16.msra.mxu0 %v5123_v54  ;;  %3417 = vmatmul.mubr.f32.vlgmr.msra.gmra.mrb[12].mxu1 %v5027_v13  ;;  %v1677_v13 = vrot.slane %v5015_v61, 2 }
 0x369   : > { %4161 = vmatprep.subr.bf16.mxu0 %v4564_v32  ;;  %4188 = vmatpush3.bf16.msra.mxu1 %v5039_v19 }
 0x36a   : > { %4190 = vmatprep.subr.bf16.mxu1 %v5051_v23 }
 0x36b   : > { %3382 = vmatmul.mubr.f32.vlgmr.msra.gmra.mrb[26].mxu0 %v4482_v38 }
 0x36c   : > { %4163 = vmatpush3.bf16.msra.mxu0 %v4892_v49  ;;  %3451 = vmatprep.mubr.msk.f32.mxu0 %vm4565_vm3, %v4563_v7 }
 0x36d   : > { %4164 = vmatprep.subr.bf16.mxu0 %v4564_v32  ;;  %4192 = vmatpush3.bf16.msra.mxu1 %v5051_v23 }
 0x36e   : > { %4194 = vmatprep.subr.bf16.mxu1 %v5063_v30 }
 0x370   : > { %4166 = vmatpush3.bf16.msra.mxu0 %v4904_v59 }
 0x371   : > { %4167 = vmatprep.subr.bf16.mxu0 %v4564_v32  ;;  %4196 = vmatpush3.bf16.msra.mxu1 %v5063_v30 }
 0x372   : > { %4198 = vmatprep.subr.bf16.mxu1 %v5075_v37 }
 0x374   : > { %4169 = vmatpush3.bf16.msra.mxu0 %v4916_v62 }
 0x375   : > { %4170 = vmatprep.subr.bf16.mxu0 %v4564_v32  ;;  %4200 = vmatpush3.bf16.msra.mxu1 %v5075_v37 }
 0x376   : > { %4202 = vmatprep.subr.bf16.mxu1 %v5087_v43 }
 0x378   : > { %4172 = vmatpush3.bf16.msra.mxu0 %v4928_v1 }
 0x379   : > { %4173 = vmatprep.subr.bf16.mxu0 %v4564_v32  ;;  %4204 = vmatpush3.bf16.msra.mxu1 %v5087_v43 }
 0x37a   : > { %4206 = vmatprep.subr.bf16.mxu1 %v5099_v48 }
 0x37c   : > { %4175 = vmatpush3.bf16.msra.mxu0 %v4940_v4 }
 0x37d   : > { %4176 = vmatprep.subr.bf16.mxu0 %v4564_v32  ;;  %4208 = vmatpush3.bf16.msra.mxu1 %v5099_v48 }
 0x37e   : > { %4210 = vmatprep.subr.bf16.mxu1 %v5111_v34 }
 0x380   : > { %4178 = vmatpush3.bf16.msra.mxu0 %v4952_v8 }
 0x381   : > { %4179 = vmatprep.subr.bf16.mxu0 %v4564_v32  ;;  %4212 = vmatpush3.bf16.msra.mxu1 %v5111_v34 }
 0x382   : > { %4214 = vmatprep.subr.bf16.mxu1 %v5123_v54 }
 0x384   : > { %4181 = vmatpush3.bf16.msra.mxu0 %v4964_v11 }
 0x385   : > { %4182 = vmatprep.subr.bf16.mxu0 %v4564_v32  ;;  %4216 = vmatpush3.bf16.msra.mxu1 %v5123_v54 }
 0x386   : > { %4241 = vmatprep.subr.bf16.mxu1 %v4564_v32 }
 0x388   : > { %4184 = vmatpush3.bf16.msra.mxu0 %v4976_v14 }
 0x389   : > { %4217 = vmatprep.subr.bf16.mxu0 %v4564_v32 }
 0x38b   : > { %3452 = vmatmul.mubr.f32.vlgmr.msra.gmra.mrb[28].mxu0 %v1677_v13 }
 0x38c   : > { %4219 = vmatpush3.bf16.msra.mxu0 %v5039_v19  ;;  %3521 = vmatprep.mubr.msk.f32.mxu0 %vm4565_vm3, %v4563_v7 }
 0x38d   : > { %4220 = vmatprep.subr.bf16.mxu0 %v4564_v32 }
 0x390   : > { %4222 = vmatpush3.bf16.msra.mxu0 %v5051_v23 }
 0x391   : > { %4223 = vmatprep.subr.bf16.mxu0 %v4564_v32 }
 0x394   : > { %4225 = vmatpush3.bf16.msra.mxu0 %v5063_v30 }
 0x395   : > { %4226 = vmatprep.subr.bf16.mxu0 %v4564_v32 }
 0x398   : > { %4228 = vmatpush3.bf16.msra.mxu0 %v5075_v37 }
 0x399   : > { %4229 = vmatprep.subr.bf16.mxu0 %v4564_v32 }
 0x39c   : > { %4231 = vmatpush3.bf16.msra.mxu0 %v5087_v43 }
 0x39d   : > { %4232 = vmatprep.subr.bf16.mxu0 %v4564_v32 }
 0x3a0   : > { %4234 = vmatpush3.bf16.msra.mxu0 %v5099_v48 }
 0x3a1   : > { %4235 = vmatprep.subr.bf16.mxu0 %v4564_v32 }
 0x3a4   : > { %4237 = vmatpush3.bf16.msra.mxu0 %v5111_v34 }
 0x3a5   : > { %4238 = vmatprep.subr.bf16.mxu0 %v4564_v32 }
 0x3a8   : > { %4240 = vmatpush3.bf16.msra.mxu0 %v5123_v54 }
 0x3a9   : > { %4266 = vmatprep.subr.bf16.mxu0 %v4892_v49 }
 0x41b   : > { %v1503_v44 = vpop.f32.mrb[10].mxu1 }
 0x41c   : > { %v1589_v46 = vmul.f32 %v1587_v42, %v1503_v44  ;;  %v3348_v21 = vpop.f32.mrb[11].mxu1 }
 0x41e   : > { %v3313_v51 = vpop.f32.mrb[24].mxu0 }
 0x41f   : > { %v1578_v52 = vmul.f32 %v3313_v51, %v1177_v9  ;;  %v1428_v39 = vpop.f32.mrb[25].mxu0 }
 0x420   : > { %v1577_v55 = vmul.f32 %v1428_v39, %v1175_v33 }
 0x422   : > { %v1579_v10 = vadd.f32 %v1578_v52, %v1577_v55 }
 0x424   : > { %v1580_v56 = vrot.slane %v1579_v10, 4 }
 0x426   : > { %v1581_v58 = vadd.f32 %v1580_v56, %v1579_v10 }
 0x428   : > { %v1582_v60 = vrot.slane %v1581_v58, 2 }
 0x42a   : > { %v1583_v57 = vadd.f32 %v1582_v60, %v1581_v58 }
 0x42c   : > { %v1584_v63 = vrot.slane %v1583_v57, 1 }
 0x42e   : > { %v1585_v0 = vadd.f32 %v1584_v63, %v1583_v57 }
 0x430   : > { %v1590_v2 = vadd.f32 %v1589_v46, %v1585_v0 }
 0x43b   : > { %v3418_v3 = vpop.f32.mrb[12].mxu1 }
 0x43c   : > { %v1668_v5 = vpop.f32.mrb[13].mxu1 }
 0x43d   : > { %v1749_v6 = vmax.f32 %v1668_v5, %v3418_v3 }
 0x43e   : > { %v1573_v17 = vpop.f32.mrb[26].mxu0 }
 0x43f   : > { %v1591_v41 = vmul.f32 %v1590_v2, %v1573_v17  ;;  %v3383_v18 = vpop.f32.mrb[27].mxu0  ;;  %v1750_v22 = vrot.slane %v1749_v6, 4 }
 0x441   : > { %v2425_v20 = vrot.slane %v1591_v41, 7  ;;  %v1751_v12 = vmax.f32 %v1749_v6, %v1750_v22 }
 0x443   : > { %v5334_v35 = vsel %vm575_vm0, %v5235_v28, %v2425_v20  ;;  %v1752_v24 = vrot.slane %v1751_v12, 2 }
 0x445   : > { %v1753_v29 = vmax.f32 %v1751_v12, %v1752_v24 }
 0x447   : > { %v1754_v31 = vrot.slane %v1753_v29, 1 }
 0x449   : > { %v1755_v36 = vmax.f32 %v1753_v29, %v1754_v31 }
 0x45e   : > { %v1745_v38 = vpop.f32.mrb[28].mxu0 }
 0x45f   : > { %v1756_v13 = vmax.f32 %v1755_v36, %v1745_v38  ;;  %v3453_v42 = vpop.f32.mrb[29].mxu0 }
 0x461   : > { %v1760_v44 = vrot.slane %v1756_v13, %v5005_v47  ;;  %v1767_v46 = vsub.f32 %v1745_v38, %v1756_v13 }
 0x463   : > { %v1761_v21 = vsub.f32 %v1668_v5, %v1760_v44  ;;  %v1762_v9 = vsub.f32 %v3418_v3, %v1760_v44  ;;  %v1768_v33 = vmul.f32 1.442695, %v1767_v46 }
 0x465   : > { %v1763_v51 = vmul.f32 1.442695, %v1761_v21  ;;  %v1765_v52 = vmul.f32 1.442695, %v1762_v9  ;;  %4483 = vpow2.f32 %v1768_v33 }
 0x467   : > { %4485 = vpow2.f32 %v1763_v51 }
 0x468   : > { %4487 = vpow2.f32 %v1765_v52 }
 0x46f   : > { %v4484_v28 = vpop.eup %4483 }
 0x470   : > { %3522 = vmatmul.mubr.f32.vlgmr.msra.gmra.mrb[30].mxu0 %v4484_v28 }
 0x471   : > { %v4486_v39 = vpop.eup %4485  ;;  %4268 = vmatpush3.bf16.msra.mxu0 %v4892_v49  ;;  %3591 = vmatprep.mubr.f32.mxu0 %v5029_v15 }
 0x472   : > { %v4488_v55 = vpop.eup %4487  ;;  %3486 = vmatprep.mubr.f32.mxu1 %v4486_v39  ;;  %4270 = vmatprep.subr.bf16.mxu0 %v4904_v59 }
 0x473   : > { %v1770_v10 = vadd.f32 %v4488_v55, %v4486_v39  ;;  %3487 = vmatmul.mubr.f32.vlgmr.msra.gmra.mrb[14].mxu1 %v4488_v55 }
 0x474   : > { %4243 = vmatpush3.bf16.msra.mxu1 %v5039_v19  ;;  %3556 = vmatprep.mubr.msk.f32.mxu1 %vm4565_vm3, %v4563_v7 }
 0x475   : > { %v1771_v56 = vrot.slane %v1770_v10, 4  ;;  %4272 = vmatpush3.bf16.msra.mxu0 %v4904_v59  ;;  %4244 = vmatprep.subr.bf16.mxu1 %v4564_v32 }
 0x476   : > { %4274 = vmatprep.subr.bf16.mxu0 %v4916_v62 }
 0x477   : > { %v1772_v58 = vadd.f32 %v1771_v56, %v1770_v10 }
 0x478   : > { %4246 = vmatpush3.bf16.msra.mxu1 %v5051_v23 }
 0x479   : > { %v1773_v15 = vrot.slane %v1772_v58, 2  ;;  %4276 = vmatpush3.bf16.msra.mxu0 %v4916_v62  ;;  %4247 = vmatprep.subr.bf16.mxu1 %v4564_v32 }
 0x47a   : > { %4278 = vmatprep.subr.bf16.mxu0 %v4928_v1 }
 0x47b   : > { %v1774_v60 = vadd.f32 %v1773_v15, %v1772_v58 }
 0x47c   : > { %4249 = vmatpush3.bf16.msra.mxu1 %v5063_v30 }
 0x47d   : > { %v1775_v57 = vrot.slane %v1774_v60, 1  ;;  %4280 = vmatpush3.bf16.msra.mxu0 %v4928_v1  ;;  %4250 = vmatprep.subr.bf16.mxu1 %v4564_v32 }
 0x47e   : > { %4282 = vmatprep.subr.bf16.mxu0 %v4940_v4 }
 0x47f   : > { %v1776_v63 = vadd.f32 %v1775_v57, %v1774_v60 }
 0x480   : > { %4252 = vmatpush3.bf16.msra.mxu1 %v5075_v37 }
 0x481   : > { %v1777_v0 = vadd.f32 %v4484_v28, %v1776_v63  ;;  %4284 = vmatpush3.bf16.msra.mxu0 %v4940_v4  ;;  %4253 = vmatprep.subr.bf16.mxu1 %v4564_v32 }
 0x482   : > { %4286 = vmatprep.subr.bf16.mxu0 %v4952_v8 }
 0x483   : > { %4489 = vrcp.f32 %v1777_v0 }
 0x484   : > { %4255 = vmatpush3.bf16.msra.mxu1 %v5087_v43 }
 0x485   : > { %4288 = vmatpush3.bf16.msra.mxu0 %v4952_v8  ;;  %4256 = vmatprep.subr.bf16.mxu1 %v4564_v32 }
 0x486   : > { %4290 = vmatprep.subr.bf16.mxu0 %v4964_v11 }
 0x488   : > { %4258 = vmatpush3.bf16.msra.mxu1 %v5099_v48 }
 0x489   : > { %4292 = vmatpush3.bf16.msra.mxu0 %v4964_v11  ;;  %4259 = vmatprep.subr.bf16.mxu1 %v4564_v32 }
 0x48a   : > { %4294 = vmatprep.subr.bf16.mxu0 %v4976_v14 }
 0x48c   : > { %4261 = vmatpush3.bf16.msra.mxu1 %v5111_v34 }
 0x48d   : > { %4296 = vmatpush3.bf16.msra.mxu0 %v4976_v14  ;;  %4262 = vmatprep.subr.bf16.mxu1 %v4564_v32  ;;  %v4490_v2 = vpop.eup %4489 }
 0x48e   : > { %4322 = vmatprep.subr.bf16.mxu0 %v5039_v19 }
 0x490   : > { %4264 = vmatpush3.bf16.msra.mxu1 %v5123_v54  ;;  %3592 = vmatmul.mubr.f32.vlgmr.msra.gmra.mrb[32].mxu0 %v5031_v16 }
 0x491   : > { %4297 = vmatprep.subr.bf16.mxu1 %v4564_v32  ;;  %4324 = vmatpush3.bf16.msra.mxu0 %v5039_v19 }
 0x492   : > { %4326 = vmatprep.subr.bf16.mxu0 %v5051_v23 }
 0x493   : > { %3557 = vmatmul.mubr.f32.vlgmr.msra.gmra.mrb[16].mxu1 %v4490_v2 }
 0x494   : > { %4299 = vmatpush3.bf16.msra.mxu1 %v4892_v49  ;;  %3626 = vmatprep.mubr.msk.f32.mxu1 %vm4565_vm3, %v4563_v7  ;;  %v2093_v49 = vrot.slane %v5015_v61, 3 }
 0x495   : > { %4300 = vmatprep.subr.bf16.mxu1 %v4564_v32  ;;  %4328 = vmatpush3.bf16.msra.mxu0 %v5051_v23 }
 0x496   : > { %4330 = vmatprep.subr.bf16.mxu0 %v5063_v30 }
 0x498   : > { %4302 = vmatpush3.bf16.msra.mxu1 %v4904_v59  ;;  %v2003_v59 = vrot.slane %v4987_v25, 2 }
 0x499   : > { %4303 = vmatprep.subr.bf16.mxu1 %v4564_v32  ;;  %4332 = vmatpush3.bf16.msra.mxu0 %v5063_v30 }
 0x49a   : > { %4334 = vmatprep.subr.bf16.mxu0 %v5075_v37 }
 0x49c   : > { %4305 = vmatpush3.bf16.msra.mxu1 %v4916_v62 }
 0x49d   : > { %4306 = vmatprep.subr.bf16.mxu1 %v4564_v32  ;;  %4336 = vmatpush3.bf16.msra.mxu0 %v5075_v37 }
 0x49e   : > { %4338 = vmatprep.subr.bf16.mxu0 %v5087_v43 }
 0x4a0   : > { %4308 = vmatpush3.bf16.msra.mxu1 %v4928_v1 }
 0x4a1   : > { %4309 = vmatprep.subr.bf16.mxu1 %v4564_v32  ;;  %4340 = vmatpush3.bf16.msra.mxu0 %v5087_v43 }
 0x4a2   : > { %4342 = vmatprep.subr.bf16.mxu0 %v5099_v48 }
 0x4a4   : > { %4311 = vmatpush3.bf16.msra.mxu1 %v4940_v4 }
 0x4a5   : > { %4312 = vmatprep.subr.bf16.mxu1 %v4564_v32  ;;  %4344 = vmatpush3.bf16.msra.mxu0 %v5099_v48 }
 0x4a6   : > { %4346 = vmatprep.subr.bf16.mxu0 %v5111_v34 }
 0x4a8   : > { %4314 = vmatpush3.bf16.msra.mxu1 %v4952_v8  ;;  %v1595_v8 = vadd.f32 %v5223_v40, %v5003_v27 }
 0x4a9   : > { %4315 = vmatprep.subr.bf16.mxu1 %v4564_v32  ;;  %4348 = vmatpush3.bf16.msra.mxu0 %v5111_v34 }
 0x4aa   : > { %4350 = vmatprep.subr.bf16.mxu0 %v5123_v54 }
 0x4ac   : > { %4317 = vmatpush3.bf16.msra.mxu1 %v4964_v11  ;;  %v1593_v11 = vadd.f32 %v5228_v45, %v5001_v26 }
 0x4ad   : > { %4318 = vmatprep.subr.bf16.mxu1 %v4564_v32  ;;  %4352 = vmatpush3.bf16.msra.mxu0 %v5123_v54 }
 0x4ae   : > { %4377 = vmatprep.subr.bf16.mxu0 %v4564_v32 }
 0x4b0   : > { %4320 = vmatpush3.bf16.msra.mxu1 %v4976_v14 }
 0x4b1   : > { %4353 = vmatprep.subr.bf16.mxu1 %v4564_v32 }
 0x4b3   : > { %3627 = vmatmul.mubr.f32.vlgmr.msra.gmra.mrb[18].mxu1 %v2093_v49 }
 0x4b4   : > { %4355 = vmatpush3.bf16.msra.mxu1 %v5039_v19  ;;  %3696 = vmatprep.mubr.msk.f32.mxu1 %vm4565_vm3, %v4563_v7 }
 0x4b5   : > { %4356 = vmatprep.subr.bf16.mxu1 %v4564_v32 }
 0x4b8   : > { %4358 = vmatpush3.bf16.msra.mxu1 %v5051_v23 }
 0x4b9   : > { %4359 = vmatprep.subr.bf16.mxu1 %v4564_v32 }
 0x4bc   : > { %4361 = vmatpush3.bf16.msra.mxu1 %v5063_v30 }
 0x4bd   : > { %4362 = vmatprep.subr.bf16.mxu1 %v4564_v32 }
 0x4c0   : > { %4364 = vmatpush3.bf16.msra.mxu1 %v5075_v37 }
 0x4c1   : > { %4365 = vmatprep.subr.bf16.mxu1 %v4564_v32 }
 0x4c4   : > { %4367 = vmatpush3.bf16.msra.mxu1 %v5087_v43 }
 0x4c5   : > { %4368 = vmatprep.subr.bf16.mxu1 %v4564_v32 }
 0x4c8   : > { %4370 = vmatpush3.bf16.msra.mxu1 %v5099_v48 }
 0x4c9   : > { %4371 = vmatprep.subr.bf16.mxu1 %v4564_v32 }
 0x4cc   : > { %4373 = vmatpush3.bf16.msra.mxu1 %v5111_v34 }
 0x4cd   : > { %4374 = vmatprep.subr.bf16.mxu1 %v4564_v32 }
 0x4d0   : > { %4376 = vmatpush3.bf16.msra.mxu1 %v5123_v54 }
 0x4d1   : > { %4401 = vmatprep.subr.bf16.mxu1 %v4564_v32 }
 0x543   : > { %v1920_v62 = vpop.f32.mrb[30].mxu0 }
 0x544   : > { %v2005_v1 = vmul.f32 %v2003_v59, %v1920_v62  ;;  %v3523_v4 = vpop.f32.mrb[31].mxu0 }
 0x545   : > { %v2441_v4 = vld [vmem:[%s5570_s3 + $0x28] sm:$0xff] }
 0x546   : > { %v3488_v14 = vpop.f32.mrb[14].mxu1 }
 0x547   : > { %v1995_v61 = vmul.f32 %v3488_v14, %v1595_v8  ;;  %v1845_v16 = vpop.f32.mrb[15].mxu1  ;;  %v2443_v14 = vld [vmem:[%s5570_s3 + $0x38] sm:$0xff] }
 0x548   : > { %v1994_v3 = vmul.f32 %v1845_v16, %v1593_v11  ;;  %v2442_v11 = vld [vmem:[%s5570_s3 + $0x30] sm:$0xff]  ;;  %v2444_v16 = vld [vmem:[%s5570_s3 + $0x40] sm:$0xff] }
 0x54a   : > { %v1996_v5 = vadd.f32 %v1995_v61, %v1994_v3  ;;  %v4411_v61 = vpack.c.bf16 %v2443_v14, %v2442_v11  ;;  %v2445_v3 = vld [vmem:[%s5570_s3 + $0x48] sm:$0xff] }
 0x54c   : > { %v1997_v6 = vrot.slane %v1996_v5, 4 }
 0x54e   : > { %v1998_v17 = vadd.f32 %v1997_v6, %v1996_v5  ;;  %v4414_v5 = vpack.c.bf16 %v2445_v3, %v2444_v16  ;;  %v2446_v6 = vld [vmem:[%s5570_s3 + $0x50] sm:$0xff] }
 0x550   : > { %v1999_v41 = vrot.slane %v1998_v17, 2 }
 0x552   : > { %v2000_v18 = vadd.f32 %v1999_v41, %v1998_v17  ;;  %v2447_v17 = vld [vmem:[%s5570_s3 + $0x58] sm:$0xff] }
 0x553   : > { %v4417_v41 = vpack.c.bf16 %v2447_v17, %v2446_v6 }
 0x554   : > { %v2001_v20 = vrot.slane %v2000_v18, 1 }
 0x556   : > { %v2002_v22 = vadd.f32 %v2001_v20, %v2000_v18  ;;  %v2448_v18 = vld [vmem:[%s5570_s3 + $0x60] sm:$0xff]  ;;  %v2449_v20 = vld [vmem:[%s5570_s3 + $0x68] sm:$0xff] }
 0x558   : > { %v2006_v12 = vadd.f32 %v2005_v1, %v2002_v22  ;;  %v4420_v22 = vpack.c.bf16 %v2449_v20, %v2448_v18 }
 0x563   : > { %v3593_v24 = vpop.f32.mrb[32].mxu0 }
 0x564   : > { %v2084_v29 = vpop.f32.mrb[33].mxu0 }
 0x565   : > { %v2165_v31 = vmax.f32 %v2084_v29, %v3593_v24 }
 0x566   : > { %v1990_v36 = vpop.f32.mrb[16].mxu1 }
 0x567   : > { %v2007_v27 = vmul.f32 %v2006_v12, %v1990_v36  ;;  %v3558_v38 = vpop.f32.mrb[17].mxu1  ;;  %v2166_v42 = vrot.slane %v2165_v31, 4  ;;  %v2450_v12 = vld [vmem:[%s5570_s3 + $0x70] sm:$0xff] }
 0x569   : > { %v2428_v13 = vrot.slane %v2007_v27, 6  ;;  %v2167_v44 = vmax.f32 %v2165_v31, %v2166_v42  ;;  %v2419_v31 = vrot.slane %v4987_v25, 3 }
 0x56b   : > { %v5433_v26 = vsel %vm577_vm1, %v5334_v35, %v2428_v13  ;;  %v2168_v46 = vrot.slane %v2167_v44, 2  ;;  %v2011_v13 = vadd.f32 %v5223_v40, %v5010_v53 }
 0x56d   : > { %v2169_v21 = vmax.f32 %v2167_v44, %v2168_v46 }
 0x56f   : > { %v2170_v9 = vrot.slane %v2169_v21, 1 }
 0x571   : > { %v2171_v33 = vmax.f32 %v2169_v21, %v2170_v9 }
 0x586   : > { %v2161_v51 = vpop.f32.mrb[18].mxu1 }
 0x587   : > { %v2172_v52 = vmax.f32 %v2171_v33, %v2161_v51  ;;  %v3628_v28 = vpop.f32.mrb[19].mxu1 }
 0x589   : > { %v2176_v39 = vrot.slane %v2172_v52, %v5005_v47  ;;  %v2183_v55 = vsub.f32 %v2161_v51, %v2172_v52 }
 0x58b   : > { %v2177_v10 = vsub.f32 %v2084_v29, %v2176_v39  ;;  %v2178_v56 = vsub.f32 %v3593_v24, %v2176_v39  ;;  %v2184_v58 = vmul.f32 1.442695, %v2183_v55  ;;  %v2451_v24 = vld [vmem:[%s5570_s3 + $0x78] sm:$0xff] }
 0x58c   : > { %v4423_v29 = vpack.c.bf16 %v2451_v24, %v2450_v12 }
 0x58d   : > { %v2179_v15 = vmul.f32 1.442695, %v2177_v10  ;;  %v2181_v60 = vmul.f32 1.442695, %v2178_v56  ;;  %4491 = vpow2.f32 %v2184_v58 }
 0x58f   : > { %4493 = vpow2.f32 %v2179_v15 }
 0x590   : > { %4495 = vpow2.f32 %v2181_v60 }
 0x597   : > { %v4492_v35 = vpop.eup %4491 }
 0x598   : > { %3697 = vmatmul.mubr.f32.vlgmr.msra.gmra.mrb[20].mxu1 %v4492_v35 }
 0x599   : > { %v4494_v57 = vpop.eup %4493  ;;  %3766 = vmatprep.mubr.msk.f32.mxu1 %vm4565_vm3, %v4563_v7 }
 0x59a   : > { %v4496_v63 = vpop.eup %4495  ;;  %3661 = vmatprep.mubr.f32.mxu0 %v4494_v57 }
 0x59b   : > { %v2186_v0 = vadd.f32 %v4496_v63, %v4494_v57  ;;  %3662 = vmatmul.mubr.f32.vlgmr.msra.gmra.mrb[34].mxu0 %v4496_v63 }
 0x59c   : > { %4379 = vmatpush3.bf16.msra.mxu0 %v5039_v19  ;;  %3731 = vmatprep.mubr.msk.f32.mxu0 %vm4565_vm3, %v4563_v7 }
 0x59d   : > { %v2187_v47 = vrot.slane %v2186_v0, 4  ;;  %4380 = vmatprep.subr.bf16.mxu0 %v4564_v32 }
 0x59f   : > { %v2188_v2 = vadd.f32 %v2187_v47, %v2186_v0 }
 0x5a0   : > { %4382 = vmatpush3.bf16.msra.mxu0 %v5051_v23  ;;  %v2436_v23 = vld [vmem:[%s5570_s3] sm:$0xff] }
 0x5a1   : > { %v2189_v49 = vrot.slane %v2188_v2, 2  ;;  %4383 = vmatprep.subr.bf16.mxu0 %v4564_v32 }
 0x5a3   : > { %v2190_v59 = vadd.f32 %v2189_v49, %v2188_v2 }
 0x5a4   : > { %4385 = vmatpush3.bf16.msra.mxu0 %v5063_v30  ;;  %v2437_v30 = vld [vmem:[%s5570_s3 + $0x8] sm:$0xff] }
 0x5a5   : > { %v2191_v62 = vrot.slane %v2190_v59, 1  ;;  %4386 = vmatprep.subr.bf16.mxu0 %v4564_v32 }
 0x5a7   : > { %v2192_v1 = vadd.f32 %v2191_v62, %v2190_v59 }
 0x5a8   : > { %4388 = vmatpush3.bf16.msra.mxu0 %v5075_v37  ;;  %v4402_v37 = vpack.c.bf16 %v2437_v30, %v2436_v23 }
 0x5a9   : > { %v2193_v19 = vadd.f32 %v4492_v35, %v2192_v1  ;;  %4389 = vmatprep.subr.bf16.mxu0 %v4564_v32 }
 0x5aa   : > { %4403 = vmatpush3.bf16.msra.mxu1 %v4402_v37 }
 0x5ab   : > { %4497 = vrcp.f32 %v2193_v19  ;;  %4404 = vmatprep.subr.bf16.mxu1 %v4564_v32 }
 0x5ac   : > { %4391 = vmatpush3.bf16.msra.mxu0 %v5087_v43  ;;  %v2438_v43 = vld [vmem:[%s5570_s3 + $0x10] sm:$0xff] }
 0x5ad   : > { %4392 = vmatprep.subr.bf16.mxu0 %v4564_v32 }
 0x5b0   : > { %4394 = vmatpush3.bf16.msra.mxu0 %v5099_v48  ;;  %v2439_v48 = vld [vmem:[%s5570_s3 + $0x18] sm:$0xff] }
 0x5b1   : > { %4395 = vmatprep.subr.bf16.mxu0 %v4564_v32 }
 0x5b4   : > { %4397 = vmatpush3.bf16.msra.mxu0 %v5111_v34  ;;  %v4405_v34 = vpack.c.bf16 %v2439_v48, %v2438_v43 }
 0x5b5   : > { %4398 = vmatprep.subr.bf16.mxu0 %v4564_v32  ;;  %v4498_v7 = vpop.eup %4497 }
 0x5b6   : > { %4406 = vmatpush3.bf16.msra.mxu1 %v4405_v34 }
 0x5b7   : > { %4407 = vmatprep.subr.bf16.mxu1 %v4564_v32 }
 0x5b8   : > { %4400 = vmatpush3.bf16.msra.mxu0 %v5123_v54  ;;  %v2440_v54 = vld [vmem:[%s5570_s3 + $0x20] sm:$0xff] }
 0x5b9   : > { %v4408_v8 = vpack.c.bf16 %v2441_v4, %v2440_v54 }
 0x5bb   : > { %3732 = vmatmul.mubr.f32.vlgmr.msra.gmra.mrb[36].mxu0 %v4498_v7  ;;  %4409 = vmatpush3.bf16.msra.mxu1 %v4408_v8 }
 0x5bc   : > { %4410 = vmatprep.subr.bf16.mxu1 %v4564_v32 }
 0x5bf   : > { %4412 = vmatpush3.bf16.msra.mxu1 %v4411_v61 }
 0x5c0   : > { %4413 = vmatprep.subr.bf16.mxu1 %v4564_v32 }
 0x5c3   : > { %4415 = vmatpush3.bf16.msra.mxu1 %v4414_v5 }
 0x5c4   : > { %4416 = vmatprep.subr.bf16.mxu1 %v4564_v32 }
 0x5c7   : > { %4418 = vmatpush3.bf16.msra.mxu1 %v4417_v41 }
 0x5c8   : > { %4419 = vmatprep.subr.bf16.mxu1 %v4564_v32 }
 0x5cb   : > { %4421 = vmatpush3.bf16.msra.mxu1 %v4420_v22 }
 0x5cc   : > { %4422 = vmatprep.subr.bf16.mxu1 %v4564_v32  ;;  %v2009_v32 = vadd.f32 %v5228_v45, %v5007_v50  ;;  %v2611_v45 = vld [vmem:[%s5576_s9] ss:$0 sm:$0xff] }
 0x5cf   : > { %4424 = vmatpush3.bf16.msra.mxu1 %v4423_v29 }
 0x66b   : > { %v2336_v36 = vpop.f32.mrb[20].mxu1 }
 0x66c   : > { %v2421_v27 = vmul.f32 %v2419_v31, %v2336_v36  ;;  %v3698_v38 = vpop.f32.mrb[21].mxu1 }
 0x66e   : > { %v3663_v42 = vpop.f32.mrb[34].mxu0 }
 0x66f   : > { %v2411_v44 = vmul.f32 %v3663_v42, %v2011_v13  ;;  %v2261_v46 = vpop.f32.mrb[35].mxu0 }
 0x670   : > { %v2410_v21 = vmul.f32 %v2261_v46, %v2009_v32 }
 0x672   : > { %v2412_v9 = vadd.f32 %v2411_v44, %v2410_v21 }
 0x674   : > { %v2413_v33 = vrot.slane %v2412_v9, 4 }
 0x676   : > { %v2414_v51 = vadd.f32 %v2413_v33, %v2412_v9 }
 0x678   : > { %v2415_v52 = vrot.slane %v2414_v51, 2 }
 0x67a   : > { %v2416_v25 = vadd.f32 %v2415_v52, %v2414_v51 }
 0x67c   : > { %v2417_v28 = vrot.slane %v2416_v25, 1 }
 0x67e   : > { %v2418_v39 = vadd.f32 %v2417_v28, %v2416_v25 }
 0x680   : > { %v2422_v55 = vadd.f32 %v2421_v27, %v2418_v39 }
 0x68e   : > { %v2406_v10 = vpop.f32.mrb[36].mxu0 }
 0x68f   : > { %v2423_v56 = vmul.f32 %v2422_v55, %v2406_v10  ;;  %v3733_v53 = vpop.f32.mrb[37].mxu0 }
 0x691   : > { %v2431_v40 = vrot.slane %v2423_v56, 5 }
 0x693   : > { %v2435_v50 = vsel %vm579_vm2, %v5433_v26, %v2431_v40 }
 0x694   : > { %3767 = vmatmul.mubr.f32.vlgmr.msra.gmra.mrb[22].mxu1 %v2435_v50 }
 0x767   : > { %v2525_v58 = vpop.f32.mrb[22].mxu1 }
 0x768   : > { %v2526_v15 = vadd.f32 %v2611_v45, %v2525_v58  ;;  %v3768_v60 = vpop.f32.mrb[23].mxu1 }
 0x76a   : > { %2529 = vst [vmem:[%s352_s26] sm:$0xf] %v2526_v15 }
 0x76b   : > { %4512 = shalt.err (!%p4509_p3)
}
 0x76c   : > { %s4513_s18 = scalar_lea.hbm %s5525_s28, 64  ;;  %s4517_s26 = scalar_lea.hbm %s5577_s10, 128 }
 0x76d   : > { %p4514_p4 = scmp.ne.s32.totalorder %s5525_s28, %s4513_s18  ;;  %p4518_p9 = scmp.lt.u32.totalorder %s5525_s28, %s5577_s10 }
 0x76e   : > { %p4519_p10 = scmp.lt.u32.totalorder %s4517_s26, %s4513_s18  ;;  %p4521_p12 = scmp.lt.u32.totalorder %s4513_s18, %s5525_s28 }
 0x76f   : > { %p4515_p7 = pnand %p4514_p4, %p4660_p5 }
 0x770   : > { %p4520_p11 = por %p4519_p10, %p4518_p9 }
 0x771   : > { %p4516_p8 = pneg %p4515_p7 }
 0x772   : > { %p4522_p13 = por %p4521_p12, %p4520_p11 }
 0x774   : > { %p4523_p0 = pnand %p4522_p13, %p4516_p8 }
 0x776   : > { %4526 = shalt.err (!%p4523_p0)
}
 0x777   : > { %4425 = dma.vmem_to_hbm [thread:$0]  (%p4660_p5), %s5527_s27, 64, %s5525_s28, %s2531_s30  }
 0x778 PF: > { %p4431_p1 = scmp.ge.s32.totalorder %s4561_s16, 2  ;;  %s2556_s11 = sand.u32 1, %s4549_s13  }
 0x779   : > { %s2557_s17 = scalar_lea.sflag [#allocation3], %s2556_s11 }
 0x77a   : > { %p4428_p2 = pnand %p4431_p1, %p4664_p6 }
 0x77c   : > { %4544 = dma.done.wait (!%p4428_p2), %s2557_s17, 64  }
 0x77d   : > { %4546 = vsyncadd (!%p4428_p2), %s2557_s17, 4294967232  ;;  %s5581_s20 = sld [smem:[#allocation5_spill]]  ;;  %p20_p3 = scmp.ge.s32.totalorder %s4647_s19, 4  }
 0x77e   : > { %s5582_s13 = smov %s4553_s14  ;;  %s5583_s14 = smov %s4557_s15 }
 0x77f   : > { %s5585_s16 = smov %s4647_s19  ;;  %22 = sbr.rel (!%p20_p3) target bundleno = 3 (0x3), region = 95 }
 0x783   : > { %s5584_s15 = smov %s5581_s20 }
 0x786   :  { %2562 = vsyncpa [#allocation3], 1 }
 0x787   :  { %2564 = vsyncpa [#allocation3 + $0x1], 1 }

</bundles_post_ra>
